<compile_context>
chip_gen: v6e
topology: v6e:2x2x1
jax: 0.10.0
libtpu: 0.0.40
codegen_flags: <defaults>
</compile_context>

<pallas_src>
import math

import jax
import jax.numpy as jnp
from jax.experimental import pallas as pl
from jax.experimental.pallas import tpu as pltpu

# ----------------------- hyperparameters (small) -----------------------------
CLASSES = 5
D_MODEL = 32
S_LEN_1 = 32          # == D_MODEL so the interaction map flattens to d_model**2
S_LEN_2 = 32
N_LAYERS = 2
HEADS = 2
BATCH = 2
D_HALF = D_MODEL // 2
HEAD_DIM = D_HALF // HEADS
FF_DIM = 4 * D_HALF
N1 = D_MODEL ** 2 // 4            # out1 width  (256)
NMID = D_MODEL // 4 * CLASSES     # out2 width  (40)

assert S_LEN_1 == D_MODEL and S_LEN_2 == D_MODEL, \
    "encoder output must flatten to (B, d_model**2)  (x.view(-1, d_model**2))"
assert D_HALF % HEADS == 0

# ------------------- packed-parameter slab layouts (static) -------------------
# Per-layer weight slab rows (lane width = 64):
ROW_WQ = 0
ROW_WK = D_HALF
ROW_WV = 2 * D_HALF
ROW_WO = 3 * D_HALF
ROW_WFF1 = 4 * D_HALF
ROW_WFF2 = 5 * D_HALF
WSLAB_ROWS = 5 * D_HALF + FF_DIM          # 144
WSLAB_COLS = max(D_HALF, FF_DIM)          # 64

# Bias / LayerNorm / input-projection vector slab (one row per vector).
_VEC_BASE = ("in1_w", "in1_b", "in2_w", "in2_b")
_VEC_PER_LAYER = ("bq", "bk", "bv", "bo", "bff1", "bff2",
                  "ln1_g", "ln1_b", "ln2_g", "ln2_b")
_VEC_TAIL = ("out1_b", "out2_b", "out3_b")
VEC_NROWS = len(_VEC_BASE) + N_LAYERS * len(_VEC_PER_LAYER) + len(_VEC_TAIL)
VEC_WIDTH = max(D_HALF, FF_DIM, N1, NMID, CLASSES)    # 256


def vec_row(name, layer=None):
    """Row index of a packed bias / LN / input-proj vector (static Python int)."""
    if name in _VEC_BASE:
        return _VEC_BASE.index(name)
    if name in _VEC_PER_LAYER:
        return len(_VEC_BASE) + layer * len(_VEC_PER_LAYER) + _VEC_PER_LAYER.index(name)
    return len(_VEC_BASE) + N_LAYERS * len(_VEC_PER_LAYER) + _VEC_TAIL.index(name)


# ------------------------------ small helpers --------------------------------
def _dot(a, b):
    return jnp.dot(a, b, preferred_element_type=jnp.float32)


def _dot_t(a, b):
    # a @ b.T without materializing a transpose (contract last dims).
    return jax.lax.dot_general(a, b, (((1,), (1,)), ((), ())),
                               preferred_element_type=jnp.float32)


def _layer_norm(x, g, b):
    mu = jnp.mean(x, axis=-1, keepdims=True)
    var = jnp.mean(jnp.square(x - mu), axis=-1, keepdims=True)
    return (x - mu) * jax.lax.rsqrt(var + 1e-5) * g + b


# ------------------------------ fused kernel ----------------------------------
def fused_forward_kernel(pooler_ref, emb_ref, wlay_ref, vec_ref,
                         w1_ref, w2_ref, w3_ref, o_ref):
    B, S1, S2 = BATCH, S_LEN_1, S_LEN_2
    D, H, Dh, L, FF = D_HALF, HEADS, HEAD_DIM, N_LAYERS, FF_DIM
    head_scale = 1.0 / math.sqrt(Dh)
    inter_scale = 1.0 / math.sqrt(D)

    def vrow(name, layer=None, width=D):
        r = vec_row(name, layer)
        return vec_ref[r:r + 1, 0:width]                       # (1, width)

    # ---- scalar -> feature embeddings  (Linear(1, D) == broadcast mul + add) --
    x1 = pooler_ref[...] * vrow("in1_w") + vrow("in1_b")       # (B*S1, D)
    x2 = emb_ref[...] * vrow("in2_w") + vrow("in2_b")          # (B*S2, D)

    # ---------------- encoder: statically unrolled cross-attention layers ------
    for l in range(L):
        base = l * WSLAB_ROWS
        wq = wlay_ref[base + ROW_WQ:base + ROW_WQ + D, 0:D]       # (D, D)
        wk = wlay_ref[base + ROW_WK:base + ROW_WK + D, 0:D]
        wv = wlay_ref[base + ROW_WV:base + ROW_WV + D, 0:D]
        wo = wlay_ref[base + ROW_WO:base + ROW_WO + D, 0:D]       # (H*Dh, D)
        wff1 = wlay_ref[base + ROW_WFF1:base + ROW_WFF1 + D, 0:FF]    # (D, FF)
        wff2 = wlay_ref[base + ROW_WFF2:base + ROW_WFF2 + FF, 0:D]    # (FF, D)

        # merged-head Q/K/V projections: 3 dots over all batches / heads at once
        q = _dot(x1, wq) + vrow("bq", l)                       # (B*S1, D)
        k = _dot(x2, wk) + vrow("bk", l)                       # (B*S2, D)
        v = _dot(x2, wv) + vrow("bv", l)                       # (B*S2, D)

        # per-(batch, head) softmax attention (B*H = 4 tiny score/ctx dots —
        # unavoidable at these shapes); contexts are gathered in vregs and fed
        # to ONE merged Wo dot for all batches (no VMEM scratch round-trip).
        ctx_rows = []
        for b in range(B):
            head_ctx = []
            for h in range(H):
                qbh = q[b * S1:(b + 1) * S1, h * Dh:(h + 1) * Dh] * head_scale
                kbh = k[b * S2:(b + 1) * S2, h * Dh:(h + 1) * Dh]
                vbh = v[b * S2:(b + 1) * S2, h * Dh:(h + 1) * Dh]
                s = _dot_t(qbh, kbh)                           # (S1, S2)
                s = s - jnp.max(s, axis=-1, keepdims=True)
                p = jnp.exp(s)
                p = p * pl.reciprocal(jnp.sum(p, axis=-1, keepdims=True),
                                      approx=True)
                head_ctx.append(_dot(p, vbh))                  # (S1, Dh)
            ctx_rows.append(jnp.concatenate(head_ctx, axis=1))  # (S1, H*Dh)
        ctx = jnp.concatenate(ctx_rows, axis=0)                 # (B*S1, H*Dh)
        attn = _dot(ctx, wo) + vrow("bo", l)                    # (B*S1, D)

        x1 = _layer_norm(x1 + attn, vrow("ln1_g", l), vrow("ln1_b", l))
        ff = jnp.maximum(_dot(x1, wff1) + vrow("bff1", l, FF), 0.0)
        ff = _dot(ff, wff2) + vrow("bff2", l)
        x1 = _layer_norm(x1 + ff, vrow("ln2_g", l), vrow("ln2_b", l))

    # -------- interaction map, flattened lane-dense in-register -----------------
    x1s = x1 * inter_scale
    flat_rows = []
    for b in range(B):
        inter_b = _dot_t(x1s[b * S1:(b + 1) * S1, :],
                         x2[b * S2:(b + 1) * S2, :])            # (S1, S2)
        # row-major flatten (i outer, j inner) via lane-concatenation of the
        # S1 static row slices -> (1, S1*S2); cheap data movement, no matmuls.
        flat_rows.append(jnp.concatenate(
            [inter_b[i:i + 1, :] for i in range(S1)], axis=1))
    inter_flat = jnp.concatenate(flat_rows, axis=0)             # (B, S1*S2)

    # -------- out1(relu) -> out2(relu) -> out3 head: 3 dense matmuls ------------
    h1 = jnp.maximum(_dot(inter_flat, w1_ref[...]) + vrow("out1_b", width=N1), 0.0)
    h2 = jnp.maximum(_dot(h1, w2_ref[...]) + vrow("out2_b", width=NMID), 0.0)
    # TODO(synk): nn.Dropout after out3 is identity at inference time.
    o_ref[...] = _dot(h2, w3_ref[...]) + vrow("out3_b", width=CLASSES)


# ------------------------------ host packing ----------------------------------
def pack_params(params):
    """Pack the per-tensor params into a few DMA-friendly slabs (host-side, once)."""
    D, FF, L = D_HALF, FF_DIM, N_LAYERS

    wl = jnp.zeros((L * WSLAB_ROWS, WSLAB_COLS), jnp.float32)
    for l in range(L):
        r = l * WSLAB_ROWS
        wl = wl.at[r + ROW_WQ:r + ROW_WQ + D, :D].set(params["wq"][l])
        wl = wl.at[r + ROW_WK:r + ROW_WK + D, :D].set(params["wk"][l])
        wl = wl.at[r + ROW_WV:r + ROW_WV + D, :D].set(params["wv"][l])
        wl = wl.at[r + ROW_WO:r + ROW_WO + D, :D].set(params["wo"][l])
        wl = wl.at[r + ROW_WFF1:r + ROW_WFF1 + D, :FF].set(params["wff1"][l])
        wl = wl.at[r + ROW_WFF2:r + ROW_WFF2 + FF, :D].set(params["wff2"][l])

    vec = jnp.zeros((VEC_NROWS, VEC_WIDTH), jnp.float32)

    def put(v, name, value, layer=None):
        value = jnp.asarray(value, jnp.float32).reshape(-1)
        return v.at[vec_row(name, layer), :value.shape[0]].set(value)

    for name in _VEC_BASE:
        vec = put(vec, name, params[name])
    for l in range(L):
        for name in _VEC_PER_LAYER:
            vec = put(vec, name, params[name][l], layer=l)
    for name in _VEC_TAIL:
        vec = put(vec, name, params[name])

    return (wl, vec, params["out1_w"], params["out2_w"], params["out3_w"])


# ------------------------------ host wrapper ----------------------------------
def model_forward(packed, pooler_output, embedding):
    """pooler_output: (B, s_len_1), embedding: (B, s_len_2) -> logits (B, classes).

    One fused pallas_call; 7 inputs (2 data + 5 weight slabs), everything VMEM
    resident for the kernel's duration, no grid, no scratch.
    """
    w_layers, vec_slab, w1, w2, w3 = packed
    B, S1 = pooler_output.shape
    S2 = embedding.shape[1]
    args = (pooler_output.reshape(B * S1, 1), embedding.reshape(B * S2, 1),
            w_layers, vec_slab, w1, w2, w3)

    vmem = pl.BlockSpec(memory_space=pltpu.MemorySpace.VMEM)
    return pl.pallas_call(
        fused_forward_kernel,
        out_shape=jax.ShapeDtypeStruct((B, CLASSES), jnp.float32),
        in_specs=[vmem] * len(args),
        out_specs=vmem,
    )(*args)


# -------------------------- pure-JAX reference --------------------------------
def ref_forward(params, pooler_output, embedding):
    D, Dh, H, L = D_HALF, HEAD_DIM, HEADS, N_LAYERS

    def ln(x, g, b):
        mu = x.mean(-1, keepdims=True)
        var = ((x - mu) ** 2).mean(-1, keepdims=True)
        return (x - mu) * jax.lax.rsqrt(var + 1e-5) * g + b

    x1 = pooler_output[..., None] * params["in1_w"] + params["in1_b"]
    x2 = embedding[..., None] * params["in2_w"] + params["in2_b"]
    B, S1, _ = x1.shape
    S2 = x2.shape[1]
    for l in range(L):
        q = x1 @ params["wq"][l] + params["bq"][l]
        k = x2 @ params["wk"][l] + params["bk"][l]
        v = x2 @ params["wv"][l] + params["bv"][l]
        qh = q.reshape(B, S1, H, Dh).transpose(0, 2, 1, 3)
        kh = k.reshape(B, S2, H, Dh).transpose(0, 2, 1, 3)
        vh = v.reshape(B, S2, H, Dh).transpose(0, 2, 1, 3)
        s = jnp.einsum("bhqd,bhkd->bhqk", qh, kh) / math.sqrt(Dh)
        a = jnp.einsum("bhqk,bhkd->bhqd", jax.nn.softmax(s, axis=-1), vh)
        a = a.transpose(0, 2, 1, 3).reshape(B, S1, D)
        o = a @ params["wo"][l] + params["bo"][l]
        x1 = ln(x1 + o, params["ln1_g"][l], params["ln1_b"][l])
        ff = jax.nn.relu(x1 @ params["wff1"][l] + params["bff1"][l])
        ff = ff @ params["wff2"][l] + params["bff2"][l]
        x1 = ln(x1 + ff, params["ln2_g"][l], params["ln2_b"][l])
    inter = jnp.einsum("bid,bjd->bij", x1, x2) / math.sqrt(D)
    x = inter.reshape(B, S1 * S2)
    x = jax.nn.relu(x @ params["out1_w"] + params["out1_b"])
    x = jax.nn.relu(x @ params["out2_w"] + params["out2_b"])
    return x @ params["out3_w"] + params["out3_b"]


# ------------------------------ param init -----------------------------------
def init_params(key):
    keys = iter(jax.random.split(key, 32))

    def w_init(fan_in, shape, std=None):
        if std is None:
            std = 1.0 / math.sqrt(fan_in)         # torch default-ish scale
        return std * jax.random.normal(next(keys), shape, jnp.float32)

    def b_init(fan_in, shape):
        bound = 1.0 / math.sqrt(fan_in)
        return jax.random.uniform(next(keys), shape, jnp.float32, -bound, bound)

    D, FF, L = D_HALF, FF_DIM, N_LAYERS
    d2 = D_MODEL ** 2
    p = {
        "in1_w": w_init(1, (D,)), "in1_b": b_init(1, (D,)),
        "in2_w": w_init(1, (D,)), "in2_b": b_init(1, (D,)),
        # attention projections, merged over heads (column blocks = heads)
        "wq": w_init(D, (L, D, D)), "bq": b_init(D, (L, D)),
        "wk": w_init(D, (L, D, D)), "bk": b_init(D, (L, D)),
        "wv": w_init(D, (L, D, D)), "bv": b_init(D, (L, D)),
        "wo": w_init(D, (L, D, D)), "bo": b_init(D, (L, D)),
        "wff1": w_init(D, (L, D, FF)), "bff1": b_init(D, (L, FF)),
        "wff2": w_init(FF, (L, FF, D)), "bff2": b_init(FF, (L, D)),
        "ln1_g": jnp.ones((L, D), jnp.float32),
        "ln1_b": jnp.zeros((L, D), jnp.float32),
        "ln2_g": jnp.ones((L, D), jnp.float32),
        "ln2_b": jnp.zeros((L, D), jnp.float32),
        # he-normal for out1/out2, lecun-normal for out3 (linear_init_with_*)
        "out1_w": w_init(d2, (d2, N1), std=math.sqrt(2.0 / d2)),
        "out1_b": b_init(d2, (N1,)),
        "out2_w": w_init(N1, (N1, NMID), std=math.sqrt(2.0 / N1)),
        "out2_b": b_init(N1, (NMID,)),
        "out3_w": w_init(NMID, (NMID, CLASSES), std=math.sqrt(1.0 / NMID)),
        "out3_b": b_init(NMID, (CLASSES,)),
    }
    return p


# ---------------------------------- main --------------------------------------
if __name__ == "__main__":
    key = jax.random.PRNGKey(0)
    kp, k1, k2 = jax.random.split(key, 3)
    params = init_params(kp)
    packed = pack_params(params)      # host-side packing, outside the hot path

    # stand-ins for x['input_ids']/x['attention_mask'] -> ChemBERTa pooler_output,
    # and x['embedding'] (scalar sequence).
    pooler_output = jax.random.normal(k1, (BATCH, S_LEN_1), jnp.float32)
    embedding = jax.random.normal(k2, (BATCH, S_LEN_2), jnp.float32)

    fwd = jax.jit(model_forward)
    out = jax.block_until_ready(fwd(packed, pooler_output, embedding))

    ref = ref_forward(params, pooler_output, embedding)
    assert out.shape == (BATCH, CLASSES), out.shape
    err = float(jnp.max(jnp.abs(out - ref)))
    tol = 5e-3 * max(1.0, float(jnp.max(jnp.abs(ref))))   # approx-rcp softmax
    assert err < tol, f"Pallas vs reference mismatch: max abs err = {err}"
    print("KERNEL_OK")
</pallas_src>

<mosaic_0001>
module attributes {stable_mosaic.version = 11 : i64} {
  func.func @fused_forward_kernel(%arg0: memref<64x1xf32, #tpu.memory_space<vmem>>, %arg1: memref<64x1xf32, #tpu.memory_space<vmem>>, %arg2: memref<288x64xf32, #tpu.memory_space<vmem>>, %arg3: memref<27x256xf32, #tpu.memory_space<vmem>>, %arg4: memref<1024x256xf32, #tpu.memory_space<vmem>>, %arg5: memref<256x40xf32, #tpu.memory_space<vmem>>, %arg6: memref<40x5xf32, #tpu.memory_space<vmem>>, %arg7: memref<2x5xf32, #tpu.memory_space<vmem>>) attributes {dimension_semantics = [], scalar_prefetch = 0 : i64, scratch_operands = 0 : i64, tpu.core_type = #tpu.core_type<tc>} {
    %c0 = arith.constant 0 : index
    %c0_0 = arith.constant 0 : index
    %0 = vector.load %arg0[%c0, %c0_0] : memref<64x1xf32, #tpu.memory_space<vmem>>, vector<64x1xf32>
    %c0_1 = arith.constant 0 : index
    %c0_2 = arith.constant 0 : index
    %1 = vector.load %arg3[%c0_1, %c0_2] : memref<27x256xf32, #tpu.memory_space<vmem>>, vector<1x16xf32>
    %2 = vector.broadcast %0 : vector<64x1xf32> to vector<64x16xf32>
    %3 = vector.broadcast %1 : vector<1x16xf32> to vector<64x16xf32>
    %4 = arith.mulf %2, %3 : vector<64x16xf32>
    %c1 = arith.constant 1 : index
    %c0_3 = arith.constant 0 : index
    %5 = vector.load %arg3[%c1, %c0_3] : memref<27x256xf32, #tpu.memory_space<vmem>>, vector<1x16xf32>
    %6 = vector.broadcast %5 : vector<1x16xf32> to vector<64x16xf32>
    %7 = arith.addf %4, %6 : vector<64x16xf32>
    %c0_4 = arith.constant 0 : index
    %c0_5 = arith.constant 0 : index
    %8 = vector.load %arg1[%c0_4, %c0_5] : memref<64x1xf32, #tpu.memory_space<vmem>>, vector<64x1xf32>
    %c2 = arith.constant 2 : index
    %c0_6 = arith.constant 0 : index
    %9 = vector.load %arg3[%c2, %c0_6] : memref<27x256xf32, #tpu.memory_space<vmem>>, vector<1x16xf32>
    %10 = vector.broadcast %8 : vector<64x1xf32> to vector<64x16xf32>
    %11 = vector.broadcast %9 : vector<1x16xf32> to vector<64x16xf32>
    %12 = arith.mulf %10, %11 : vector<64x16xf32>
    %c3 = arith.constant 3 : index
    %c0_7 = arith.constant 0 : index
    %13 = vector.load %arg3[%c3, %c0_7] : memref<27x256xf32, #tpu.memory_space<vmem>>, vector<1x16xf32>
    %14 = vector.broadcast %13 : vector<1x16xf32> to vector<64x16xf32>
    %15 = arith.addf %12, %14 : vector<64x16xf32>
    %c0_8 = arith.constant 0 : index
    %c0_9 = arith.constant 0 : index
    %16 = vector.load %arg2[%c0_8, %c0_9] : memref<288x64xf32, #tpu.memory_space<vmem>>, vector<16x16xf32>
    %c16 = arith.constant 16 : index
    %c0_10 = arith.constant 0 : index
    %17 = vector.load %arg2[%c16, %c0_10] : memref<288x64xf32, #tpu.memory_space<vmem>>, vector<16x16xf32>
    %c32 = arith.constant 32 : index
    %c0_11 = arith.constant 0 : index
    %18 = vector.load %arg2[%c32, %c0_11] : memref<288x64xf32, #tpu.memory_space<vmem>>, vector<16x16xf32>
    %c48 = arith.constant 48 : index
    %c0_12 = arith.constant 0 : index
    %19 = vector.load %arg2[%c48, %c0_12] : memref<288x64xf32, #tpu.memory_space<vmem>>, vector<16x16xf32>
    %c64 = arith.constant 64 : index
    %c0_13 = arith.constant 0 : index
    %20 = vector.load %arg2[%c64, %c0_13] : memref<288x64xf32, #tpu.memory_space<vmem>>, vector<16x64xf32>
    %c80 = arith.constant 80 : index
    %c0_14 = arith.constant 0 : index
    %21 = vector.load %arg2[%c80, %c0_14] : memref<288x64xf32, #tpu.memory_space<vmem>>, vector<64x16xf32>
    %cst = arith.constant dense<0.000000e+00> : vector<64x16xf32>
    %22 = tpu.matmul %7, %16, %cst {dimension_numbers = #tpu.dot_dimension_numbers<[1], [0], [0], [1], [0, 0, 1, 1], [], []>} : vector<64x16xf32>, vector<16x16xf32>, vector<64x16xf32> -> vector<64x16xf32>
    %c4 = arith.constant 4 : index
    %c0_15 = arith.constant 0 : index
    %23 = vector.load %arg3[%c4, %c0_15] : memref<27x256xf32, #tpu.memory_space<vmem>>, vector<1x16xf32>
    %24 = vector.broadcast %23 : vector<1x16xf32> to vector<64x16xf32>
    %25 = arith.addf %22, %24 : vector<64x16xf32>
    %cst_16 = arith.constant dense<0.000000e+00> : vector<64x16xf32>
    %26 = tpu.matmul %15, %17, %cst_16 {dimension_numbers = #tpu.dot_dimension_numbers<[1], [0], [0], [1], [0, 0, 1, 1], [], []>} : vector<64x16xf32>, vector<16x16xf32>, vector<64x16xf32> -> vector<64x16xf32>
    %c5 = arith.constant 5 : index
    %c0_17 = arith.constant 0 : index
    %27 = vector.load %arg3[%c5, %c0_17] : memref<27x256xf32, #tpu.memory_space<vmem>>, vector<1x16xf32>
    %28 = vector.broadcast %27 : vector<1x16xf32> to vector<64x16xf32>
    %29 = arith.addf %26, %28 : vector<64x16xf32>
    %cst_18 = arith.constant dense<0.000000e+00> : vector<64x16xf32>
    %30 = tpu.matmul %15, %18, %cst_18 {dimension_numbers = #tpu.dot_dimension_numbers<[1], [0], [0], [1], [0, 0, 1, 1], [], []>} : vector<64x16xf32>, vector<16x16xf32>, vector<64x16xf32> -> vector<64x16xf32>
    %c6 = arith.constant 6 : index
    %c0_19 = arith.constant 0 : index
    %31 = vector.load %arg3[%c6, %c0_19] : memref<27x256xf32, #tpu.memory_space<vmem>>, vector<1x16xf32>
    %32 = vector.broadcast %31 : vector<1x16xf32> to vector<64x16xf32>
    %33 = arith.addf %30, %32 : vector<64x16xf32>
    %34 = vector.extract_strided_slice %25 {offsets = [0, 0], sizes = [32, 8], strides = [1, 1]} : vector<64x16xf32> to vector<32x8xf32>
    %cst_20 = arith.constant 0.353553385 : f32
    %35 = vector.broadcast %cst_20 : f32 to vector<32x8xf32>
    %36 = arith.mulf %34, %35 : vector<32x8xf32>
    %37 = vector.extract_strided_slice %29 {offsets = [0, 0], sizes = [32, 8], strides = [1, 1]} : vector<64x16xf32> to vector<32x8xf32>
    %38 = vector.extract_strided_slice %33 {offsets = [0, 0], sizes = [32, 8], strides = [1, 1]} : vector<64x16xf32> to vector<32x8xf32>
    %cst_21 = arith.constant dense<0.000000e+00> : vector<32x32xf32>
    %39 = tpu.matmul %36, %37, %cst_21 {dimension_numbers = #tpu.dot_dimension_numbers<[1], [1], [0], [0], [0, 0, 1, 0], [], []>} : vector<32x8xf32>, vector<32x8xf32>, vector<32x32xf32> -> vector<32x32xf32>
    %cst_22 = arith.constant dense<0xFF800000> : vector<32xf32>
    %40 = vector.multi_reduction <maximumf>, %39, %cst_22 [1] : vector<32x32xf32> to vector<32xf32>
    %41 = vector.shape_cast %40 : vector<32xf32> to vector<32x1xf32>
    %42 = vector.broadcast %41 : vector<32x1xf32> to vector<32x32xf32>
    %43 = arith.subf %39, %42 : vector<32x32xf32>
    %44 = math.exp %43 : vector<32x32xf32>
    %cst_23 = arith.constant dense<0.000000e+00> : vector<32xf32>
    %45 = vector.multi_reduction <add>, %44, %cst_23 [1] : vector<32x32xf32> to vector<32xf32>
    %46 = vector.shape_cast %45 : vector<32xf32> to vector<32x1xf32>
    %47 = tpu.reciprocal %46 {approx = true} : vector<32x1xf32> -> vector<32x1xf32>
    %48 = vector.broadcast %47 : vector<32x1xf32> to vector<32x32xf32>
    %49 = arith.mulf %44, %48 : vector<32x32xf32>
    %cst_24 = arith.constant dense<0.000000e+00> : vector<32x8xf32>
    %50 = tpu.matmul %49, %38, %cst_24 {dimension_numbers = #tpu.dot_dimension_numbers<[1], [0], [0], [1], [0, 0, 1, 1], [], []>} : vector<32x32xf32>, vector<32x8xf32>, vector<32x8xf32> -> vector<32x8xf32>
    %51 = vector.extract_strided_slice %25 {offsets = [0, 8], sizes = [32, 8], strides = [1, 1]} : vector<64x16xf32> to vector<32x8xf32>
    %cst_25 = arith.constant 0.353553385 : f32
    %52 = vector.broadcast %cst_25 : f32 to vector<32x8xf32>
    %53 = arith.mulf %51, %52 : vector<32x8xf32>
    %54 = vector.extract_strided_slice %29 {offsets = [0, 8], sizes = [32, 8], strides = [1, 1]} : vector<64x16xf32> to vector<32x8xf32>
    %55 = vector.extract_strided_slice %33 {offsets = [0, 8], sizes = [32, 8], strides = [1, 1]} : vector<64x16xf32> to vector<32x8xf32>
    %cst_26 = arith.constant dense<0.000000e+00> : vector<32x32xf32>
    %56 = tpu.matmul %53, %54, %cst_26 {dimension_numbers = #tpu.dot_dimension_numbers<[1], [1], [0], [0], [0, 0, 1, 0], [], []>} : vector<32x8xf32>, vector<32x8xf32>, vector<32x32xf32> -> vector<32x32xf32>
    %cst_27 = arith.constant dense<0xFF800000> : vector<32xf32>
    %57 = vector.multi_reduction <maximumf>, %56, %cst_27 [1] : vector<32x32xf32> to vector<32xf32>
    %58 = vector.shape_cast %57 : vector<32xf32> to vector<32x1xf32>
    %59 = vector.broadcast %58 : vector<32x1xf32> to vector<32x32xf32>
    %60 = arith.subf %56, %59 : vector<32x32xf32>
    %61 = math.exp %60 : vector<32x32xf32>
    %cst_28 = arith.constant dense<0.000000e+00> : vector<32xf32>
    %62 = vector.multi_reduction <add>, %61, %cst_28 [1] : vector<32x32xf32> to vector<32xf32>
    %63 = vector.shape_cast %62 : vector<32xf32> to vector<32x1xf32>
    %64 = tpu.reciprocal %63 {approx = true} : vector<32x1xf32> -> vector<32x1xf32>
    %65 = vector.broadcast %64 : vector<32x1xf32> to vector<32x32xf32>
    %66 = arith.mulf %61, %65 : vector<32x32xf32>
    %cst_29 = arith.constant dense<0.000000e+00> : vector<32x8xf32>
    %67 = tpu.matmul %66, %55, %cst_29 {dimension_numbers = #tpu.dot_dimension_numbers<[1], [0], [0], [1], [0, 0, 1, 1], [], []>} : vector<32x32xf32>, vector<32x8xf32>, vector<32x8xf32> -> vector<32x8xf32>
    %68 = tpu.concatenate %50, %67 in 1 : vector<32x8xf32>, vector<32x8xf32> -> vector<32x16xf32>
    %69 = vector.extract_strided_slice %25 {offsets = [32, 0], sizes = [32, 8], strides = [1, 1]} : vector<64x16xf32> to vector<32x8xf32>
    %cst_30 = arith.constant 0.353553385 : f32
    %70 = vector.broadcast %cst_30 : f32 to vector<32x8xf32>
    %71 = arith.mulf %69, %70 : vector<32x8xf32>
    %72 = vector.extract_strided_slice %29 {offsets = [32, 0], sizes = [32, 8], strides = [1, 1]} : vector<64x16xf32> to vector<32x8xf32>
    %73 = vector.extract_strided_slice %33 {offsets = [32, 0], sizes = [32, 8], strides = [1, 1]} : vector<64x16xf32> to vector<32x8xf32>
    %cst_31 = arith.constant dense<0.000000e+00> : vector<32x32xf32>
    %74 = tpu.matmul %71, %72, %cst_31 {dimension_numbers = #tpu.dot_dimension_numbers<[1], [1], [0], [0], [0, 0, 1, 0], [], []>} : vector<32x8xf32>, vector<32x8xf32>, vector<32x32xf32> -> vector<32x32xf32>
    %cst_32 = arith.constant dense<0xFF800000> : vector<32xf32>
    %75 = vector.multi_reduction <maximumf>, %74, %cst_32 [1] : vector<32x32xf32> to vector<32xf32>
    %76 = vector.shape_cast %75 : vector<32xf32> to vector<32x1xf32>
    %77 = vector.broadcast %76 : vector<32x1xf32> to vector<32x32xf32>
    %78 = arith.subf %74, %77 : vector<32x32xf32>
    %79 = math.exp %78 : vector<32x32xf32>
    %cst_33 = arith.constant dense<0.000000e+00> : vector<32xf32>
    %80 = vector.multi_reduction <add>, %79, %cst_33 [1] : vector<32x32xf32> to vector<32xf32>
    %81 = vector.shape_cast %80 : vector<32xf32> to vector<32x1xf32>
    %82 = tpu.reciprocal %81 {approx = true} : vector<32x1xf32> -> vector<32x1xf32>
    %83 = vector.broadcast %82 : vector<32x1xf32> to vector<32x32xf32>
    %84 = arith.mulf %79, %83 : vector<32x32xf32>
    %cst_34 = arith.constant dense<0.000000e+00> : vector<32x8xf32>
    %85 = tpu.matmul %84, %73, %cst_34 {dimension_numbers = #tpu.dot_dimension_numbers<[1], [0], [0], [1], [0, 0, 1, 1], [], []>} : vector<32x32xf32>, vector<32x8xf32>, vector<32x8xf32> -> vector<32x8xf32>
    %86 = vector.extract_strided_slice %25 {offsets = [32, 8], sizes = [32, 8], strides = [1, 1]} : vector<64x16xf32> to vector<32x8xf32>
    %cst_35 = arith.constant 0.353553385 : f32
    %87 = vector.broadcast %cst_35 : f32 to vector<32x8xf32>
    %88 = arith.mulf %86, %87 : vector<32x8xf32>
    %89 = vector.extract_strided_slice %29 {offsets = [32, 8], sizes = [32, 8], strides = [1, 1]} : vector<64x16xf32> to vector<32x8xf32>
    %90 = vector.extract_strided_slice %33 {offsets = [32, 8], sizes = [32, 8], strides = [1, 1]} : vector<64x16xf32> to vector<32x8xf32>
    %cst_36 = arith.constant dense<0.000000e+00> : vector<32x32xf32>
    %91 = tpu.matmul %88, %89, %cst_36 {dimension_numbers = #tpu.dot_dimension_numbers<[1], [1], [0], [0], [0, 0, 1, 0], [], []>} : vector<32x8xf32>, vector<32x8xf32>, vector<32x32xf32> -> vector<32x32xf32>
    %cst_37 = arith.constant dense<0xFF800000> : vector<32xf32>
    %92 = vector.multi_reduction <maximumf>, %91, %cst_37 [1] : vector<32x32xf32> to vector<32xf32>
    %93 = vector.shape_cast %92 : vector<32xf32> to vector<32x1xf32>
    %94 = vector.broadcast %93 : vector<32x1xf32> to vector<32x32xf32>
    %95 = arith.subf %91, %94 : vector<32x32xf32>
    %96 = math.exp %95 : vector<32x32xf32>
    %cst_38 = arith.constant dense<0.000000e+00> : vector<32xf32>
    %97 = vector.multi_reduction <add>, %96, %cst_38 [1] : vector<32x32xf32> to vector<32xf32>
    %98 = vector.shape_cast %97 : vector<32xf32> to vector<32x1xf32>
    %99 = tpu.reciprocal %98 {approx = true} : vector<32x1xf32> -> vector<32x1xf32>
    %100 = vector.broadcast %99 : vector<32x1xf32> to vector<32x32xf32>
    %101 = arith.mulf %96, %100 : vector<32x32xf32>
    %cst_39 = arith.constant dense<0.000000e+00> : vector<32x8xf32>
    %102 = tpu.matmul %101, %90, %cst_39 {dimension_numbers = #tpu.dot_dimension_numbers<[1], [0], [0], [1], [0, 0, 1, 1], [], []>} : vector<32x32xf32>, vector<32x8xf32>, vector<32x8xf32> -> vector<32x8xf32>
    %103 = tpu.concatenate %85, %102 in 1 : vector<32x8xf32>, vector<32x8xf32> -> vector<32x16xf32>
    %104 = tpu.concatenate %68, %103 in 0 : vector<32x16xf32>, vector<32x16xf32> -> vector<64x16xf32>
    %cst_40 = arith.constant dense<0.000000e+00> : vector<64x16xf32>
    %105 = tpu.matmul %104, %19, %cst_40 {dimension_numbers = #tpu.dot_dimension_numbers<[1], [0], [0], [1], [0, 0, 1, 1], [], []>} : vector<64x16xf32>, vector<16x16xf32>, vector<64x16xf32> -> vector<64x16xf32>
    %c7 = arith.constant 7 : index
    %c0_41 = arith.constant 0 : index
    %106 = vector.load %arg3[%c7, %c0_41] : memref<27x256xf32, #tpu.memory_space<vmem>>, vector<1x16xf32>
    %107 = vector.broadcast %106 : vector<1x16xf32> to vector<64x16xf32>
    %108 = arith.addf %105, %107 : vector<64x16xf32>
    %109 = arith.addf %7, %108 : vector<64x16xf32>
    %c10 = arith.constant 10 : index
    %c0_42 = arith.constant 0 : index
    %110 = vector.load %arg3[%c10, %c0_42] : memref<27x256xf32, #tpu.memory_space<vmem>>, vector<1x16xf32>
    %c11 = arith.constant 11 : index
    %c0_43 = arith.constant 0 : index
    %111 = vector.load %arg3[%c11, %c0_43] : memref<27x256xf32, #tpu.memory_space<vmem>>, vector<1x16xf32>
    %cst_44 = arith.constant dense<0.000000e+00> : vector<64xf32>
    %112 = vector.multi_reduction <add>, %109, %cst_44 [1] : vector<64x16xf32> to vector<64xf32>
    %113 = vector.shape_cast %112 : vector<64xf32> to vector<64x1xf32>
    %cst_45 = arith.constant 1.600000e+01 : f32
    %114 = vector.broadcast %cst_45 : f32 to vector<64x1xf32>
    %115 = arith.divf %113, %114 : vector<64x1xf32>
    %116 = vector.broadcast %115 : vector<64x1xf32> to vector<64x16xf32>
    %117 = arith.subf %109, %116 : vector<64x16xf32>
    %118 = arith.mulf %117, %117 : vector<64x16xf32>
    %cst_46 = arith.constant dense<0.000000e+00> : vector<64xf32>
    %119 = vector.multi_reduction <add>, %118, %cst_46 [1] : vector<64x16xf32> to vector<64xf32>
    %120 = vector.shape_cast %119 : vector<64xf32> to vector<64x1xf32>
    %cst_47 = arith.constant 1.600000e+01 : f32
    %121 = vector.broadcast %cst_47 : f32 to vector<64x1xf32>
    %122 = arith.divf %120, %121 : vector<64x1xf32>
    %123 = vector.broadcast %115 : vector<64x1xf32> to vector<64x16xf32>
    %124 = arith.subf %109, %123 : vector<64x16xf32>
    %cst_48 = arith.constant 9.99999974E-6 : f32
    %125 = vector.broadcast %cst_48 : f32 to vector<64x1xf32>
    %126 = arith.addf %122, %125 : vector<64x1xf32>
    %127 = math.rsqrt %126 : vector<64x1xf32>
    %128 = vector.broadcast %127 : vector<64x1xf32> to vector<64x16xf32>
    %129 = arith.mulf %124, %128 : vector<64x16xf32>
    %130 = vector.broadcast %110 : vector<1x16xf32> to vector<64x16xf32>
    %131 = arith.mulf %129, %130 : vector<64x16xf32>
    %132 = vector.broadcast %111 : vector<1x16xf32> to vector<64x16xf32>
    %133 = arith.addf %131, %132 : vector<64x16xf32>
    %cst_49 = arith.constant dense<0.000000e+00> : vector<64x64xf32>
    %134 = tpu.matmul %133, %20, %cst_49 {dimension_numbers = #tpu.dot_dimension_numbers<[1], [0], [0], [1], [0, 0, 1, 1], [], []>} : vector<64x16xf32>, vector<16x64xf32>, vector<64x64xf32> -> vector<64x64xf32>
    %c8 = arith.constant 8 : index
    %c0_50 = arith.constant 0 : index
    %135 = vector.load %arg3[%c8, %c0_50] : memref<27x256xf32, #tpu.memory_space<vmem>>, vector<1x64xf32>
    %136 = vector.broadcast %135 : vector<1x64xf32> to vector<64x64xf32>
    %137 = arith.addf %134, %136 : vector<64x64xf32>
    %cst_51 = arith.constant 0.000000e+00 : f32
    %138 = vector.broadcast %cst_51 : f32 to vector<64x64xf32>
    %139 = arith.maximumf %137, %138 : vector<64x64xf32>
    %cst_52 = arith.constant dense<0.000000e+00> : vector<64x16xf32>
    %140 = tpu.matmul %139, %21, %cst_52 {dimension_numbers = #tpu.dot_dimension_numbers<[1], [0], [0], [1], [0, 0, 1, 1], [], []>} : vector<64x64xf32>, vector<64x16xf32>, vector<64x16xf32> -> vector<64x16xf32>
    %c9 = arith.constant 9 : index
    %c0_53 = arith.constant 0 : index
    %141 = vector.load %arg3[%c9, %c0_53] : memref<27x256xf32, #tpu.memory_space<vmem>>, vector<1x16xf32>
    %142 = vector.broadcast %141 : vector<1x16xf32> to vector<64x16xf32>
    %143 = arith.addf %140, %142 : vector<64x16xf32>
    %144 = arith.addf %133, %143 : vector<64x16xf32>
    %c12 = arith.constant 12 : index
    %c0_54 = arith.constant 0 : index
    %145 = vector.load %arg3[%c12, %c0_54] : memref<27x256xf32, #tpu.memory_space<vmem>>, vector<1x16xf32>
    %c13 = arith.constant 13 : index
    %c0_55 = arith.constant 0 : index
    %146 = vector.load %arg3[%c13, %c0_55] : memref<27x256xf32, #tpu.memory_space<vmem>>, vector<1x16xf32>
    %cst_56 = arith.constant dense<0.000000e+00> : vector<64xf32>
    %147 = vector.multi_reduction <add>, %144, %cst_56 [1] : vector<64x16xf32> to vector<64xf32>
    %148 = vector.shape_cast %147 : vector<64xf32> to vector<64x1xf32>
    %cst_57 = arith.constant 1.600000e+01 : f32
    %149 = vector.broadcast %cst_57 : f32 to vector<64x1xf32>
    %150 = arith.divf %148, %149 : vector<64x1xf32>
    %151 = vector.broadcast %150 : vector<64x1xf32> to vector<64x16xf32>
    %152 = arith.subf %144, %151 : vector<64x16xf32>
    %153 = arith.mulf %152, %152 : vector<64x16xf32>
    %cst_58 = arith.constant dense<0.000000e+00> : vector<64xf32>
    %154 = vector.multi_reduction <add>, %153, %cst_58 [1] : vector<64x16xf32> to vector<64xf32>
    %155 = vector.shape_cast %154 : vector<64xf32> to vector<64x1xf32>
    %cst_59 = arith.constant 1.600000e+01 : f32
    %156 = vector.broadcast %cst_59 : f32 to vector<64x1xf32>
    %157 = arith.divf %155, %156 : vector<64x1xf32>
    %158 = vector.broadcast %150 : vector<64x1xf32> to vector<64x16xf32>
    %159 = arith.subf %144, %158 : vector<64x16xf32>
    %cst_60 = arith.constant 9.99999974E-6 : f32
    %160 = vector.broadcast %cst_60 : f32 to vector<64x1xf32>
    %161 = arith.addf %157, %160 : vector<64x1xf32>
    %162 = math.rsqrt %161 : vector<64x1xf32>
    %163 = vector.broadcast %162 : vector<64x1xf32> to vector<64x16xf32>
    %164 = arith.mulf %159, %163 : vector<64x16xf32>
    %165 = vector.broadcast %145 : vector<1x16xf32> to vector<64x16xf32>
    %166 = arith.mulf %164, %165 : vector<64x16xf32>
    %167 = vector.broadcast %146 : vector<1x16xf32> to vector<64x16xf32>
    %168 = arith.addf %166, %167 : vector<64x16xf32>
    %c144 = arith.constant 144 : index
    %c0_61 = arith.constant 0 : index
    %169 = vector.load %arg2[%c144, %c0_61] : memref<288x64xf32, #tpu.memory_space<vmem>>, vector<16x16xf32>
    %c160 = arith.constant 160 : index
    %c0_62 = arith.constant 0 : index
    %170 = vector.load %arg2[%c160, %c0_62] : memref<288x64xf32, #tpu.memory_space<vmem>>, vector<16x16xf32>
    %c176 = arith.constant 176 : index
    %c0_63 = arith.constant 0 : index
    %171 = vector.load %arg2[%c176, %c0_63] : memref<288x64xf32, #tpu.memory_space<vmem>>, vector<16x16xf32>
    %c192 = arith.constant 192 : index
    %c0_64 = arith.constant 0 : index
    %172 = vector.load %arg2[%c192, %c0_64] : memref<288x64xf32, #tpu.memory_space<vmem>>, vector<16x16xf32>
    %c208 = arith.constant 208 : index
    %c0_65 = arith.constant 0 : index
    %173 = vector.load %arg2[%c208, %c0_65] : memref<288x64xf32, #tpu.memory_space<vmem>>, vector<16x64xf32>
    %c224 = arith.constant 224 : index
    %c0_66 = arith.constant 0 : index
    %174 = vector.load %arg2[%c224, %c0_66] : memref<288x64xf32, #tpu.memory_space<vmem>>, vector<64x16xf32>
    %cst_67 = arith.constant dense<0.000000e+00> : vector<64x16xf32>
    %175 = tpu.matmul %168, %169, %cst_67 {dimension_numbers = #tpu.dot_dimension_numbers<[1], [0], [0], [1], [0, 0, 1, 1], [], []>} : vector<64x16xf32>, vector<16x16xf32>, vector<64x16xf32> -> vector<64x16xf32>
    %c14 = arith.constant 14 : index
    %c0_68 = arith.constant 0 : index
    %176 = vector.load %arg3[%c14, %c0_68] : memref<27x256xf32, #tpu.memory_space<vmem>>, vector<1x16xf32>
    %177 = vector.broadcast %176 : vector<1x16xf32> to vector<64x16xf32>
    %178 = arith.addf %175, %177 : vector<64x16xf32>
    %cst_69 = arith.constant dense<0.000000e+00> : vector<64x16xf32>
    %179 = tpu.matmul %15, %170, %cst_69 {dimension_numbers = #tpu.dot_dimension_numbers<[1], [0], [0], [1], [0, 0, 1, 1], [], []>} : vector<64x16xf32>, vector<16x16xf32>, vector<64x16xf32> -> vector<64x16xf32>
    %c15 = arith.constant 15 : index
    %c0_70 = arith.constant 0 : index
    %180 = vector.load %arg3[%c15, %c0_70] : memref<27x256xf32, #tpu.memory_space<vmem>>, vector<1x16xf32>
    %181 = vector.broadcast %180 : vector<1x16xf32> to vector<64x16xf32>
    %182 = arith.addf %179, %181 : vector<64x16xf32>
    %cst_71 = arith.constant dense<0.000000e+00> : vector<64x16xf32>
    %183 = tpu.matmul %15, %171, %cst_71 {dimension_numbers = #tpu.dot_dimension_numbers<[1], [0], [0], [1], [0, 0, 1, 1], [], []>} : vector<64x16xf32>, vector<16x16xf32>, vector<64x16xf32> -> vector<64x16xf32>
    %c16_72 = arith.constant 16 : index
    %c0_73 = arith.constant 0 : index
    %184 = vector.load %arg3[%c16_72, %c0_73] : memref<27x256xf32, #tpu.memory_space<vmem>>, vector<1x16xf32>
    %185 = vector.broadcast %184 : vector<1x16xf32> to vector<64x16xf32>
    %186 = arith.addf %183, %185 : vector<64x16xf32>
    %187 = vector.extract_strided_slice %178 {offsets = [0, 0], sizes = [32, 8], strides = [1, 1]} : vector<64x16xf32> to vector<32x8xf32>
    %cst_74 = arith.constant 0.353553385 : f32
    %188 = vector.broadcast %cst_74 : f32 to vector<32x8xf32>
    %189 = arith.mulf %187, %188 : vector<32x8xf32>
    %190 = vector.extract_strided_slice %182 {offsets = [0, 0], sizes = [32, 8], strides = [1, 1]} : vector<64x16xf32> to vector<32x8xf32>
    %191 = vector.extract_strided_slice %186 {offsets = [0, 0], sizes = [32, 8], strides = [1, 1]} : vector<64x16xf32> to vector<32x8xf32>
    %cst_75 = arith.constant dense<0.000000e+00> : vector<32x32xf32>
    %192 = tpu.matmul %189, %190, %cst_75 {dimension_numbers = #tpu.dot_dimension_numbers<[1], [1], [0], [0], [0, 0, 1, 0], [], []>} : vector<32x8xf32>, vector<32x8xf32>, vector<32x32xf32> -> vector<32x32xf32>
    %cst_76 = arith.constant dense<0xFF800000> : vector<32xf32>
    %193 = vector.multi_reduction <maximumf>, %192, %cst_76 [1] : vector<32x32xf32> to vector<32xf32>
    %194 = vector.shape_cast %193 : vector<32xf32> to vector<32x1xf32>
    %195 = vector.broadcast %194 : vector<32x1xf32> to vector<32x32xf32>
    %196 = arith.subf %192, %195 : vector<32x32xf32>
    %197 = math.exp %196 : vector<32x32xf32>
    %cst_77 = arith.constant dense<0.000000e+00> : vector<32xf32>
    %198 = vector.multi_reduction <add>, %197, %cst_77 [1] : vector<32x32xf32> to vector<32xf32>
    %199 = vector.shape_cast %198 : vector<32xf32> to vector<32x1xf32>
    %200 = tpu.reciprocal %199 {approx = true} : vector<32x1xf32> -> vector<32x1xf32>
    %201 = vector.broadcast %200 : vector<32x1xf32> to vector<32x32xf32>
    %202 = arith.mulf %197, %201 : vector<32x32xf32>
    %cst_78 = arith.constant dense<0.000000e+00> : vector<32x8xf32>
    %203 = tpu.matmul %202, %191, %cst_78 {dimension_numbers = #tpu.dot_dimension_numbers<[1], [0], [0], [1], [0, 0, 1, 1], [], []>} : vector<32x32xf32>, vector<32x8xf32>, vector<32x8xf32> -> vector<32x8xf32>
    %204 = vector.extract_strided_slice %178 {offsets = [0, 8], sizes = [32, 8], strides = [1, 1]} : vector<64x16xf32> to vector<32x8xf32>
    %cst_79 = arith.constant 0.353553385 : f32
    %205 = vector.broadcast %cst_79 : f32 to vector<32x8xf32>
    %206 = arith.mulf %204, %205 : vector<32x8xf32>
    %207 = vector.extract_strided_slice %182 {offsets = [0, 8], sizes = [32, 8], strides = [1, 1]} : vector<64x16xf32> to vector<32x8xf32>
    %208 = vector.extract_strided_slice %186 {offsets = [0, 8], sizes = [32, 8], strides = [1, 1]} : vector<64x16xf32> to vector<32x8xf32>
    %cst_80 = arith.constant dense<0.000000e+00> : vector<32x32xf32>
    %209 = tpu.matmul %206, %207, %cst_80 {dimension_numbers = #tpu.dot_dimension_numbers<[1], [1], [0], [0], [0, 0, 1, 0], [], []>} : vector<32x8xf32>, vector<32x8xf32>, vector<32x32xf32> -> vector<32x32xf32>
    %cst_81 = arith.constant dense<0xFF800000> : vector<32xf32>
    %210 = vector.multi_reduction <maximumf>, %209, %cst_81 [1] : vector<32x32xf32> to vector<32xf32>
    %211 = vector.shape_cast %210 : vector<32xf32> to vector<32x1xf32>
    %212 = vector.broadcast %211 : vector<32x1xf32> to vector<32x32xf32>
    %213 = arith.subf %209, %212 : vector<32x32xf32>
    %214 = math.exp %213 : vector<32x32xf32>
    %cst_82 = arith.constant dense<0.000000e+00> : vector<32xf32>
    %215 = vector.multi_reduction <add>, %214, %cst_82 [1] : vector<32x32xf32> to vector<32xf32>
    %216 = vector.shape_cast %215 : vector<32xf32> to vector<32x1xf32>
    %217 = tpu.reciprocal %216 {approx = true} : vector<32x1xf32> -> vector<32x1xf32>
    %218 = vector.broadcast %217 : vector<32x1xf32> to vector<32x32xf32>
    %219 = arith.mulf %214, %218 : vector<32x32xf32>
    %cst_83 = arith.constant dense<0.000000e+00> : vector<32x8xf32>
    %220 = tpu.matmul %219, %208, %cst_83 {dimension_numbers = #tpu.dot_dimension_numbers<[1], [0], [0], [1], [0, 0, 1, 1], [], []>} : vector<32x32xf32>, vector<32x8xf32>, vector<32x8xf32> -> vector<32x8xf32>
    %221 = tpu.concatenate %203, %220 in 1 : vector<32x8xf32>, vector<32x8xf32> -> vector<32x16xf32>
    %222 = vector.extract_strided_slice %178 {offsets = [32, 0], sizes = [32, 8], strides = [1, 1]} : vector<64x16xf32> to vector<32x8xf32>
    %cst_84 = arith.constant 0.353553385 : f32
    %223 = vector.broadcast %cst_84 : f32 to vector<32x8xf32>
    %224 = arith.mulf %222, %223 : vector<32x8xf32>
    %225 = vector.extract_strided_slice %182 {offsets = [32, 0], sizes = [32, 8], strides = [1, 1]} : vector<64x16xf32> to vector<32x8xf32>
    %226 = vector.extract_strided_slice %186 {offsets = [32, 0], sizes = [32, 8], strides = [1, 1]} : vector<64x16xf32> to vector<32x8xf32>
    %cst_85 = arith.constant dense<0.000000e+00> : vector<32x32xf32>
    %227 = tpu.matmul %224, %225, %cst_85 {dimension_numbers = #tpu.dot_dimension_numbers<[1], [1], [0], [0], [0, 0, 1, 0], [], []>} : vector<32x8xf32>, vector<32x8xf32>, vector<32x32xf32> -> vector<32x32xf32>
    %cst_86 = arith.constant dense<0xFF800000> : vector<32xf32>
    %228 = vector.multi_reduction <maximumf>, %227, %cst_86 [1] : vector<32x32xf32> to vector<32xf32>
    %229 = vector.shape_cast %228 : vector<32xf32> to vector<32x1xf32>
    %230 = vector.broadcast %229 : vector<32x1xf32> to vector<32x32xf32>
    %231 = arith.subf %227, %230 : vector<32x32xf32>
    %232 = math.exp %231 : vector<32x32xf32>
    %cst_87 = arith.constant dense<0.000000e+00> : vector<32xf32>
    %233 = vector.multi_reduction <add>, %232, %cst_87 [1] : vector<32x32xf32> to vector<32xf32>
    %234 = vector.shape_cast %233 : vector<32xf32> to vector<32x1xf32>
    %235 = tpu.reciprocal %234 {approx = true} : vector<32x1xf32> -> vector<32x1xf32>
    %236 = vector.broadcast %235 : vector<32x1xf32> to vector<32x32xf32>
    %237 = arith.mulf %232, %236 : vector<32x32xf32>
    %cst_88 = arith.constant dense<0.000000e+00> : vector<32x8xf32>
    %238 = tpu.matmul %237, %226, %cst_88 {dimension_numbers = #tpu.dot_dimension_numbers<[1], [0], [0], [1], [0, 0, 1, 1], [], []>} : vector<32x32xf32>, vector<32x8xf32>, vector<32x8xf32> -> vector<32x8xf32>
    %239 = vector.extract_strided_slice %178 {offsets = [32, 8], sizes = [32, 8], strides = [1, 1]} : vector<64x16xf32> to vector<32x8xf32>
    %cst_89 = arith.constant 0.353553385 : f32
    %240 = vector.broadcast %cst_89 : f32 to vector<32x8xf32>
    %241 = arith.mulf %239, %240 : vector<32x8xf32>
    %242 = vector.extract_strided_slice %182 {offsets = [32, 8], sizes = [32, 8], strides = [1, 1]} : vector<64x16xf32> to vector<32x8xf32>
    %243 = vector.extract_strided_slice %186 {offsets = [32, 8], sizes = [32, 8], strides = [1, 1]} : vector<64x16xf32> to vector<32x8xf32>
    %cst_90 = arith.constant dense<0.000000e+00> : vector<32x32xf32>
    %244 = tpu.matmul %241, %242, %cst_90 {dimension_numbers = #tpu.dot_dimension_numbers<[1], [1], [0], [0], [0, 0, 1, 0], [], []>} : vector<32x8xf32>, vector<32x8xf32>, vector<32x32xf32> -> vector<32x32xf32>
    %cst_91 = arith.constant dense<0xFF800000> : vector<32xf32>
    %245 = vector.multi_reduction <maximumf>, %244, %cst_91 [1] : vector<32x32xf32> to vector<32xf32>
    %246 = vector.shape_cast %245 : vector<32xf32> to vector<32x1xf32>
    %247 = vector.broadcast %246 : vector<32x1xf32> to vector<32x32xf32>
    %248 = arith.subf %244, %247 : vector<32x32xf32>
    %249 = math.exp %248 : vector<32x32xf32>
    %cst_92 = arith.constant dense<0.000000e+00> : vector<32xf32>
    %250 = vector.multi_reduction <add>, %249, %cst_92 [1] : vector<32x32xf32> to vector<32xf32>
    %251 = vector.shape_cast %250 : vector<32xf32> to vector<32x1xf32>
    %252 = tpu.reciprocal %251 {approx = true} : vector<32x1xf32> -> vector<32x1xf32>
    %253 = vector.broadcast %252 : vector<32x1xf32> to vector<32x32xf32>
    %254 = arith.mulf %249, %253 : vector<32x32xf32>
    %cst_93 = arith.constant dense<0.000000e+00> : vector<32x8xf32>
    %255 = tpu.matmul %254, %243, %cst_93 {dimension_numbers = #tpu.dot_dimension_numbers<[1], [0], [0], [1], [0, 0, 1, 1], [], []>} : vector<32x32xf32>, vector<32x8xf32>, vector<32x8xf32> -> vector<32x8xf32>
    %256 = tpu.concatenate %238, %255 in 1 : vector<32x8xf32>, vector<32x8xf32> -> vector<32x16xf32>
    %257 = tpu.concatenate %221, %256 in 0 : vector<32x16xf32>, vector<32x16xf32> -> vector<64x16xf32>
    %cst_94 = arith.constant dense<0.000000e+00> : vector<64x16xf32>
    %258 = tpu.matmul %257, %172, %cst_94 {dimension_numbers = #tpu.dot_dimension_numbers<[1], [0], [0], [1], [0, 0, 1, 1], [], []>} : vector<64x16xf32>, vector<16x16xf32>, vector<64x16xf32> -> vector<64x16xf32>
    %c17 = arith.constant 17 : index
    %c0_95 = arith.constant 0 : index
    %259 = vector.load %arg3[%c17, %c0_95] : memref<27x256xf32, #tpu.memory_space<vmem>>, vector<1x16xf32>
    %260 = vector.broadcast %259 : vector<1x16xf32> to vector<64x16xf32>
    %261 = arith.addf %258, %260 : vector<64x16xf32>
    %262 = arith.addf %168, %261 : vector<64x16xf32>
    %c20 = arith.constant 20 : index
    %c0_96 = arith.constant 0 : index
    %263 = vector.load %arg3[%c20, %c0_96] : memref<27x256xf32, #tpu.memory_space<vmem>>, vector<1x16xf32>
    %c21 = arith.constant 21 : index
    %c0_97 = arith.constant 0 : index
    %264 = vector.load %arg3[%c21, %c0_97] : memref<27x256xf32, #tpu.memory_space<vmem>>, vector<1x16xf32>
    %cst_98 = arith.constant dense<0.000000e+00> : vector<64xf32>
    %265 = vector.multi_reduction <add>, %262, %cst_98 [1] : vector<64x16xf32> to vector<64xf32>
    %266 = vector.shape_cast %265 : vector<64xf32> to vector<64x1xf32>
    %cst_99 = arith.constant 1.600000e+01 : f32
    %267 = vector.broadcast %cst_99 : f32 to vector<64x1xf32>
    %268 = arith.divf %266, %267 : vector<64x1xf32>
    %269 = vector.broadcast %268 : vector<64x1xf32> to vector<64x16xf32>
    %270 = arith.subf %262, %269 : vector<64x16xf32>
    %271 = arith.mulf %270, %270 : vector<64x16xf32>
    %cst_100 = arith.constant dense<0.000000e+00> : vector<64xf32>
    %272 = vector.multi_reduction <add>, %271, %cst_100 [1] : vector<64x16xf32> to vector<64xf32>
    %273 = vector.shape_cast %272 : vector<64xf32> to vector<64x1xf32>
    %cst_101 = arith.constant 1.600000e+01 : f32
    %274 = vector.broadcast %cst_101 : f32 to vector<64x1xf32>
    %275 = arith.divf %273, %274 : vector<64x1xf32>
    %276 = vector.broadcast %268 : vector<64x1xf32> to vector<64x16xf32>
    %277 = arith.subf %262, %276 : vector<64x16xf32>
    %cst_102 = arith.constant 9.99999974E-6 : f32
    %278 = vector.broadcast %cst_102 : f32 to vector<64x1xf32>
    %279 = arith.addf %275, %278 : vector<64x1xf32>
    %280 = math.rsqrt %279 : vector<64x1xf32>
    %281 = vector.broadcast %280 : vector<64x1xf32> to vector<64x16xf32>
    %282 = arith.mulf %277, %281 : vector<64x16xf32>
    %283 = vector.broadcast %263 : vector<1x16xf32> to vector<64x16xf32>
    %284 = arith.mulf %282, %283 : vector<64x16xf32>
    %285 = vector.broadcast %264 : vector<1x16xf32> to vector<64x16xf32>
    %286 = arith.addf %284, %285 : vector<64x16xf32>
    %cst_103 = arith.constant dense<0.000000e+00> : vector<64x64xf32>
    %287 = tpu.matmul %286, %173, %cst_103 {dimension_numbers = #tpu.dot_dimension_numbers<[1], [0], [0], [1], [0, 0, 1, 1], [], []>} : vector<64x16xf32>, vector<16x64xf32>, vector<64x64xf32> -> vector<64x64xf32>
    %c18 = arith.constant 18 : index
    %c0_104 = arith.constant 0 : index
    %288 = vector.load %arg3[%c18, %c0_104] : memref<27x256xf32, #tpu.memory_space<vmem>>, vector<1x64xf32>
    %289 = vector.broadcast %288 : vector<1x64xf32> to vector<64x64xf32>
    %290 = arith.addf %287, %289 : vector<64x64xf32>
    %cst_105 = arith.constant 0.000000e+00 : f32
    %291 = vector.broadcast %cst_105 : f32 to vector<64x64xf32>
    %292 = arith.maximumf %290, %291 : vector<64x64xf32>
    %cst_106 = arith.constant dense<0.000000e+00> : vector<64x16xf32>
    %293 = tpu.matmul %292, %174, %cst_106 {dimension_numbers = #tpu.dot_dimension_numbers<[1], [0], [0], [1], [0, 0, 1, 1], [], []>} : vector<64x64xf32>, vector<64x16xf32>, vector<64x16xf32> -> vector<64x16xf32>
    %c19 = arith.constant 19 : index
    %c0_107 = arith.constant 0 : index
    %294 = vector.load %arg3[%c19, %c0_107] : memref<27x256xf32, #tpu.memory_space<vmem>>, vector<1x16xf32>
    %295 = vector.broadcast %294 : vector<1x16xf32> to vector<64x16xf32>
    %296 = arith.addf %293, %295 : vector<64x16xf32>
    %297 = arith.addf %286, %296 : vector<64x16xf32>
    %c22 = arith.constant 22 : index
    %c0_108 = arith.constant 0 : index
    %298 = vector.load %arg3[%c22, %c0_108] : memref<27x256xf32, #tpu.memory_space<vmem>>, vector<1x16xf32>
    %c23 = arith.constant 23 : index
    %c0_109 = arith.constant 0 : index
    %299 = vector.load %arg3[%c23, %c0_109] : memref<27x256xf32, #tpu.memory_space<vmem>>, vector<1x16xf32>
    %cst_110 = arith.constant dense<0.000000e+00> : vector<64xf32>
    %300 = vector.multi_reduction <add>, %297, %cst_110 [1] : vector<64x16xf32> to vector<64xf32>
    %301 = vector.shape_cast %300 : vector<64xf32> to vector<64x1xf32>
    %cst_111 = arith.constant 1.600000e+01 : f32
    %302 = vector.broadcast %cst_111 : f32 to vector<64x1xf32>
    %303 = arith.divf %301, %302 : vector<64x1xf32>
    %304 = vector.broadcast %303 : vector<64x1xf32> to vector<64x16xf32>
    %305 = arith.subf %297, %304 : vector<64x16xf32>
    %306 = arith.mulf %305, %305 : vector<64x16xf32>
    %cst_112 = arith.constant dense<0.000000e+00> : vector<64xf32>
    %307 = vector.multi_reduction <add>, %306, %cst_112 [1] : vector<64x16xf32> to vector<64xf32>
    %308 = vector.shape_cast %307 : vector<64xf32> to vector<64x1xf32>
    %cst_113 = arith.constant 1.600000e+01 : f32
    %309 = vector.broadcast %cst_113 : f32 to vector<64x1xf32>
    %310 = arith.divf %308, %309 : vector<64x1xf32>
    %311 = vector.broadcast %303 : vector<64x1xf32> to vector<64x16xf32>
    %312 = arith.subf %297, %311 : vector<64x16xf32>
    %cst_114 = arith.constant 9.99999974E-6 : f32
    %313 = vector.broadcast %cst_114 : f32 to vector<64x1xf32>
    %314 = arith.addf %310, %313 : vector<64x1xf32>
    %315 = math.rsqrt %314 : vector<64x1xf32>
    %316 = vector.broadcast %315 : vector<64x1xf32> to vector<64x16xf32>
    %317 = arith.mulf %312, %316 : vector<64x16xf32>
    %318 = vector.broadcast %298 : vector<1x16xf32> to vector<64x16xf32>
    %319 = arith.mulf %317, %318 : vector<64x16xf32>
    %320 = vector.broadcast %299 : vector<1x16xf32> to vector<64x16xf32>
    %321 = arith.addf %319, %320 : vector<64x16xf32>
    %cst_115 = arith.constant 2.500000e-01 : f32
    %322 = vector.broadcast %cst_115 : f32 to vector<64x16xf32>
    %323 = arith.mulf %321, %322 : vector<64x16xf32>
    %324 = vector.extract_strided_slice %323 {offsets = [0, 0], sizes = [32, 16], strides = [1, 1]} : vector<64x16xf32> to vector<32x16xf32>
    %325 = vector.extract_strided_slice %15 {offsets = [0, 0], sizes = [32, 16], strides = [1, 1]} : vector<64x16xf32> to vector<32x16xf32>
    %cst_116 = arith.constant dense<0.000000e+00> : vector<32x32xf32>
    %326 = tpu.matmul %324, %325, %cst_116 {dimension_numbers = #tpu.dot_dimension_numbers<[1], [1], [0], [0], [0, 0, 1, 0], [], []>} : vector<32x16xf32>, vector<32x16xf32>, vector<32x32xf32> -> vector<32x32xf32>
    %327 = vector.extract_strided_slice %326 {offsets = [0, 0], sizes = [1, 32], strides = [1, 1]} : vector<32x32xf32> to vector<1x32xf32>
    %328 = vector.extract_strided_slice %326 {offsets = [1, 0], sizes = [1, 32], strides = [1, 1]} : vector<32x32xf32> to vector<1x32xf32>
    %329 = vector.extract_strided_slice %326 {offsets = [2, 0], sizes = [1, 32], strides = [1, 1]} : vector<32x32xf32> to vector<1x32xf32>
    %330 = vector.extract_strided_slice %326 {offsets = [3, 0], sizes = [1, 32], strides = [1, 1]} : vector<32x32xf32> to vector<1x32xf32>
    %331 = vector.extract_strided_slice %326 {offsets = [4, 0], sizes = [1, 32], strides = [1, 1]} : vector<32x32xf32> to vector<1x32xf32>
    %332 = vector.extract_strided_slice %326 {offsets = [5, 0], sizes = [1, 32], strides = [1, 1]} : vector<32x32xf32> to vector<1x32xf32>
    %333 = vector.extract_strided_slice %326 {offsets = [6, 0], sizes = [1, 32], strides = [1, 1]} : vector<32x32xf32> to vector<1x32xf32>
    %334 = vector.extract_strided_slice %326 {offsets = [7, 0], sizes = [1, 32], strides = [1, 1]} : vector<32x32xf32> to vector<1x32xf32>
    %335 = vector.extract_strided_slice %326 {offsets = [8, 0], sizes = [1, 32], strides = [1, 1]} : vector<32x32xf32> to vector<1x32xf32>
    %336 = vector.extract_strided_slice %326 {offsets = [9, 0], sizes = [1, 32], strides = [1, 1]} : vector<32x32xf32> to vector<1x32xf32>
    %337 = vector.extract_strided_slice %326 {offsets = [10, 0], sizes = [1, 32], strides = [1, 1]} : vector<32x32xf32> to vector<1x32xf32>
    %338 = vector.extract_strided_slice %326 {offsets = [11, 0], sizes = [1, 32], strides = [1, 1]} : vector<32x32xf32> to vector<1x32xf32>
    %339 = vector.extract_strided_slice %326 {offsets = [12, 0], sizes = [1, 32], strides = [1, 1]} : vector<32x32xf32> to vector<1x32xf32>
    %340 = vector.extract_strided_slice %326 {offsets = [13, 0], sizes = [1, 32], strides = [1, 1]} : vector<32x32xf32> to vector<1x32xf32>
    %341 = vector.extract_strided_slice %326 {offsets = [14, 0], sizes = [1, 32], strides = [1, 1]} : vector<32x32xf32> to vector<1x32xf32>
    %342 = vector.extract_strided_slice %326 {offsets = [15, 0], sizes = [1, 32], strides = [1, 1]} : vector<32x32xf32> to vector<1x32xf32>
    %343 = vector.extract_strided_slice %326 {offsets = [16, 0], sizes = [1, 32], strides = [1, 1]} : vector<32x32xf32> to vector<1x32xf32>
    %344 = vector.extract_strided_slice %326 {offsets = [17, 0], sizes = [1, 32], strides = [1, 1]} : vector<32x32xf32> to vector<1x32xf32>
    %345 = vector.extract_strided_slice %326 {offsets = [18, 0], sizes = [1, 32], strides = [1, 1]} : vector<32x32xf32> to vector<1x32xf32>
    %346 = vector.extract_strided_slice %326 {offsets = [19, 0], sizes = [1, 32], strides = [1, 1]} : vector<32x32xf32> to vector<1x32xf32>
    %347 = vector.extract_strided_slice %326 {offsets = [20, 0], sizes = [1, 32], strides = [1, 1]} : vector<32x32xf32> to vector<1x32xf32>
    %348 = vector.extract_strided_slice %326 {offsets = [21, 0], sizes = [1, 32], strides = [1, 1]} : vector<32x32xf32> to vector<1x32xf32>
    %349 = vector.extract_strided_slice %326 {offsets = [22, 0], sizes = [1, 32], strides = [1, 1]} : vector<32x32xf32> to vector<1x32xf32>
    %350 = vector.extract_strided_slice %326 {offsets = [23, 0], sizes = [1, 32], strides = [1, 1]} : vector<32x32xf32> to vector<1x32xf32>
    %351 = vector.extract_strided_slice %326 {offsets = [24, 0], sizes = [1, 32], strides = [1, 1]} : vector<32x32xf32> to vector<1x32xf32>
    %352 = vector.extract_strided_slice %326 {offsets = [25, 0], sizes = [1, 32], strides = [1, 1]} : vector<32x32xf32> to vector<1x32xf32>
    %353 = vector.extract_strided_slice %326 {offsets = [26, 0], sizes = [1, 32], strides = [1, 1]} : vector<32x32xf32> to vector<1x32xf32>
    %354 = vector.extract_strided_slice %326 {offsets = [27, 0], sizes = [1, 32], strides = [1, 1]} : vector<32x32xf32> to vector<1x32xf32>
    %355 = vector.extract_strided_slice %326 {offsets = [28, 0], sizes = [1, 32], strides = [1, 1]} : vector<32x32xf32> to vector<1x32xf32>
    %356 = vector.extract_strided_slice %326 {offsets = [29, 0], sizes = [1, 32], strides = [1, 1]} : vector<32x32xf32> to vector<1x32xf32>
    %357 = vector.extract_strided_slice %326 {offsets = [30, 0], sizes = [1, 32], strides = [1, 1]} : vector<32x32xf32> to vector<1x32xf32>
    %358 = vector.extract_strided_slice %326 {offsets = [31, 0], sizes = [1, 32], strides = [1, 1]} : vector<32x32xf32> to vector<1x32xf32>
    %359 = tpu.concatenate %327, %328, %329, %330, %331, %332, %333, %334, %335, %336, %337, %338, %339, %340, %341, %342 in 1 : vector<1x32xf32>, vector<1x32xf32>, vector<1x32xf32>, vector<1x32xf32>, vector<1x32xf32>, vector<1x32xf32>, vector<1x32xf32>, vector<1x32xf32>, vector<1x32xf32>, vector<1x32xf32>, vector<1x32xf32>, vector<1x32xf32>, vector<1x32xf32>, vector<1x32xf32>, vector<1x32xf32>, vector<1x32xf32> -> vector<1x512xf32>
    %360 = tpu.concatenate %343, %344, %345, %346, %347, %348, %349, %350, %351, %352, %353, %354, %355, %356, %357, %358 in 1 : vector<1x32xf32>, vector<1x32xf32>, vector<1x32xf32>, vector<1x32xf32>, vector<1x32xf32>, vector<1x32xf32>, vector<1x32xf32>, vector<1x32xf32>, vector<1x32xf32>, vector<1x32xf32>, vector<1x32xf32>, vector<1x32xf32>, vector<1x32xf32>, vector<1x32xf32>, vector<1x32xf32>, vector<1x32xf32> -> vector<1x512xf32>
    %361 = tpu.concatenate %359, %360 in 1 : vector<1x512xf32>, vector<1x512xf32> -> vector<1x1024xf32>
    %362 = vector.extract_strided_slice %323 {offsets = [32, 0], sizes = [32, 16], strides = [1, 1]} : vector<64x16xf32> to vector<32x16xf32>
    %363 = vector.extract_strided_slice %15 {offsets = [32, 0], sizes = [32, 16], strides = [1, 1]} : vector<64x16xf32> to vector<32x16xf32>
    %cst_117 = arith.constant dense<0.000000e+00> : vector<32x32xf32>
    %364 = tpu.matmul %362, %363, %cst_117 {dimension_numbers = #tpu.dot_dimension_numbers<[1], [1], [0], [0], [0, 0, 1, 0], [], []>} : vector<32x16xf32>, vector<32x16xf32>, vector<32x32xf32> -> vector<32x32xf32>
    %365 = vector.extract_strided_slice %364 {offsets = [0, 0], sizes = [1, 32], strides = [1, 1]} : vector<32x32xf32> to vector<1x32xf32>
    %366 = vector.extract_strided_slice %364 {offsets = [1, 0], sizes = [1, 32], strides = [1, 1]} : vector<32x32xf32> to vector<1x32xf32>
    %367 = vector.extract_strided_slice %364 {offsets = [2, 0], sizes = [1, 32], strides = [1, 1]} : vector<32x32xf32> to vector<1x32xf32>
    %368 = vector.extract_strided_slice %364 {offsets = [3, 0], sizes = [1, 32], strides = [1, 1]} : vector<32x32xf32> to vector<1x32xf32>
    %369 = vector.extract_strided_slice %364 {offsets = [4, 0], sizes = [1, 32], strides = [1, 1]} : vector<32x32xf32> to vector<1x32xf32>
    %370 = vector.extract_strided_slice %364 {offsets = [5, 0], sizes = [1, 32], strides = [1, 1]} : vector<32x32xf32> to vector<1x32xf32>
    %371 = vector.extract_strided_slice %364 {offsets = [6, 0], sizes = [1, 32], strides = [1, 1]} : vector<32x32xf32> to vector<1x32xf32>
    %372 = vector.extract_strided_slice %364 {offsets = [7, 0], sizes = [1, 32], strides = [1, 1]} : vector<32x32xf32> to vector<1x32xf32>
    %373 = vector.extract_strided_slice %364 {offsets = [8, 0], sizes = [1, 32], strides = [1, 1]} : vector<32x32xf32> to vector<1x32xf32>
    %374 = vector.extract_strided_slice %364 {offsets = [9, 0], sizes = [1, 32], strides = [1, 1]} : vector<32x32xf32> to vector<1x32xf32>
    %375 = vector.extract_strided_slice %364 {offsets = [10, 0], sizes = [1, 32], strides = [1, 1]} : vector<32x32xf32> to vector<1x32xf32>
    %376 = vector.extract_strided_slice %364 {offsets = [11, 0], sizes = [1, 32], strides = [1, 1]} : vector<32x32xf32> to vector<1x32xf32>
    %377 = vector.extract_strided_slice %364 {offsets = [12, 0], sizes = [1, 32], strides = [1, 1]} : vector<32x32xf32> to vector<1x32xf32>
    %378 = vector.extract_strided_slice %364 {offsets = [13, 0], sizes = [1, 32], strides = [1, 1]} : vector<32x32xf32> to vector<1x32xf32>
    %379 = vector.extract_strided_slice %364 {offsets = [14, 0], sizes = [1, 32], strides = [1, 1]} : vector<32x32xf32> to vector<1x32xf32>
    %380 = vector.extract_strided_slice %364 {offsets = [15, 0], sizes = [1, 32], strides = [1, 1]} : vector<32x32xf32> to vector<1x32xf32>
    %381 = vector.extract_strided_slice %364 {offsets = [16, 0], sizes = [1, 32], strides = [1, 1]} : vector<32x32xf32> to vector<1x32xf32>
    %382 = vector.extract_strided_slice %364 {offsets = [17, 0], sizes = [1, 32], strides = [1, 1]} : vector<32x32xf32> to vector<1x32xf32>
    %383 = vector.extract_strided_slice %364 {offsets = [18, 0], sizes = [1, 32], strides = [1, 1]} : vector<32x32xf32> to vector<1x32xf32>
    %384 = vector.extract_strided_slice %364 {offsets = [19, 0], sizes = [1, 32], strides = [1, 1]} : vector<32x32xf32> to vector<1x32xf32>
    %385 = vector.extract_strided_slice %364 {offsets = [20, 0], sizes = [1, 32], strides = [1, 1]} : vector<32x32xf32> to vector<1x32xf32>
    %386 = vector.extract_strided_slice %364 {offsets = [21, 0], sizes = [1, 32], strides = [1, 1]} : vector<32x32xf32> to vector<1x32xf32>
    %387 = vector.extract_strided_slice %364 {offsets = [22, 0], sizes = [1, 32], strides = [1, 1]} : vector<32x32xf32> to vector<1x32xf32>
    %388 = vector.extract_strided_slice %364 {offsets = [23, 0], sizes = [1, 32], strides = [1, 1]} : vector<32x32xf32> to vector<1x32xf32>
    %389 = vector.extract_strided_slice %364 {offsets = [24, 0], sizes = [1, 32], strides = [1, 1]} : vector<32x32xf32> to vector<1x32xf32>
    %390 = vector.extract_strided_slice %364 {offsets = [25, 0], sizes = [1, 32], strides = [1, 1]} : vector<32x32xf32> to vector<1x32xf32>
    %391 = vector.extract_strided_slice %364 {offsets = [26, 0], sizes = [1, 32], strides = [1, 1]} : vector<32x32xf32> to vector<1x32xf32>
    %392 = vector.extract_strided_slice %364 {offsets = [27, 0], sizes = [1, 32], strides = [1, 1]} : vector<32x32xf32> to vector<1x32xf32>
    %393 = vector.extract_strided_slice %364 {offsets = [28, 0], sizes = [1, 32], strides = [1, 1]} : vector<32x32xf32> to vector<1x32xf32>
    %394 = vector.extract_strided_slice %364 {offsets = [29, 0], sizes = [1, 32], strides = [1, 1]} : vector<32x32xf32> to vector<1x32xf32>
    %395 = vector.extract_strided_slice %364 {offsets = [30, 0], sizes = [1, 32], strides = [1, 1]} : vector<32x32xf32> to vector<1x32xf32>
    %396 = vector.extract_strided_slice %364 {offsets = [31, 0], sizes = [1, 32], strides = [1, 1]} : vector<32x32xf32> to vector<1x32xf32>
    %397 = tpu.concatenate %365, %366, %367, %368, %369, %370, %371, %372, %373, %374, %375, %376, %377, %378, %379, %380 in 1 : vector<1x32xf32>, vector<1x32xf32>, vector<1x32xf32>, vector<1x32xf32>, vector<1x32xf32>, vector<1x32xf32>, vector<1x32xf32>, vector<1x32xf32>, vector<1x32xf32>, vector<1x32xf32>, vector<1x32xf32>, vector<1x32xf32>, vector<1x32xf32>, vector<1x32xf32>, vector<1x32xf32>, vector<1x32xf32> -> vector<1x512xf32>
    %398 = tpu.concatenate %381, %382, %383, %384, %385, %386, %387, %388, %389, %390, %391, %392, %393, %394, %395, %396 in 1 : vector<1x32xf32>, vector<1x32xf32>, vector<1x32xf32>, vector<1x32xf32>, vector<1x32xf32>, vector<1x32xf32>, vector<1x32xf32>, vector<1x32xf32>, vector<1x32xf32>, vector<1x32xf32>, vector<1x32xf32>, vector<1x32xf32>, vector<1x32xf32>, vector<1x32xf32>, vector<1x32xf32>, vector<1x32xf32> -> vector<1x512xf32>
    %399 = tpu.concatenate %397, %398 in 1 : vector<1x512xf32>, vector<1x512xf32> -> vector<1x1024xf32>
    %400 = tpu.concatenate %361, %399 in 0 : vector<1x1024xf32>, vector<1x1024xf32> -> vector<2x1024xf32>
    %c0_118 = arith.constant 0 : index
    %c0_119 = arith.constant 0 : index
    %401 = vector.load %arg4[%c0_118, %c0_119] : memref<1024x256xf32, #tpu.memory_space<vmem>>, vector<1024x256xf32>
    %cst_120 = arith.constant dense<0.000000e+00> : vector<2x256xf32>
    %402 = tpu.matmul %400, %401, %cst_120 {dimension_numbers = #tpu.dot_dimension_numbers<[1], [0], [0], [1], [0, 0, 1, 1], [], []>} : vector<2x1024xf32>, vector<1024x256xf32>, vector<2x256xf32> -> vector<2x256xf32>
    %c24 = arith.constant 24 : index
    %c0_121 = arith.constant 0 : index
    %403 = vector.load %arg3[%c24, %c0_121] : memref<27x256xf32, #tpu.memory_space<vmem>>, vector<1x256xf32>
    %404 = vector.broadcast %403 : vector<1x256xf32> to vector<2x256xf32>
    %405 = arith.addf %402, %404 : vector<2x256xf32>
    %cst_122 = arith.constant 0.000000e+00 : f32
    %406 = vector.broadcast %cst_122 : f32 to vector<2x256xf32>
    %407 = arith.maximumf %405, %406 : vector<2x256xf32>
    %c0_123 = arith.constant 0 : index
    %c0_124 = arith.constant 0 : index
    %408 = vector.load %arg5[%c0_123, %c0_124] : memref<256x40xf32, #tpu.memory_space<vmem>>, vector<256x40xf32>
    %cst_125 = arith.constant dense<0.000000e+00> : vector<2x40xf32>
    %409 = tpu.matmul %407, %408, %cst_125 {dimension_numbers = #tpu.dot_dimension_numbers<[1], [0], [0], [1], [0, 0, 1, 1], [], []>} : vector<2x256xf32>, vector<256x40xf32>, vector<2x40xf32> -> vector<2x40xf32>
    %c25 = arith.constant 25 : index
    %c0_126 = arith.constant 0 : index
    %410 = vector.load %arg3[%c25, %c0_126] : memref<27x256xf32, #tpu.memory_space<vmem>>, vector<1x40xf32>
    %411 = vector.broadcast %410 : vector<1x40xf32> to vector<2x40xf32>
    %412 = arith.addf %409, %411 : vector<2x40xf32>
    %cst_127 = arith.constant 0.000000e+00 : f32
    %413 = vector.broadcast %cst_127 : f32 to vector<2x40xf32>
    %414 = arith.maximumf %412, %413 : vector<2x40xf32>
    %c0_128 = arith.constant 0 : index
    %c0_129 = arith.constant 0 : index
    %415 = vector.load %arg6[%c0_128, %c0_129] : memref<40x5xf32, #tpu.memory_space<vmem>>, vector<40x5xf32>
    %cst_130 = arith.constant dense<0.000000e+00> : vector<2x5xf32>
    %416 = tpu.matmul %414, %415, %cst_130 {dimension_numbers = #tpu.dot_dimension_numbers<[1], [0], [0], [1], [0, 0, 1, 1], [], []>} : vector<2x40xf32>, vector<40x5xf32>, vector<2x5xf32> -> vector<2x5xf32>
    %c26 = arith.constant 26 : index
    %c0_131 = arith.constant 0 : index
    %417 = vector.load %arg3[%c26, %c0_131] : memref<27x256xf32, #tpu.memory_space<vmem>>, vector<1x5xf32>
    %418 = vector.broadcast %417 : vector<1x5xf32> to vector<2x5xf32>
    %419 = arith.addf %416, %418 : vector<2x5xf32>
    %c0_132 = arith.constant 0 : index
    %c0_133 = arith.constant 0 : index
    %420 = vector.load %arg7[%c0_132, %c0_133] : memref<2x5xf32, #tpu.memory_space<vmem>>, vector<2x5xf32>
    tpu.vector_store %arg7[%c0_132, %c0_133], %419 {strides = array<i32>} : memref<2x5xf32, #tpu.memory_space<vmem>>, vector<2x5xf32>,
    return
  }
}

</mosaic_0001>

<bundles_post_ra>
// kernel: model_forward.1
= control target key start
LH: loop header
LB: loop body
LE: loop exit
PB: predicated region body
PF: predicated region fallthrough
CT: control target
= control target key end

     0   :  { %12 = vsyncpa [#allocation3], 0  ;;  %s8852_s0 = inlined_call_operand.vmem [shape: f32[64,1], index: 0, kind: input, shape index: {}]   ;;  %s8853_s1 = inlined_call_operand.vmem [shape: f32[64,1], index: 1, kind: input, shape index: {}]   ;;  %s8854_s2 = inlined_call_operand.vmem [shape: f32[288,64], index: 2, kind: input, shape index: {}]   ;;  %s8855_s3 = inlined_call_operand.vmem [shape: f32[27,256], index: 3, kind: input, shape index: {}]   ;;  %s8856_s4 = inlined_call_operand.hbm [shape: f32[1024,256], index: 4, kind: input, shape index: {}]   ;;  %s8857_s5 = inlined_call_operand.vmem [shape: f32[256,40], index: 5, kind: input, shape index: {}]   ;;  %s8858_s6 = inlined_call_operand.vmem [shape: f32[40,5], index: 6, kind: input, shape index: {}]   ;;  %s8859_s7 = inlined_call_operand.hbm [shape: f32[2,5], index: 7, kind: output, shape index: {}]  }
   0x1   :  { %13 = vsyncpa [#allocation4], 0  ;;  %s7064_s24 = smov [#allocation2]  }
   0x2   :  { %s27_s25 = sshll.u32 %s7064_s24, 4  ;;  %s28_s25 = int_to_ptr.vmem [resolvable:$true] %s27_s25 }
   0x3   :  { %s7028_s26 = scalar_lea.vmem %s28_s25, 32768  ;;  %p7033_p1 = scmp.lt.s32.totalorder %s28_s25, %s28_s25 }
   0x4   :  { %p7029_p0 = scmp.ne.s32.totalorder %s28_s25, %s7028_s26  ;;  %p7034_p2 = scmp.lt.s32.totalorder %s7028_s26, %s7028_s26 }
   0x6   :  { %p7035_p3 = por %p7034_p2, %p7033_p1 }
   0x8   :  { %p7036_p4 = pnand %p7035_p3, %p7029_p0 }
   0xa   :  { %7039 = shalt.err (!%p7036_p4)
}
   0xb   :  { %s7065_s27 = smov 256   ;;  %s7066_s28 = smov 16  }
   0xc   :  { %33 = dma.hbm_to_vmem [thread:$0]  %s8856_s4, 32768, %s28_s25, [#allocation3], %s7065_s27, %s7065_s27, %s7066_s28  }
   0xd   :  { %7060 = dma.done.wait [#allocation3], 32768  }
   0xe   :  { %7061 = vsyncadd [#allocation3], 4294934528  ;;  %v7067_v0 = vmov 0   ;;  %v109_v1 = vld [vmem:[%s8853_s1 + $0x10] sm:$0xff]  ;;  %v107_v2 = vld [vmem:[%s8853_s1] sm:$0xff]  ;;  %vm192_vm0 = vcmask 130048  }
   0xf   :  { %6707 = vset.pattern.permute.xlu1 %v7067_v0  ;;  %6706 = vset.pattern.permute.xlu0 %v7067_v0  ;;  %v110_v3 = vld [vmem:[%s8853_s1 + $0x18] sm:$0xff]  ;;  %v108_v4 = vld [vmem:[%s8853_s1 + $0x8] sm:$0xff]  ;;  %v41_v6 = vld [vmem:[%s8852_s0] sm:$0xff]  ;;  %vm562_vm1 = vcmask 64512   ;;  %s7068_s4 = smov 120   ;;  %vm672_vm2 = vcmask 261120  }
  0x10   :  { %128 = vperm.xlu1 %6707, %v109_v1   ;;  %118 = vperm.xlu0 %6706, %v107_v2   ;;  %v42_v5 = vld [vmem:[%s8852_s0 + $0x8] sm:$0xff]  ;;  %v176_v7 = vld [vmem:[%s8854_s2 + $0x18] sm:$0xff]  ;;  %v175_v8 = vld [vmem:[%s8854_s2 + $0x10] sm:$0xff]  ;;  %s7069_s16 = smov 8   ;;  %vm2056_vm3 = vcmask 523264   ;;  %s7070_s10 = smov 32  }
  0x11   :  { %6229 = vmatprep.subr.mxu1 %v176_v7  ;;  %v174_v9 = vld [vmem:[%s8854_s2 + $0x8] sm:$0xff]  ;;  %v173_v10 = vld [vmem:[%s8854_s2] sm:$0xff]  ;;  %v44_v11 = vld [vmem:[%s8852_s0 + $0x18] sm:$0xff]  ;;  %s7071_s11 = smov 64   ;;  %s7072_s12 = smov 96   ;;  %vm4591_vm4 = vcmask 785408  }
  0x12   :  { %6230 = vmatpush3.msra.mxu1 %v176_v7  ;;  %6213 = vmatprep.subr.mxu0 %v174_v9  ;;  %v43_v12 = vld [vmem:[%s8852_s0 + $0x10] sm:$0xff]  ;;  %v112_v13 = vld [vmem:[%s8853_s1 + $0x28] sm:$0xff]  ;;  %v111_v14 = vld [vmem:[%s8853_s1 + $0x20] sm:$0xff]  ;;  %vm4921_vm5 = vcmask 1040384   ;;  %vm7074_vm6 = vmmov 0   ;;  %vm5595_vm7 = vcmask 326656  }
  0x13   :  { %6231 = vmatprep.subr.mxu1 %v175_v8  ;;  %6214 = vmatpush3.msra.mxu0 %v174_v9  ;;  %v114_v15 = vld [vmem:[%s8853_s1 + $0x38] sm:$0xff]  ;;  %v113_v16 = vld [vmem:[%s8853_s1 + $0x30] sm:$0xff]  ;;  %v46_v17 = vld [vmem:[%s8852_s0 + $0x28] sm:$0xff]  ;;  %vm5669_vm8 = vcmask 33792  }
  0x14   :  { %133 = vperm.xlu1 %6707, %v110_v3   ;;  %123 = vperm.xlu0 %6706, %v108_v4   ;;  %v45_v18 = vld [vmem:[%s8852_s0 + $0x20] sm:$0xff]  ;;  %v48_v19 = vld [vmem:[%s8852_s0 + $0x38] sm:$0xff]  ;;  %v47_v20 = vld [vmem:[%s8852_s0 + $0x30] sm:$0xff] }
  0x15   :  { %6232 = vmatpush3.msra.mxu1 %v175_v8  ;;  %6215 = vmatprep.subr.mxu0 %v173_v10  ;;  %v178_v21 = vld [vmem:[%s8854_s2 + $0x28] sm:$0xff]  ;;  %v115_v22 = vld [vmem:[%s8855_s3 + $0x2] ss:$0 sm:$0xff]  ;;  %v164_v23 = vld [vmem:[%s8855_s3 + $0x3] ss:$0 sm:$0xff] }
  0x16   :  { %6216 = vmatpush3.msra.mxu0 %v173_v10  ;;  %v49_v33 = vld [vmem:[%s8855_s3] ss:$0 sm:$0xff]  ;;  %v98_v36 = vld [vmem:[%s8855_s3 + $0x1] ss:$0 sm:$0xff] }
  0x17   :  { %6245 = vmatprep.subr.mxu0 %v178_v21  ;;  %v177_v48 = vld [vmem:[%s8854_s2 + $0x20] sm:$0xff] }
  0x18   :  { %57 = vperm.xlu1 %6707, %v42_v5   ;;  %52 = vperm.xlu0 %6706, %v41_v6  }
  0x1c   :  { %67 = vperm.xlu1 %6707, %v44_v11   ;;  %62 = vperm.xlu0 %6706, %v43_v12  }
  0x20   :  { %143 = vperm.xlu1 %6707, %v112_v13   ;;  %138 = vperm.xlu0 %6706, %v111_v14   ;;  %v7280_v13 = vld [vmem:[%s8855_s3 + $0x5] ss:$0 sm:$0xff] }
  0x24   :  { %153 = vperm.xlu1 %6707, %v114_v15   ;;  %148 = vperm.xlu0 %6706, %v113_v16  }
  0x28   :  { %77 = vperm.xlu1 %6707, %v46_v17   ;;  %72 = vperm.xlu0 %6706, %v45_v18   ;;  %v191_v18 = vld [vmem:[%s8855_s3 + $0x4] ss:$0 sm:$0xff] }
  0x2c   :  { %87 = vperm.xlu1 %6707, %v48_v19   ;;  %82 = vperm.xlu0 %6706, %v47_v20  }
  0x8b   :  { %v129_v24 = vpop.permute.xlu1 %128  ;;  %v119_v25 = vpop.permute.xlu0 %118 }
  0x8c   :  { %v156_v26 = vmul.f32 %v119_v25, %v115_v22  ;;  %v158_v27 = vmul.f32 %v129_v24, %v115_v22 }
  0x8e   :  { %v7188_v28 = vadd.f32 %v164_v23, %v156_v26  ;;  %v7192_v32 = vadd.f32 %v164_v23, %v158_v27 }
  0x8f   :  { %v134_v29 = vpop.permute.xlu1 %133  ;;  %v124_v30 = vpop.permute.xlu0 %123 }
  0x90   :  { %v157_v31 = vmul.f32 %v124_v30, %v115_v22  ;;  %6233 = vmatprep.mubr.msk.f32.mxu1 %vm192_vm0, %v7188_v28  ;;  %v159_v34 = vmul.f32 %v134_v29, %v115_v22 }
  0x92   :  { %v7197_v35 = vadd.f32 %v164_v23, %v157_v31  ;;  %v7206_v41 = vadd.f32 %v164_v23, %v159_v34 }
  0x93   :  { %v58_v37 = vpop.permute.xlu1 %57  ;;  %v53_v38 = vpop.permute.xlu0 %52 }
  0x94   :  { %v91_v39 = vmul.f32 %v58_v37, %v49_v33  ;;  %v90_v40 = vmul.f32 %v53_v38, %v49_v33  ;;  %6234 = vmatmul.mubr.msk.f32.vlgmr.msra.gmra.mxu1 %vm192_vm0, %v7197_v35 }
  0x95   :  { %6236 = vmatprep.mubr.msk.f32.mxu1 %vm192_vm0, %v7192_v32 }
  0x96   :  { %v7208_v42 = vadd.f32 %v98_v36, %v91_v39  ;;  %v7210_v43 = vadd.f32 %v98_v36, %v90_v40 }
  0x97   :  { %v68_v44 = vpop.permute.xlu1 %67  ;;  %v63_v45 = vpop.permute.xlu0 %62 }
  0x98   :  { %v93_v46 = vmul.f32 %v68_v44, %v49_v33  ;;  %v92_v47 = vmul.f32 %v63_v45, %v49_v33  ;;  %6217 = vmatprep.mubr.msk.f32.mxu0 %vm192_vm0, %v7210_v43  ;;  %6237 = vmatmul.mubr.msk.f32.gmra.mxu1 %vm192_vm0, %v7206_v41 }
  0x99   :  { %6218 = vmatmul.mubr.msk.f32.vlgmr.msra.gmra.mxu0 %vm192_vm0, %v7208_v42 }
  0x9a   :  { %v7221_v49 = vadd.f32 %v98_v36, %v93_v46  ;;  %v7223_v50 = vadd.f32 %v98_v36, %v92_v47  ;;  %6246 = vmatpush3.msra.mxu0 %v178_v21 }
  0x9b   :  { %v144_v51 = vpop.permute.xlu1 %143  ;;  %v139_v52 = vpop.permute.xlu0 %138  ;;  %6247 = vmatprep.subr.mxu0 %v177_v48 }
  0x9c   :  { %v161_v53 = vmul.f32 %v144_v51, %v115_v22  ;;  %v160_v54 = vmul.f32 %v139_v52, %v115_v22  ;;  %6220 = vmatprep.mubr.msk.f32.mxu0 %vm192_vm0, %v7223_v50  ;;  %6248 = vmatpush3.msra.mxu0 %v177_v48  ;;  %v7316_v51 = vld [vmem:[%s8855_s3 + $0x6] ss:$0 sm:$0xff] }
  0x9d   :  { %6221 = vmatmul.mubr.msk.f32.gmra.mxu0 %vm192_vm0, %v7221_v49 }
  0x9e   :  { %v7229_v55 = vadd.f32 %v164_v23, %v161_v53  ;;  %v7231_v56 = vadd.f32 %v164_v23, %v160_v54 }
  0x9f   :  { %v154_v57 = vpop.permute.xlu1 %153  ;;  %v149_v58 = vpop.permute.xlu0 %148 }
  0xa0   :  { %v163_v59 = vmul.f32 %v154_v57, %v115_v22  ;;  %v162_v60 = vmul.f32 %v149_v58, %v115_v22  ;;  %6239 = vmatprep.mubr.msk.f32.mxu1 %vm192_vm0, %v7231_v56 }
  0xa1   :  { %6240 = vmatmul.mubr.msk.f32.gmra.mxu1 %vm192_vm0, %v7229_v55 }
  0xa2   :  { %v7237_v61 = vadd.f32 %v164_v23, %v163_v59  ;;  %v7239_v62 = vadd.f32 %v164_v23, %v162_v60 }
  0xa3   :  { %v78_v63 = vpop.permute.xlu1 %77  ;;  %v73_v0 = vpop.permute.xlu0 %72 }
  0xa4   :  { %v95_v1 = vmul.f32 %v78_v63, %v49_v33  ;;  %v94_v2 = vmul.f32 %v73_v0, %v49_v33  ;;  %6242 = vmatprep.mubr.msk.f32.mxu1 %vm192_vm0, %v7239_v62 }
  0xa5   :  { %6243 = vmatmul.mubr.msk.f32.gmra.mxu1 %vm192_vm0, %v7237_v61 }
  0xa6   :  { %v7245_v3 = vadd.f32 %v98_v36, %v95_v1  ;;  %v7247_v4 = vadd.f32 %v98_v36, %v94_v2 }
  0xa7   :  { %v88_v5 = vpop.permute.xlu1 %87  ;;  %v83_v6 = vpop.permute.xlu0 %82 }
  0xa8   :  { %v97_v7 = vmul.f32 %v88_v5, %v49_v33  ;;  %v96_v8 = vmul.f32 %v83_v6, %v49_v33  ;;  %6223 = vmatprep.mubr.msk.f32.mxu0 %vm192_vm0, %v7247_v4 }
  0xa9   :  { %6224 = vmatmul.mubr.msk.f32.gmra.mxu0 %vm192_vm0, %v7245_v3 }
  0xaa   :  { %v7253_v9 = vadd.f32 %v98_v36, %v97_v7  ;;  %v7255_v10 = vadd.f32 %v98_v36, %v96_v8 }
  0xac   :  { %6226 = vmatprep.mubr.msk.f32.mxu0 %vm192_vm0, %v7255_v10 }
  0xad   :  { %6227 = vmatmul.mubr.msk.f32.gmra.mxu0 %vm192_vm0, %v7253_v9 }
  0xae   :  { %6249 = vmatprep.mubr.msk.f32.mxu0 %vm192_vm0, %v7188_v28 }
  0xb1   :  { %6250 = vmatmul.mubr.msk.f32.vlgmr.msra.gmra.mxu0 %vm192_vm0, %v7197_v35 }
  0xb2   :  { %6252 = vmatprep.mubr.msk.f32.mxu0 %vm192_vm0, %v7192_v32 }
  0xb5   :  { %6253 = vmatmul.mubr.msk.f32.gmra.mxu0 %vm192_vm0, %v7206_v41 }
  0xb6   :  { %6255 = vmatprep.mubr.msk.f32.mxu0 %vm192_vm0, %v7231_v56 }
  0xb9   :  { %6256 = vmatmul.mubr.msk.f32.gmra.mxu0 %vm192_vm0, %v7229_v55 }
  0xba   :  { %6258 = vmatprep.mubr.msk.f32.mxu0 %vm192_vm0, %v7239_v62 }
  0xbd   :  { %6259 = vmatmul.mubr.msk.f32.gmra.mxu0 %vm192_vm0, %v7237_v61 }
 0x154   :  { %v6235_v11 = vpop.f32.mrf.mxu1 }
 0x155   :  { %v419_v22 = vadd.f32 %v6235_v11, %v7280_v13 }
 0x156   :  { %v413_v12 = vpop.f32.mrf.mxu1 }
 0x157   :  { %v414_v25 = vadd.f32 %v413_v12, %v7280_v13 }
 0x158   :  { %v6238_v14 = vpop.f32.mrf.mxu1 }
 0x159   :  { %v429_v15 = vadd.f32 %v6238_v14, %v7280_v13  ;;  %v6219_v16 = vpop.f32.mrf.mxu0 }
 0x15a   :  { %v423_v17 = vpop.f32.mrf.mxu1  ;;  %v289_v26 = vadd.f32 %v6219_v16, %v191_v18 }
 0x15b   :  { %v424_v19 = vadd.f32 %v423_v17, %v7280_v13  ;;  %6261 = vmatprep.subr.msk.mxu1 %vm562_vm1, %v429_v15  ;;  %828 = vrot.lane.b32.xlu0 %v429_v15, %s7068_s4  ;;  %v283_v20 = vpop.f32.mrf.mxu0 }
 0x15c   :  { %v284_v21 = vadd.f32 %v283_v20, %v191_v18  ;;  %6262 = vmatpush3.xpose.msk.msra.mxu1 %vm562_vm1, %v429_v15  ;;  %v559_v30 = vmul.f32 0.35355338, %v289_v26 }
 0x15d   :  { %6263 = vmatprep.subr.msk.mxu1 %vm562_vm1, %v424_v19  ;;  %826 = vrot.lane.b32.xlu1 %v424_v19, %s7068_s4  ;;  %v6222_v23 = vpop.f32.mrf.mxu0 }
 0x15e   :  { %v558_v24 = vmul.f32 0.35355338, %v284_v21  ;;  %v299_v31 = vadd.f32 %v6222_v23, %v191_v18 }
 0x15f   :  { %824 = vrot.lane.b32.xlu0 %v419_v22, %s7068_s4  ;;  %v293_v27 = vpop.f32.mrf.mxu0 }
 0x160   :  { %6264 = vmatpush3.xpose.msk.msra.mxu1 %vm562_vm1, %v424_v19  ;;  %6269 = vmatprep.mubr.msk.f32.mxu1 %vm562_vm1, %v558_v24  ;;  %v294_v29 = vadd.f32 %v293_v27, %v191_v18  ;;  %v561_v34 = vmul.f32 0.35355338, %v299_v31 }
 0x161   :  { %6265 = vmatprep.subr.msk.mxu1 %vm562_vm1, %v419_v22  ;;  %822 = vrot.lane.b32.xlu1 %v414_v25, %s7068_s4  ;;  %v6241_v7 = vpop.f32.mrf.mxu1 }
 0x162   :  { %v560_v33 = vmul.f32 0.35355338, %v294_v29 }
 0x163   :  { %814 = vrot.lane.b32.xlu0 %v558_v24, %s7068_s4  ;;  %v433_v12 = vpop.f32.mrf.mxu1  ;;  %v7373_v24 = vadd.f32 %v6241_v7, %v7280_v13 }
 0x164   :  { %6266 = vmatpush3.xpose.msk.msra.mxu1 %vm562_vm1, %v419_v22 }
 0x165   :  { %6267 = vmatprep.subr.msk.mxu1 %vm562_vm1, %v414_v25  ;;  %816 = vrot.lane.b32.xlu1 %v559_v30, %s7068_s4  ;;  %v6244_v16 = vpop.f32.mrf.mxu1 }
 0x166   :  { %v7356_v17 = vadd.f32 %v6244_v16, %v7280_v13 }
 0x167   :  { %818 = vrot.lane.b32.xlu0 %v560_v33, %s7068_s4 }
 0x168   :  { %6268 = vmatpush3.xpose.msk.msra.mxu1 %vm562_vm1, %v414_v25  ;;  %v7383_v25 = vadd.f32 %v433_v12, %v7280_v13 }
 0x169   :  { %820 = vrot.lane.b32.xlu1 %v561_v34, %s7068_s4  ;;  %v6225_v36 = vpop.f32.mrf.mxu0 }
 0x16a   :  { %v7306_v37 = vadd.f32 %v6225_v36, %v191_v18 }
 0x16b   :  { %v303_v38 = vpop.f32.mrf.mxu0  ;;  %6270 = vmatmul.mubr.msk.f32.vlgmr.msra.gmra.mxu1 %vm562_vm1, %v559_v30 }
 0x16c   :  { %v304_v39 = vadd.f32 %v303_v38, %v191_v18  ;;  %6272 = vmatprep.mubr.msk.f32.mxu1 %vm562_vm1, %v560_v33  ;;  %v7392_v26 = vmul.f32 0.35355338, %v7306_v37 }
 0x16d   :  { %v6228_v40 = vpop.f32.mrf.mxu0 }
 0x16e   :  { %v7310_v44 = vadd.f32 %v6228_v40, %v191_v18  ;;  %v7370_v22 = vmul.f32 0.35355338, %v304_v39 }
 0x16f   :  { %v313_v45 = vpop.f32.mrf.mxu0  ;;  %6273 = vmatmul.mubr.msk.f32.gmra.mxu1 %vm562_vm1, %v561_v34 }
 0x170   :  { %v314_v46 = vadd.f32 %v313_v45, %v191_v18  ;;  %v443_v18 = vpop.f32.mrf.mxu1 }
 0x171   :  { %v6251_v47 = vpop.f32.mrf.mxu0  ;;  %v7362_v20 = vadd.f32 %v443_v18, %v7280_v13  ;;  %v7401_v13 = vmul.f32 0.35355338, %v7310_v44 }
 0x172   :  { %v7327_v59 = vadd.f32 %v6251_v47, %v7316_v51  ;;  %v7394_v27 = vmul.f32 0.35355338, %v314_v46 }
 0x173   :  { %v519_v48 = vpop.f32.mrf.mxu0 }
 0x174   :  { %v7335_v0 = vadd.f32 %v519_v48, %v7316_v51 }
 0x175   :  { %v6254_v52 = vpop.f32.mrf.mxu0 }
 0x176   :  { %v7319_v53 = vadd.f32 %v6254_v52, %v7316_v51 }
 0x177   :  { %v529_v54 = vpop.f32.mrf.mxu0 }
 0x178   :  { %v7322_v57 = vadd.f32 %v529_v54, %v7316_v51  ;;  %6275 = vmatprep.subr.mxu1 %v7319_v53 }
 0x179   :  { %v6257_v58 = vpop.f32.mrf.mxu0  ;;  %6276 = vmatpush3.msra.mxu1 %v7319_v53 }
 0x17a   :  { %v7330_v60 = vadd.f32 %v6257_v58, %v7316_v51  ;;  %6277 = vmatprep.subr.mxu1 %v7322_v57 }
 0x17b   :  { %v539_v63 = vpop.f32.mrf.mxu0  ;;  %6278 = vmatpush3.msra.mxu1 %v7322_v57 }
 0x17c   :  { %v7338_v1 = vadd.f32 %v539_v63, %v7316_v51  ;;  %6279 = vmatprep.subr.mxu1 %v7327_v59 }
 0x17d   :  { %v6260_v2 = vpop.f32.mrf.mxu0  ;;  %6280 = vmatpush3.msra.mxu1 %v7327_v59 }
 0x17e   :  { %v7343_v5 = vadd.f32 %v6260_v2, %v7316_v51  ;;  %6281 = vmatprep.subr.mxu1 %v7335_v0 }
 0x17f   :  { %6282 = vmatpush3.msra.mxu1 %v7335_v0  ;;  %v7409_v39 = vpop.f32.mrf.mxu0 }
 0x1cd   :  { %v829_v6 = vpop.permute.xlu0 %828 }
 0x1ce   :  { %6289 = vmatprep.subr.msk.mxu0 %vm562_vm1, %v829_v6 }
 0x1cf   :  { %v827_v8 = vpop.permute.xlu1 %826  ;;  %6290 = vmatpush3.xpose.msk.msra.mxu0 %vm562_vm1, %v829_v6 }
 0x1d0   :  { %6291 = vmatprep.subr.msk.mxu0 %vm562_vm1, %v827_v8 }
 0x1d1   :  { %v825_v11 = vpop.permute.xlu0 %824 }
 0x1d3   :  { %6292 = vmatpush3.xpose.msk.msra.mxu0 %vm562_vm1, %v827_v8  ;;  %v823_v14 = vpop.permute.xlu1 %822 }
 0x1d4   :  { %6293 = vmatprep.subr.msk.mxu0 %vm562_vm1, %v825_v11 }
 0x1d5   :  { %v815_v15 = vpop.permute.xlu0 %814 }
 0x1d6   :  { %6297 = vmatprep.mubr.msk.f32.mxu0 %vm562_vm1, %v815_v15 }
 0x1d7   :  { %6294 = vmatpush3.xpose.msk.msra.mxu0 %vm562_vm1, %v825_v11  ;;  %v817_v19 = vpop.permute.xlu1 %816 }
 0x1d8   :  { %6295 = vmatprep.subr.msk.mxu0 %vm562_vm1, %v823_v14 }
 0x1d9   :  { %v819_v21 = vpop.permute.xlu0 %818 }
 0x1db   :  { %6296 = vmatpush3.xpose.msk.msra.mxu0 %vm562_vm1, %v823_v14  ;;  %v821_v23 = vpop.permute.xlu1 %820 }
 0x1dc   :  { %6317 = vmatprep.subr.msk.mxu0 %vm562_vm1, %v7356_v17 }
 0x1de   :  { %6298 = vmatmul.mubr.msk.f32.vlgmr.msra.gmra.mxu0 %vm562_vm1, %v817_v19 }
 0x1df   :  { %6300 = vmatprep.mubr.msk.f32.mxu0 %vm562_vm1, %v819_v21  ;;  %6318 = vmatpush3.xpose.msk.msra.mxu0 %vm562_vm1, %v7356_v17 }
 0x1e0   :  { %6319 = vmatprep.subr.msk.mxu0 %vm562_vm1, %v7362_v20 }
 0x1e2   :  { %6301 = vmatmul.mubr.msk.f32.gmra.mxu0 %vm562_vm1, %v821_v23 }
 0x1e3   :  { %6320 = vmatpush3.xpose.msk.msra.mxu0 %vm562_vm1, %v7362_v20  ;;  %6325 = vmatprep.mubr.msk.f32.mxu0 %vm562_vm1, %v7370_v22 }
 0x1e4   :  { %6321 = vmatprep.subr.msk.mxu0 %vm562_vm1, %v7373_v24 }
 0x1e7   :  { %6322 = vmatpush3.xpose.msk.msra.mxu0 %vm562_vm1, %v7373_v24 }
 0x1e8   :  { %6323 = vmatprep.subr.msk.mxu0 %vm562_vm1, %v7383_v25 }
 0x1eb   :  { %6324 = vmatpush3.xpose.msk.msra.mxu0 %vm562_vm1, %v7383_v25 }
 0x1ee   :  { %6326 = vmatmul.mubr.msk.f32.vlgmr.msra.gmra.mxu0 %vm562_vm1, %v7392_v26 }
 0x1ef   :  { %6328 = vmatprep.mubr.msk.f32.mxu0 %vm562_vm1, %v7394_v27 }
 0x1f2   :  { %6329 = vmatmul.mubr.msk.f32.gmra.mxu0 %vm562_vm1, %v7401_v13 }
 0x22b   :  { %v6271_v29 = vpop.f32.mrf.mxu1 }
 0x22c   :  { %v676_v30 = vsel %vm672_vm2, %v6271_v29, -inf }
 0x22d   :  { %677 = vmax.xlane.f32.xlu1 %v676_v30  ;;  %v653_v31 = vpop.f32.mrf.mxu1 }
 0x22e   :  { %v673_v33 = vsel %vm672_vm2, %v653_v31, -inf }
 0x22f   :  { %674 = vmax.xlane.f32.xlu0 %v673_v33  ;;  %v6274_v34 = vpop.f32.mrf.mxu1 }
 0x230   :  { %v682_v38 = vsel %vm672_vm2, %v6274_v34, -inf }
 0x231   :  { %v663_v36 = vpop.f32.mrf.mxu1 }
 0x232   :  { %v679_v37 = vsel %vm672_vm2, %v663_v36, -inf }
 0x233   :  { %680 = vmax.xlane.f32.xlu0 %v679_v37 }
 0x237   :  { %683 = vmax.xlane.f32.xlu0 %v682_v38 }
 0x29e   :  { %v6299_v40 = vpop.f32.mrf.mxu0 }
 0x29f   :  { %v934_v44 = vsel %vm672_vm2, %v6299_v40, -inf }
 0x2a0   :  { %935 = vmax.xlane.f32.xlu0 %v934_v44  ;;  %v912_v45 = vpop.f32.mrf.mxu0 }
 0x2a1   :  { %v931_v46 = vsel %vm672_vm2, %v912_v45, -inf }
 0x2a2   :  { %932 = vmax.xlane.f32.xlu1 %v931_v46  ;;  %v6302_v47 = vpop.f32.mrf.mxu0 }
 0x2a3   :  { %v940_v48 = vsel %vm672_vm2, %v6302_v47, -inf }
 0x2a4   :  { %941 = vmax.xlane.f32.xlu0 %v940_v48  ;;  %v922_v52 = vpop.f32.mrf.mxu0 }
 0x2a5   :  { %v937_v54 = vsel %vm672_vm2, %v922_v52, -inf }
 0x2a6   :  { %938 = vmax.xlane.f32.xlu1 %v937_v54 }
 0x2ae   :  { %v7415_v58 = vpop.f32.mrf.mxu0 }
 0x2af   :  { %v1224_v63 = vsel %vm672_vm2, %v7415_v58, -inf }
 0x2b0   :  { %1225 = vmax.xlane.f32.xlu0 %v1224_v63  ;;  %v7419_v2 = vpop.f32.mrf.mxu0 }
 0x2b1   :  { %v1221_v6 = vsel %vm672_vm2, %v7419_v2, -inf }
 0x2b2   :  { %v7423_v7 = vpop.f32.mrf.mxu0  ;;  %1222 = vmax.xlane.f32.xlu1 %v1221_v6 }
 0x2b3   :  { %v1230_v8 = vsel %vm672_vm2, %v7423_v7, -inf }
 0x2b4   :  { %1231 = vmax.xlane.f32.xlu0 %v1230_v8  ;;  %v7433_v23 = vpop.f32.mrf.mxu0 }
 0x2b6   :  { %v678_v14 = vpop.xlane.xlu1 %677 }
 0x2b7   :  { %v686_v15 = vsub.f32 %v6271_v29, %v678_v14 }
 0x2b8   :  { %v675_v11 = vpop.xlane.xlu0 %674 }
 0x2b9   :  { %v691_v18 = vmul.f32 1.442695, %v686_v15  ;;  %v685_v33 = vsub.f32 %v653_v31, %v675_v11 }
 0x2bb   :  { %6828 = vpow2.f32 %v691_v18 }
 0x2bc   :  { %v681_v12 = vpop.xlane.xlu0 %680 }
 0x2bd   :  { %v687_v37 = vsub.f32 %v663_v36, %v681_v12 }
 0x2bf   :  { %v693_v38 = vmul.f32 1.442695, %v687_v37 }
 0x2c0   :  { %v684_v16 = vpop.xlane.xlu0 %683 }
 0x2c1   :  { %v688_v19 = vsub.f32 %v6274_v34, %v684_v16  ;;  %v689_v34 = vmul.f32 1.442695, %v685_v33 }
 0x2c3   :  { %983 = vrot.lane.b32.xlu1 %v7322_v57, %s7068_s4  ;;  %v695_v21 = vmul.f32 1.442695, %v688_v19  ;;  %v1227_v57 = vsel %vm672_vm2, %v7433_v23, -inf }
 0x2c5   :  { %6830 = vpow2.f32 %v695_v21 }
 0x2c6   :  { %6832 = vpow2.f32 %v689_v34 }
 0x2c7   :  { %6834 = vpow2.f32 %v693_v38 }
 0x2c8   :  { %v7437_v30 = vpop.eup %6828 }
 0x2ca   :  { %985 = vrot.lane.b32.xlu0 %v7319_v53, %s7068_s4  ;;  %v700_v53 = vsel %vm672_vm2, %v7437_v30, 0.0 }
 0x2ce   :  { %981 = vrot.lane.b32.xlu0 %v7327_v59, %s7068_s4 }
 0x2d2   :  { %v7441_v59 = vpop.eup %6830 }
 0x2d3   :  { %v706_v29 = vsel %vm672_vm2, %v7441_v59, 0.0  ;;  %v7447_v44 = vpop.eup %6832 }
 0x2d4   :  { %v697_v46 = vsel %vm672_vm2, %v7447_v44, 0.0  ;;  %v7451_v48 = vpop.eup %6834 }
 0x2d5   :  { %v703_v54 = vsel %vm672_vm2, %v7451_v48, 0.0 }
 0x2e7   :  { %1228 = vmax.xlane.f32.xlu1 %v1227_v57 }
 0x2ed   :  { %701 = vadd.xlane.f32.xlu0 %v700_v53 }
 0x2f1   :  { %707 = vadd.xlane.f32.xlu0 %v706_v29 }
 0x2f8   :  { %979 = vrot.lane.b32.xlu1 %v7335_v0, %s7068_s4 }
 0x31c   :  { %698 = vadd.xlane.f32.xlu1 %v697_v46 }
 0x320   :  { %704 = vadd.xlane.f32.xlu1 %v703_v54 }
 0x329   :  { %v936_v63 = vpop.xlane.xlu0 %935 }
 0x32a   :  { %v944_v0 = vsub.f32 %v6299_v40, %v936_v63 }
 0x32b   :  { %v933_v31 = vpop.xlane.xlu1 %932 }
 0x32c   :  { %v949_v6 = vmul.f32 1.442695, %v944_v0  ;;  %v943_v36 = vsub.f32 %v912_v45, %v933_v31 }
 0x32d   :  { %v942_v8 = vpop.xlane.xlu0 %941 }
 0x32e   :  { %6836 = vpow2.f32 %v949_v6  ;;  %v947_v11 = vmul.f32 1.442695, %v943_v36  ;;  %v946_v12 = vsub.f32 %v6302_v47, %v942_v8 }
 0x32f   :  { %v939_v14 = vpop.xlane.xlu1 %938 }
 0x330   :  { %6838 = vpow2.f32 %v947_v11  ;;  %v953_v15 = vmul.f32 1.442695, %v946_v12  ;;  %v945_v16 = vsub.f32 %v922_v52, %v939_v14 }
 0x332   :  { %6840 = vpow2.f32 %v953_v15  ;;  %v951_v18 = vmul.f32 1.442695, %v945_v16 }
 0x334   :  { %6842 = vpow2.f32 %v951_v18 }
 0x339   :  { %v1226_v19 = vpop.xlane.xlu0 %1225 }
 0x33a   :  { %v1234_v21 = vsub.f32 %v7415_v58, %v1226_v19 }
 0x33b   :  { %v7456_v57 = vpop.eup %6836  ;;  %v1223_v54 = vpop.xlane.xlu1 %1222 }
 0x33c   :  { %v1239_v40 = vmul.f32 1.442695, %v1234_v21  ;;  %v958_v45 = vsel %vm672_vm2, %v7456_v57, 0.0  ;;  %v1233_v63 = vsub.f32 %v7419_v2, %v1223_v54 }
 0x33d   :  { %v7460_v53 = vpop.eup %6838  ;;  %959 = vadd.xlane.f32.xlu0 %v958_v45  ;;  %v1232_v47 = vpop.xlane.xlu0 %1231 }
 0x33e   :  { %6844 = vpow2.f32 %v1239_v40  ;;  %v955_v52 = vsel %vm672_vm2, %v7460_v53, 0.0  ;;  %v1237_v0 = vmul.f32 1.442695, %v1233_v63  ;;  %v1236_v31 = vsub.f32 %v7423_v7, %v1232_v47 }
 0x33f   :  { %v7464_v29 = vpop.eup %6840  ;;  %956 = vadd.xlane.f32.xlu1 %v955_v52  ;;  %v7521_v63 = vadd.f32 %v7409_v39, %v7316_v51 }
 0x340   :  { %v964_v58 = vsel %vm672_vm2, %v7464_v29, 0.0  ;;  %6846 = vpow2.f32 %v1237_v0  ;;  %v1243_v6 = vmul.f32 1.442695, %v1236_v31 }
 0x341   :  { %v7468_v33 = vpop.eup %6842  ;;  %965 = vadd.xlane.f32.xlu0 %v964_v58  ;;  %v986_v34 = vpop.permute.xlu0 %985 }
 0x342   :  { %6303 = vmatprep.subr.mxu1 %v986_v34  ;;  %v961_v37 = vsel %vm672_vm2, %v7468_v33, 0.0  ;;  %6848 = vpow2.f32 %v1243_v6 }
 0x343   :  { %962 = vadd.xlane.f32.xlu1 %v961_v37 }
 0x34b   :  { %v7472_v38 = vpop.eup %6844 }
 0x34c   :  { %v1248_v46 = vsel %vm672_vm2, %v7472_v38, 0.0 }
 0x34d   :  { %1249 = vadd.xlane.f32.xlu0 %v1248_v46  ;;  %v7491_v36 = vpop.eup %6846 }
 0x34f   :  { %v7495_v7 = vpop.eup %6848 }
 0x354   :  { %1374 = vrot.lane.b32.xlu1 %v7362_v20, %s7068_s4  ;;  %v984_v20 = vpop.permute.xlu1 %983 }
 0x358   :  { %1370 = vrot.lane.b32.xlu1 %v7383_v25, %s7068_s4 }
 0x363   :  { %1376 = vrot.lane.b32.xlu0 %v7356_v17, %s7068_s4 }
 0x367   :  { %1372 = vrot.lane.b32.xlu0 %v7373_v24, %s7068_s4  ;;  %v1245_v24 = vsel %vm672_vm2, %v7491_v36, 0.0 }
 0x36b   :  { %1362 = vrot.lane.b32.xlu0 %v7370_v22, %s7068_s4  ;;  %v1254_v22 = vsel %vm672_vm2, %v7495_v7, 0.0 }
 0x36f   :  { %1366 = vrot.lane.b32.xlu0 %v7394_v27, %s7068_s4 }
 0x370   :  { %v1229_v25 = vpop.xlane.xlu1 %1228 }
 0x371   :  { %v1235_v2 = vsub.f32 %v7433_v23, %v1229_v25  ;;  %v982_v23 = vpop.permute.xlu0 %981 }
 0x373   :  { %v1241_v17 = vmul.f32 1.442695, %v1235_v2 }
 0x374   :  { %v980_v12 = vpop.permute.xlu1 %979 }
 0x375   :  { %6850 = vpow2.f32 %v1241_v17 }
 0x376   :  { %v702_v11 = vpop.xlane.xlu0 %701 }
 0x377   :  { %6852 = vrcp.f32 %v702_v11 }
 0x37a   :  { %v708_v15 = vpop.xlane.xlu0 %707 }
 0x37c   :  { %1246 = vadd.xlane.f32.xlu1 %v1245_v24 }
 0x380   :  { %1255 = vadd.xlane.f32.xlu1 %v1254_v22 }
 0x382   :  { %v7499_v8 = vpop.eup %6850 }
 0x383   :  { %v1251_v27 = vsel %vm672_vm2, %v7499_v8, 0.0 }
 0x384   :  { %1252 = vadd.xlane.f32.xlu1 %v1251_v27  ;;  %v6853_v18 = vpop.eup %6852 }
 0x385   :  { %v714_v40 = vmul.f32 %v6853_v18, %v7437_v30 }
 0x395   :  { %1364 = vrot.lane.b32.xlu1 %v7392_v26, %s7068_s4 }
 0x399   :  { %1368 = vrot.lane.b32.xlu1 %v7401_v13, %s7068_s4 }
 0x3a5   :  { %v699_v14 = vpop.xlane.xlu1 %698 }
 0x3a6   :  { %6854 = vrcp.f32 %v699_v14 }
 0x3a7   :  { %6856 = vrcp.f32 %v708_v15 }
 0x3a9   :  { %v705_v16 = vpop.xlane.xlu1 %704 }
 0x3aa   :  { %6858 = vrcp.f32 %v705_v16 }
 0x3b3   :  { %v6855_v19 = vpop.eup %6854 }
 0x3b4   :  { %v713_v21 = vmul.f32 %v6855_v19, %v7447_v44  ;;  %v6857_v26 = vpop.eup %6856 }
 0x3b5   :  { %v716_v47 = vmul.f32 %v6857_v26, %v7441_v59 }
 0x3b6   :  { %6283 = vmatprep.mubr.msk.f32.mxu1 %vm672_vm2, %v713_v21 }
 0x3b7   :  { %v6859_v13 = vpop.eup %6858  ;;  %6284 = vmatmul.mubr.msk.f32.vlgmr.msra.gmra.mxu1 %vm672_vm2, %v714_v40 }
 0x3b8   :  { %6304 = vmatpush3.msra.mxu1 %v986_v34  ;;  %v715_v45 = vmul.f32 %v6859_v13, %v7451_v48 }
 0x3b9   :  { %6305 = vmatprep.subr.mxu1 %v984_v20 }
 0x3ba   :  { %6306 = vmatpush3.msra.mxu1 %v984_v20  ;;  %6286 = vmatprep.mubr.msk.f32.mxu1 %vm672_vm2, %v715_v45 }
 0x3bb   :  { %6307 = vmatprep.subr.mxu1 %v982_v23  ;;  %6287 = vmatmul.mubr.msk.f32.gmra.mxu1 %vm672_vm2, %v716_v47 }
 0x3bc   :  { %6308 = vmatpush3.msra.mxu1 %v982_v23 }
 0x3bd   :  { %6309 = vmatprep.subr.mxu1 %v980_v12 }
 0x3be   :  { %6310 = vmatpush3.msra.mxu1 %v980_v12 }
 0x3bf   :  { %6331 = vmatprep.subr.mxu1 %v7343_v5 }
 0x3c6   :  { %v960_v30 = vpop.xlane.xlu0 %959 }
 0x3c7   :  { %6860 = vrcp.f32 %v960_v30 }
 0x3c8   :  { %v957_v44 = vpop.xlane.xlu1 %956 }
 0x3c9   :  { %6862 = vrcp.f32 %v957_v44 }
 0x3ca   :  { %v966_v52 = vpop.xlane.xlu0 %965 }
 0x3cb   :  { %6864 = vrcp.f32 %v966_v52 }
 0x3cc   :  { %v963_v48 = vpop.xlane.xlu1 %962 }
 0x3cd   :  { %6866 = vrcp.f32 %v963_v48 }
 0x3d0   :  { %v1375_v39 = vpop.permute.xlu1 %1374 }
 0x3d4   :  { %v6861_v59 = vpop.eup %6860 }
 0x3d5   :  { %v972_v37 = vmul.f32 %v6861_v59, %v7456_v57  ;;  %v1371_v57 = vpop.permute.xlu1 %1370 }
 0x3d6   :  { %v6863_v58 = vpop.eup %6862  ;;  %v1250_v0 = vpop.xlane.xlu0 %1249 }
 0x3d7   :  { %v971_v34 = vmul.f32 %v6863_v58, %v7460_v53  ;;  %6868 = vrcp.f32 %v1250_v0 }
 0x3d8   :  { %v6865_v46 = vpop.eup %6864 }
 0x3d9   :  { %6311 = vmatprep.mubr.msk.f32.mxu1 %vm672_vm2, %v971_v34  ;;  %v974_v53 = vmul.f32 %v6865_v46, %v7464_v29  ;;  %v180_v46 = vld [vmem:[%s8854_s2 + $0x38] sm:$0xff] }
 0x3da   :  { %v6867_v54 = vpop.eup %6866  ;;  %6312 = vmatmul.mubr.msk.f32.vlgmr.msra.gmra.mxu1 %vm672_vm2, %v972_v37  ;;  %v1377_v51 = vpop.permute.xlu0 %1376  ;;  %6373 = vmatprep.subr.mxu0 %v180_v46 }
 0x3db   :  { %6332 = vmatpush3.msra.mxu1 %v7343_v5  ;;  %v973_v31 = vmul.f32 %v6867_v54, %v7468_v33  ;;  %6374 = vmatpush3.msra.mxu0 %v180_v46  ;;  %v179_v54 = vld [vmem:[%s8854_s2 + $0x30] sm:$0xff] }
 0x3dc   :  { %6333 = vmatprep.subr.mxu1 %v7521_v63  ;;  %6375 = vmatprep.subr.mxu0 %v179_v54 }
 0x3dd   :  { %6334 = vmatpush3.msra.mxu1 %v7521_v63  ;;  %6314 = vmatprep.mubr.msk.f32.mxu1 %vm672_vm2, %v973_v31 }
 0x3de   :  { %6335 = vmatprep.subr.mxu1 %v7330_v60  ;;  %6315 = vmatmul.mubr.msk.f32.gmra.mxu1 %vm672_vm2, %v974_v53  ;;  %v1373_v24 = vpop.permute.xlu0 %1372 }
 0x3df   :  { %6336 = vmatpush3.msra.mxu1 %v7330_v60  ;;  %6376 = vmatpush3.msra.mxu0 %v179_v54 }
 0x3e0   :  { %6337 = vmatprep.subr.mxu1 %v7338_v1 }
 0x3e1   :  { %6338 = vmatpush3.msra.mxu1 %v7338_v1 }
 0x3e2   :  { %6345 = vmatprep.subr.msk.mxu1 %vm562_vm1, %v1377_v51 }
 0x3e4   :  { %v6869_v20 = vpop.eup %6868 }
 0x3e5   :  { %v1262_v17 = vmul.f32 %v6869_v20, %v7472_v38  ;;  %v1363_v38 = vpop.permute.xlu0 %1362 }
 0x3e9   :  { %v1367_v12 = vpop.permute.xlu0 %1366 }
 0x405   :  { %v1247_v29 = vpop.xlane.xlu1 %1246 }
 0x406   :  { %6870 = vrcp.f32 %v1247_v29 }
 0x409   :  { %v1256_v33 = vpop.xlane.xlu1 %1255 }
 0x40a   :  { %6872 = vrcp.f32 %v1256_v33 }
 0x40d   :  { %v1253_v6 = vpop.xlane.xlu1 %1252 }
 0x40e   :  { %6874 = vrcp.f32 %v1253_v6 }
 0x411   :  { %v1365_v11 = vpop.permute.xlu1 %1364 }
 0x413   :  { %v6871_v25 = vpop.eup %6870 }
 0x414   :  { %v1261_v2 = vmul.f32 %v6871_v25, %v7491_v36 }
 0x416   :  { %6339 = vmatprep.mubr.msk.f32.mxu1 %vm672_vm2, %v1261_v2 }
 0x417   :  { %6340 = vmatmul.mubr.msk.f32.vlgmr.msra.gmra.mxu1 %vm672_vm2, %v1262_v17  ;;  %v6873_v22 = vpop.eup %6872 }
 0x418   :  { %6346 = vmatpush3.xpose.msk.msra.mxu1 %vm562_vm1, %v1377_v51  ;;  %v1264_v36 = vmul.f32 %v6873_v22, %v7495_v7  ;;  %v1369_v7 = vpop.permute.xlu1 %1368 }
 0x419   :  { %6347 = vmatprep.subr.msk.mxu1 %vm562_vm1, %v1375_v39 }
 0x41b   :  { %v6875_v27 = vpop.eup %6874 }
 0x41c   :  { %6348 = vmatpush3.xpose.msk.msra.mxu1 %vm562_vm1, %v1375_v39  ;;  %v1263_v23 = vmul.f32 %v6875_v27, %v7499_v8 }
 0x41d   :  { %6349 = vmatprep.subr.msk.mxu1 %vm562_vm1, %v1373_v24 }
 0x41e   :  { %6342 = vmatprep.mubr.msk.f32.mxu1 %vm672_vm2, %v1263_v23 }
 0x41f   :  { %6343 = vmatmul.mubr.msk.f32.gmra.mxu1 %vm672_vm2, %v1264_v36 }
 0x420   :  { %6350 = vmatpush3.xpose.msk.msra.mxu1 %vm562_vm1, %v1373_v24  ;;  %6353 = vmatprep.mubr.msk.f32.mxu1 %vm562_vm1, %v1363_v38 }
 0x421   :  { %6351 = vmatprep.subr.msk.mxu1 %vm562_vm1, %v1371_v57 }
 0x424   :  { %6352 = vmatpush3.xpose.msk.msra.mxu1 %vm562_vm1, %v1371_v57 }
 0x427   :  { %6354 = vmatmul.mubr.msk.f32.vlgmr.msra.gmra.mxu1 %vm562_vm1, %v1365_v11 }
 0x428   :  { %6356 = vmatprep.mubr.msk.f32.mxu1 %vm562_vm1, %v1367_v12 }
 0x42b   :  { %6357 = vmatmul.mubr.msk.f32.gmra.mxu1 %vm562_vm1, %v1369_v7 }
 0x477   :  { %v6285_v8 = vpop.f32.mrf.mxu1 }
 0x479   :  { %v795_v14 = vpop.f32.mrf.mxu1 }
 0x47b   :  { %v7555_v15 = vpop.f32.mrf.mxu1 }
 0x47d   :  { %v805_v16 = vpop.f32.mrf.mxu1 }
 0x49a   :  { %v6313_v18 = vpop.f32.mrf.mxu1 }
 0x49c   :  { %v1069_v19 = vpop.f32.mrf.mxu1 }
 0x49d   :  { %1092 = vrot.lane.b32.xlu1 %v1069_v19, %s7069_s16 }
 0x49e   :  { %v6316_v21 = vpop.f32.mrf.mxu1 }
 0x4a0   :  { %v1079_v40 = vpop.f32.mrf.mxu1 }
 0x4d7   :  { %v7558_v26 = vpop.f32.mrf.mxu1 }
 0x4d9   :  { %v7560_v13 = vpop.f32.mrf.mxu1 }
 0x4df   :  { %v7562_v45 = vpop.f32.mrf.mxu1 }
 0x4e1   :  { %v7564_v47 = vpop.f32.mrf.mxu1 }
 0x4e7   :  { %v6355_v30 = vpop.f32.mrf.mxu1 }
 0x4e8   :  { %v1482_v44 = vsel %vm672_vm2, %v6355_v30, -inf }
 0x4e9   :  { %1483 = vmax.xlane.f32.xlu1 %v1482_v44  ;;  %v1460_v52 = vpop.f32.mrf.mxu1 }
 0x4ea   :  { %v1479_v48 = vsel %vm672_vm2, %v1460_v52, -inf }
 0x4eb   :  { %1480 = vmax.xlane.f32.xlu0 %v1479_v48  ;;  %v6358_v59 = vpop.f32.mrf.mxu1 }
 0x4ec   :  { %v1488_v58 = vsel %vm672_vm2, %v6358_v59, -inf }
 0x4ed   :  { %v1470_v34 = vpop.f32.mrf.mxu1 }
 0x4ee   :  { %v1485_v37 = vsel %vm672_vm2, %v1470_v34, -inf }
 0x4ef   :  { %1489 = vmax.xlane.f32.xlu0 %v1488_v58 }
 0x4f3   :  { %1486 = vmax.xlane.f32.xlu0 %v1485_v37 }
 0x4fa   :  { %1096 = vrot.lane.b32.xlu1 %v1079_v40, %s7069_s16 }
 0x4fe   :  { %1098 = vrot.lane.b32.xlu1 %v6316_v21, %s7069_s16 }
 0x502   :  { %1533 = vrot.lane.b32.xlu1 %v7343_v5, %s7068_s4 }
 0x509   :  { %1094 = vrot.lane.b32.xlu0 %v6313_v18, %s7069_s16 }
 0x50f   :  { %v1093_v0 = vpop.permute.xlu1 %1092 }
 0x510   :  { %v1104_v31 = vsel %vm562_vm1, %v795_v14, %v1093_v0  ;;  %v7607_v0 = vld [vmem:[%s8855_s3 + $0x7] ss:$0 sm:$0xff] }
 0x511   :  { %6377 = vmatprep.mubr.msk.f32.mxu0 %vm192_vm0, %v1104_v31 }
 0x572   :  { %v1484_v53 = vpop.xlane.xlu1 %1483 }
 0x573   :  { %v1492_v51 = vsub.f32 %v6355_v30, %v1484_v53 }
 0x574   :  { %v1481_v39 = vpop.xlane.xlu0 %1480 }
 0x575   :  { %v1497_v57 = vmul.f32 1.442695, %v1492_v51  ;;  %v1491_v29 = vsub.f32 %v1460_v52, %v1481_v39 }
 0x576   :  { %v1097_v33 = vpop.permute.xlu1 %1096 }
 0x577   :  { %6876 = vpow2.f32 %v1497_v57  ;;  %v1495_v6 = vmul.f32 1.442695, %v1491_v29  ;;  %v1106_v38 = vsel %vm562_vm1, %v805_v16, %v1097_v33 }
 0x578   :  { %v1490_v20 = vpop.xlane.xlu0 %1489 }
 0x579   :  { %6878 = vpow2.f32 %v1495_v6  ;;  %v1494_v25 = vsub.f32 %v6358_v59, %v1490_v20 }
 0x57a   :  { %v1099_v2 = vpop.permute.xlu1 %1098 }
 0x57b   :  { %v1501_v5 = vmul.f32 1.442695, %v1494_v25  ;;  %v1107_v12 = vsel %vm562_vm1, %v7555_v15, %v1099_v2 }
 0x57c   :  { %v1487_v17 = vpop.xlane.xlu0 %1486 }
 0x57d   :  { %6880 = vpow2.f32 %v1501_v5  ;;  %v1493_v24 = vsub.f32 %v1470_v34, %v1487_v17 }
 0x57e   :  { %v1534_v22 = vpop.permute.xlu1 %1533 }
 0x57f   :  { %v1499_v27 = vmul.f32 1.442695, %v1493_v24  ;;  %6359 = vmatprep.subr.mxu1 %v1534_v22 }
 0x580   :  { %6360 = vmatpush3.msra.mxu1 %v1534_v22  ;;  %v1095_v23 = vpop.permute.xlu0 %1094 }
 0x581   :  { %6882 = vpow2.f32 %v1499_v27  ;;  %v1105_v36 = vsel %vm562_vm1, %v6285_v8, %v1095_v23 }
 0x582   :  { %6378 = vmatmul.mubr.msk.f32.vlgmr.msra.gmra.mxu0 %vm192_vm0, %v1105_v36 }
 0x583   :  { %6380 = vmatprep.mubr.msk.f32.mxu0 %vm192_vm0, %v1106_v38 }
 0x584   :  { %v6877_v11 = vpop.eup %6876 }
 0x585   :  { %v1506_v7 = vsel %vm672_vm2, %v6877_v11, 0.0 }
 0x586   :  { %v6879_v14 = vpop.eup %6878  ;;  %1507 = vadd.xlane.f32.xlu1 %v1506_v7  ;;  %6381 = vmatmul.mubr.msk.f32.gmra.mxu0 %vm192_vm0, %v1107_v12 }
 0x587   :  { %v1503_v18 = vsel %vm672_vm2, %v6879_v14, 0.0 }
 0x588   :  { %1504 = vadd.xlane.f32.xlu0 %v1503_v18 }
 0x58a   :  { %v6881_v8 = vpop.eup %6880 }
 0x58b   :  { %v1512_v16 = vsel %vm672_vm2, %v6881_v8, 0.0 }
 0x58c   :  { %1513 = vadd.xlane.f32.xlu0 %v1512_v16 }
 0x58e   :  { %v6883_v19 = vpop.eup %6882 }
 0x58f   :  { %v1509_v21 = vsel %vm672_vm2, %v6883_v19, 0.0 }
 0x590   :  { %1510 = vadd.xlane.f32.xlu0 %v1509_v21 }
 0x597   :  { %1529 = vrot.lane.b32.xlu1 %v7330_v60, %s7068_s4 }
 0x59b   :  { %1527 = vrot.lane.b32.xlu1 %v7338_v1, %s7068_s4 }
 0x5a6   :  { %1531 = vrot.lane.b32.xlu0 %v7521_v63, %s7068_s4 }
 0x60f   :  { %v1508_v15 = vpop.xlane.xlu1 %1507 }
 0x610   :  { %6884 = vrcp.f32 %v1508_v15 }
 0x611   :  { %v1505_v40 = vpop.xlane.xlu0 %1504 }
 0x612   :  { %6886 = vrcp.f32 %v1505_v40 }
 0x613   :  { %v1530_v52 = vpop.permute.xlu1 %1529 }
 0x615   :  { %v1514_v30 = vpop.xlane.xlu0 %1513 }
 0x616   :  { %6888 = vrcp.f32 %v1514_v30 }
 0x617   :  { %v1528_v1 = vpop.permute.xlu1 %1527 }
 0x619   :  { %v1511_v44 = vpop.xlane.xlu0 %1510 }
 0x61a   :  { %6890 = vrcp.f32 %v1511_v44 }
 0x61d   :  { %v1532_v48 = vpop.permute.xlu0 %1531  ;;  %v6885_v59 = vpop.eup %6884 }
 0x61e   :  { %6361 = vmatprep.subr.mxu1 %v1532_v48  ;;  %v1520_v34 = vmul.f32 %v6885_v59, %v6877_v11 }
 0x61f   :  { %v6887_v58 = vpop.eup %6886  ;;  %6362 = vmatpush3.msra.mxu1 %v1532_v48 }
 0x620   :  { %6363 = vmatprep.subr.mxu1 %v1530_v52  ;;  %v1519_v60 = vmul.f32 %v6887_v58, %v6879_v14 }
 0x621   :  { %6364 = vmatpush3.msra.mxu1 %v1530_v52 }
 0x622   :  { %6365 = vmatprep.subr.mxu1 %v1528_v1  ;;  %6367 = vmatprep.mubr.msk.f32.mxu1 %vm672_vm2, %v1519_v60  ;;  %v182_v60 = vld [vmem:[%s8854_s2 + $0x48] sm:$0xff] }
 0x623   :  { %6366 = vmatpush3.msra.mxu1 %v1528_v1  ;;  %v6889_v63 = vpop.eup %6888  ;;  %v181_v1 = vld [vmem:[%s8854_s2 + $0x40] sm:$0xff] }
 0x624   :  { %6368 = vmatmul.mubr.msk.f32.vlgmr.msra.gmra.mxu1 %vm672_vm2, %v1520_v34  ;;  %v1522_v54 = vmul.f32 %v6889_v63, %v6881_v8  ;;  %6389 = vmatprep.subr.mxu1 %v182_v60 }
 0x625   :  { %6390 = vmatpush3.msra.mxu1 %v182_v60 }
 0x626   :  { %6391 = vmatprep.subr.mxu1 %v181_v1 }
 0x627   :  { %v6891_v37 = vpop.eup %6890  ;;  %6392 = vmatpush3.msra.mxu1 %v181_v1 }
 0x628   :  { %v1521_v46 = vmul.f32 %v6891_v37, %v6883_v19 }
 0x62a   :  { %6370 = vmatprep.mubr.msk.f32.mxu1 %vm672_vm2, %v1521_v46 }
 0x62b   :  { %6371 = vmatmul.mubr.msk.f32.gmra.mxu1 %vm672_vm2, %v1522_v54 }
 0x642   :  { %v6379_v31 = vpop.f32.mrf.mxu0 }
 0x643   :  { %v1753_v53 = vadd.f32 %v6379_v31, %v7607_v0 }
 0x644   :  { %v1747_v51 = vpop.f32.mrf.mxu0 }
 0x645   :  { %v1748_v39 = vadd.f32 %v1747_v51, %v7607_v0  ;;  %v1787_v57 = vadd.f32 %v1753_v53, %v7208_v42 }
 0x646   :  { %v6382_v29 = vpop.f32.mrf.mxu0 }
 0x647   :  { %v1799_v33 = vsel %vm192_vm0, %v1787_v57, 0.0  ;;  %v1786_v6 = vadd.f32 %v1748_v39, %v7210_v43  ;;  %v1763_v25 = vadd.f32 %v6382_v29, %v7607_v0 }
 0x648   :  { %1800 = vadd.xlane.f32.xlu1 %v1799_v33  ;;  %v1757_v20 = vpop.f32.mrf.mxu0 }
 0x649   :  { %v1758_v2 = vadd.f32 %v1757_v20, %v7607_v0  ;;  %v1796_v5 = vsel %vm192_vm0, %v1786_v6, 0.0  ;;  %v1789_v42 = vadd.f32 %v1763_v25, %v7221_v49 }
 0x64a   :  { %1797 = vadd.xlane.f32.xlu0 %v1796_v5 }
 0x64b   :  { %v1788_v17 = vadd.f32 %v1758_v2, %v7223_v50  ;;  %v1805_v22 = vsel %vm192_vm0, %v1789_v42, 0.0 }
 0x64d   :  { %v1802_v24 = vsel %vm192_vm0, %v1788_v17, 0.0 }
 0x64e   :  { %1803 = vadd.xlane.f32.xlu0 %v1802_v24 }
 0x652   :  { %1806 = vadd.xlane.f32.xlu0 %v1805_v22 }
 0x6d1   :  { %v1801_v43 = vpop.xlane.xlu1 %1800 }
 0x6d2   :  { %v1822_v27 = vmul.f32 0.0625, %v1801_v43 }
 0x6d3   :  { %v1798_v23 = vpop.xlane.xlu0 %1797 }
 0x6d4   :  { %v1830_v36 = vsub.f32 %v1787_v57, %v1822_v27  ;;  %v1821_v38 = vmul.f32 0.0625, %v1798_v23 }
 0x6d6   :  { %v1829_v11 = vsub.f32 %v1786_v6, %v1821_v38  ;;  %v1838_v12 = vmul.f32 %v1830_v36, %v1830_v36 }
 0x6d7   :  { %v1804_v7 = vpop.xlane.xlu0 %1803 }
 0x6d8   :  { %v1848_v14 = vsel %vm192_vm0, %v1838_v12, 0.0  ;;  %v1837_v18 = vmul.f32 %v1829_v11, %v1829_v11  ;;  %v1823_v50 = vmul.f32 0.0625, %v1804_v7 }
 0x6d9   :  { %1849 = vadd.xlane.f32.xlu0 %v1848_v14 }
 0x6da   :  { %v1845_v8 = vsel %vm192_vm0, %v1837_v18, 0.0  ;;  %v7623_v19 = vsub.f32 %v1788_v17, %v1823_v50  ;;  %v7645_v17 = vld [vmem:[%s8855_s3 + $0x12] ss:$0 sm:$0xff] }
 0x6db   :  { %1846 = vadd.xlane.f32.xlu1 %v1845_v8  ;;  %v1807_v49 = vpop.xlane.xlu0 %1806 }
 0x6dc   :  { %v1824_v16 = vmul.f32 0.0625, %v1807_v49  ;;  %v1839_v30 = vmul.f32 %v7623_v19, %v7623_v19 }
 0x6de   :  { %v1832_v21 = vsub.f32 %v1789_v42, %v1824_v16  ;;  %v1851_v44 = vsel %vm192_vm0, %v1839_v30, 0.0  ;;  %v190_v16 = vld [vmem:[%s8854_s2 + $0x88] sm:$0xff]  ;;  %v185_v30 = vld [vmem:[%s8854_s2 + $0x60] sm:$0xff] }
 0x6df   :  { %6405 = vmatprep.subr.mxu0 %v190_v16 }
 0x6e0   :  { %v1840_v15 = vmul.f32 %v1832_v21, %v1832_v21  ;;  %6406 = vmatpush3.msra.mxu0 %v190_v16 }
 0x6e2   :  { %v1854_v40 = vsel %vm192_vm0, %v1840_v15, 0.0  ;;  %v187_v15 = vld [vmem:[%s8854_s2 + $0x70] sm:$0xff] }
 0x6e3   :  { %1855 = vadd.xlane.f32.xlu1 %v1854_v40  ;;  %v186_v40 = vld [vmem:[%s8854_s2 + $0x68] sm:$0xff] }
 0x6e4   :  { %v6369_v52 = vpop.f32.mrf.mxu1 }
 0x6e6   :  { %v1617_v48 = vpop.f32.mrf.mxu1 }
 0x6e7   :  { %1852 = vadd.xlane.f32.xlu1 %v1851_v44  ;;  %v184_v44 = vld [vmem:[%s8854_s2 + $0x58] sm:$0xff] }
 0x6eb   :  { %v6372_v59 = vpop.f32.mrf.mxu1 }
 0x6ed   :  { %v1627_v58 = vpop.f32.mrf.mxu1 }
 0x6ef   :  { %1640 = vrot.lane.b32.xlu0 %v1617_v48, %s7069_s16 }
 0x6f3   :  { %1644 = vrot.lane.b32.xlu0 %v1627_v58, %s7069_s16 }
 0x6f8   :  { %1642 = vrot.lane.b32.xlu1 %v6369_v52, %s7069_s16  ;;  %v183_v52 = vld [vmem:[%s8854_s2 + $0x50] sm:$0xff] }
 0x6fc   :  { %1646 = vrot.lane.b32.xlu1 %v6372_v59, %s7069_s16 }
 0x762   :  { %v1850_v34 = vpop.xlane.xlu0 %1849 }
 0x763   :  { %v1870_v63 = vmul.f32 0.0625, %v1850_v34 }
 0x764   :  { %v1847_v37 = vpop.xlane.xlu1 %1846 }
 0x765   :  { %v1878_v46 = vadd.f32 1e-05, %v1870_v63  ;;  %v1869_v54 = vmul.f32 0.0625, %v1847_v37 }
 0x766   :  { %v1641_v31 = vpop.permute.xlu0 %1640 }
 0x767   :  { %6892 = vrsqrt.f32 %v1878_v46  ;;  %v1877_v53 = vadd.f32 1e-05, %v1869_v54  ;;  %v1652_v51 = vsel %vm562_vm1, %v7560_v13, %v1641_v31 }
 0x768   :  { %6383 = vmatprep.mubr.msk.f32.mxu0 %vm192_vm0, %v1652_v51 }
 0x769   :  { %6894 = vrsqrt.f32 %v1877_v53  ;;  %v7720_v53 = vld [vmem:[%s8855_s3 + $0x10] ss:$0 sm:$0xff] }
 0x76a   :  { %v1645_v20 = vpop.permute.xlu0 %1644 }
 0x76b   :  { %v1654_v22 = vsel %vm562_vm1, %v7564_v47, %v1645_v20 }
 0x76c   :  { %v1856_v39 = vpop.xlane.xlu1 %1855 }
 0x76d   :  { %v1872_v57 = vmul.f32 0.0625, %v1856_v39 }
 0x76f   :  { %v1880_v29 = vadd.f32 1e-05, %v1872_v57 }
 0x770   :  { %v1853_v33 = vpop.xlane.xlu1 %1852 }
 0x771   :  { %6896 = vrsqrt.f32 %v1880_v29  ;;  %v1871_v6 = vmul.f32 0.0625, %v1853_v33 }
 0x773   :  { %v1879_v25 = vadd.f32 1e-05, %v1871_v6 }
 0x774   :  { %v6893_v2 = vpop.eup %6892  ;;  %v1643_v5 = vpop.permute.xlu1 %1642 }
 0x775   :  { %v1894_v24 = vmul.f32 %v6893_v2, %v1830_v36  ;;  %6898 = vrsqrt.f32 %v1879_v25  ;;  %v1653_v13 = vsel %vm562_vm1, %v7558_v26, %v1643_v5  ;;  %v7659_v36 = vld [vmem:[%s8855_s3 + $0x13] ss:$0 sm:$0xff] }
 0x776   :  { %v6895_v42 = vpop.eup %6894  ;;  %6384 = vmatmul.mubr.msk.f32.gmra.mxu0 %vm192_vm0, %v1653_v13 }
 0x777   :  { %6386 = vmatprep.mubr.msk.f32.mxu0 %vm192_vm0, %v1654_v22  ;;  %v1893_v43 = vmul.f32 %v6895_v42, %v1829_v11  ;;  %v1902_v27 = vmul.f32 %v1894_v24, %v7645_v17 }
 0x778   :  { %v1647_v23 = vpop.permute.xlu1 %1646 }
 0x779   :  { %v1655_v38 = vsel %vm562_vm1, %v7562_v45, %v1647_v23  ;;  %v1901_v26 = vmul.f32 %v1893_v43, %v7645_v17  ;;  %v7667_v11 = vadd.f32 %v1902_v27, %v7659_v36 }
 0x77a   :  { %6387 = vmatmul.mubr.msk.f32.gmra.mxu0 %vm192_vm0, %v1655_v38 }
 0x77b   :  { %v7664_v47 = vadd.f32 %v1901_v26, %v7659_v36 }
 0x77d   :  { %6393 = vmatprep.mubr.msk.f32.mxu1 %vm192_vm0, %v7664_v47 }
 0x77e   :  { %v6897_v12 = vpop.eup %6896  ;;  %6394 = vmatmul.mubr.msk.f32.vlgmr.msra.gmra.mxu1 %vm192_vm0, %v7667_v11 }
 0x77f   :  { %v1896_v45 = vmul.f32 %v6897_v12, %v1832_v21  ;;  %v188_v21 = vld [vmem:[%s8854_s2 + $0x78] sm:$0xff] }
 0x781   :  { %v1904_v18 = vmul.f32 %v1896_v45, %v7645_v17 }
 0x782   :  { %v6899_v7 = vpop.eup %6898 }
 0x783   :  { %v1895_v14 = vmul.f32 %v6899_v7, %v7623_v19  ;;  %v7680_v49 = vadd.f32 %v1904_v18, %v7659_v36  ;;  %v189_v19 = vld [vmem:[%s8854_s2 + $0x80] sm:$0xff] }
 0x784   :  { %6407 = vmatprep.subr.mxu0 %v189_v19 }
 0x785   :  { %v1903_v50 = vmul.f32 %v1895_v14, %v7645_v17  ;;  %6408 = vmatpush3.msra.mxu0 %v189_v19 }
 0x786   :  { %6409 = vmatprep.subr.mxu0 %v188_v21 }
 0x787   :  { %v7677_v8 = vadd.f32 %v1903_v50, %v7659_v36  ;;  %6410 = vmatpush3.msra.mxu0 %v188_v21 }
 0x788   :  { %6411 = vmatprep.subr.mxu0 %v187_v15 }
 0x789   :  { %6396 = vmatprep.mubr.msk.f32.mxu1 %vm192_vm0, %v7677_v8  ;;  %6412 = vmatpush3.msra.mxu0 %v187_v15 }
 0x78a   :  { %6397 = vmatmul.mubr.msk.f32.gmra.mxu1 %vm192_vm0, %v7680_v49  ;;  %6413 = vmatprep.subr.mxu0 %v186_v40 }
 0x78b   :  { %6414 = vmatpush3.msra.mxu0 %v186_v40 }
 0x78c   :  { %6415 = vmatprep.subr.mxu0 %v185_v30 }
 0x78d   :  { %6416 = vmatpush3.msra.mxu0 %v185_v30 }
 0x78e   :  { %6417 = vmatprep.subr.mxu0 %v184_v44 }
 0x78f   :  { %6418 = vmatpush3.msra.mxu0 %v184_v44 }
 0x790   :  { %6419 = vmatprep.subr.mxu0 %v183_v52 }
 0x791   :  { %6420 = vmatpush3.msra.mxu0 %v183_v52  ;;  %v7742_v52 = vld [vmem:[%s8855_s3 + $0x11] ss:$0 sm:$0xff] }
 0x836   :  { %v6385_v48 = vpop.f32.mrf.mxu0 }
 0x837   :  { %v1773_v59 = vadd.f32 %v6385_v48, %v7607_v0 }
 0x838   :  { %v1767_v58 = vpop.f32.mrf.mxu0 }
 0x839   :  { %v1768_v60 = vadd.f32 %v1767_v58, %v7607_v0  ;;  %v1791_v1 = vadd.f32 %v1773_v59, %v7245_v3 }
 0x83a   :  { %v6388_v34 = vpop.f32.mrf.mxu0 }
 0x83b   :  { %v1811_v63 = vsel %vm192_vm0, %v1791_v1, 0.0  ;;  %v1790_v37 = vadd.f32 %v1768_v60, %v7247_v4  ;;  %v1783_v54 = vadd.f32 %v6388_v34, %v7607_v0 }
 0x83c   :  { %1812 = vadd.xlane.f32.xlu1 %v1811_v63  ;;  %v1777_v46 = vpop.f32.mrf.mxu0 }
 0x83d   :  { %v1778_v31 = vadd.f32 %v1777_v46, %v7607_v0  ;;  %v1808_v51 = vsel %vm192_vm0, %v1790_v37, 0.0  ;;  %v1793_v0 = vadd.f32 %v1783_v54, %v7253_v9 }
 0x83e   :  { %v6395_v39 = vpop.f32.mrf.mxu1  ;;  %1809 = vadd.xlane.f32.xlu0 %v1808_v51 }
 0x83f   :  { %v1792_v3 = vadd.f32 %v1778_v31, %v7255_v10  ;;  %v2014_v57 = vadd.f32 %v6395_v39, %v7720_v53  ;;  %v1817_v25 = vsel %vm192_vm0, %v1793_v0, 0.0 }
 0x840   :  { %v2008_v4 = vpop.f32.mrf.mxu1 }
 0x841   :  { %v2009_v29 = vadd.f32 %v2008_v4, %v7720_v53  ;;  %v1814_v33 = vsel %vm192_vm0, %v1792_v3, 0.0  ;;  %v2048_v20 = vmax.f32 %v2014_v57, 0.0 }
 0x842   :  { %1815 = vadd.xlane.f32.xlu0 %v1814_v33 }
 0x843   :  { %v2047_v6 = vmax.f32 %v2009_v29, 0.0 }
 0x845   :  { %6421 = vmatprep.mubr.msk.f32.mxu0 %vm2056_vm3, %v2047_v6 }
 0x846   :  { %6422 = vmatmul.mubr.msk.f32.vlgmr.msra.gmra.mxu0 %vm2056_vm3, %v2048_v20  ;;  %1818 = vadd.xlane.f32.xlu0 %v1817_v25 }
 0x84a   :  { %v6398_v10 = vpop.f32.mrf.mxu1 }
 0x84b   :  { %v2024_v2 = vadd.f32 %v6398_v10, %v7720_v53 }
 0x84c   :  { %v2018_v5 = vpop.f32.mrf.mxu1 }
 0x84d   :  { %v2019_v24 = vadd.f32 %v2018_v5, %v7720_v53  ;;  %v2050_v42 = vmax.f32 %v2024_v2, 0.0 }
 0x84f   :  { %v2049_v13 = vmax.f32 %v2019_v24, 0.0 }
 0x851   :  { %6424 = vmatprep.mubr.msk.f32.mxu0 %vm2056_vm3, %v2049_v13 }
 0x852   :  { %6425 = vmatmul.mubr.msk.f32.gmra.mxu0 %vm2056_vm3, %v2050_v42 }
 0x8c5   :  { %v1813_v9 = vpop.xlane.xlu1 %1812 }
 0x8c6   :  { %v1826_v22 = vmul.f32 0.0625, %v1813_v9 }
 0x8c7   :  { %v1810_v43 = vpop.xlane.xlu0 %1809 }
 0x8c8   :  { %v1834_v27 = vsub.f32 %v1791_v1, %v1826_v22  ;;  %v1825_v23 = vmul.f32 0.0625, %v1810_v43 }
 0x8ca   :  { %v1833_v38 = vsub.f32 %v1790_v37, %v1825_v23  ;;  %v1842_v26 = vmul.f32 %v1834_v27, %v1834_v27 }
 0x8cb   :  { %v1816_v12 = vpop.xlane.xlu0 %1815 }
 0x8cc   :  { %v1827_v45 = vmul.f32 0.0625, %v1816_v12  ;;  %v1860_v7 = vsel %vm192_vm0, %v1842_v26, 0.0  ;;  %v1841_v14 = vmul.f32 %v1833_v38, %v1833_v38 }
 0x8cd   :  { %1861 = vadd.xlane.f32.xlu0 %v1860_v7 }
 0x8ce   :  { %v1835_v18 = vsub.f32 %v1792_v3, %v1827_v45  ;;  %v1857_v50 = vsel %vm192_vm0, %v1841_v14, 0.0 }
 0x8cf   :  { %1858 = vadd.xlane.f32.xlu1 %v1857_v50  ;;  %v1819_v16 = vpop.xlane.xlu0 %1818 }
 0x8d0   :  { %v1828_v19 = vmul.f32 0.0625, %v1819_v16  ;;  %v1843_v21 = vmul.f32 %v1835_v18, %v1835_v18 }
 0x8d2   :  { %v1836_v15 = vsub.f32 %v1793_v0, %v1828_v19  ;;  %v1863_v40 = vsel %vm192_vm0, %v1843_v21, 0.0 }
 0x8d3   :  { %1864 = vadd.xlane.f32.xlu1 %v1863_v40 }
 0x8d4   :  { %v1844_v30 = vmul.f32 %v1836_v15, %v1836_v15 }
 0x8d6   :  { %v1866_v44 = vsel %vm192_vm0, %v1844_v30, 0.0 }
 0x8d7   :  { %1867 = vadd.xlane.f32.xlu0 %v1866_v44 }
 0x906   :  { %v6423_v48 = vpop.f32.mrf.mxu0 }
 0x907   :  { %v2153_v59 = vadd.f32 %v6423_v48, %v7742_v52 }
 0x908   :  { %v2147_v58 = vpop.f32.mrf.mxu0 }
 0x909   :  { %v2187_v60 = vadd.f32 %v2153_v59, %v7667_v11  ;;  %v2148_v1 = vadd.f32 %v2147_v58, %v7742_v52 }
 0x90b   :  { %v2199_v34 = vsel %vm192_vm0, %v2187_v60, 0.0  ;;  %v2186_v63 = vadd.f32 %v2148_v1, %v7664_v47 }
 0x90c   :  { %2200 = vadd.xlane.f32.xlu0 %v2199_v34 }
 0x90d   :  { %v2196_v37 = vsel %vm192_vm0, %v2186_v63, 0.0 }
 0x90e   :  { %2197 = vadd.xlane.f32.xlu1 %v2196_v37 }
 0x912   :  { %v6426_v46 = vpop.f32.mrf.mxu0 }
 0x913   :  { %v2163_v54 = vadd.f32 %v6426_v46, %v7742_v52 }
 0x914   :  { %v2157_v31 = vpop.f32.mrf.mxu0 }
 0x915   :  { %v2189_v51 = vadd.f32 %v2163_v54, %v7680_v49  ;;  %v2158_v39 = vadd.f32 %v2157_v31, %v7742_v52  ;;  %v2319_v31 = vld [vmem:[%s8854_s2 + $0xa8] sm:$0xff] }
 0x916   :  { %6449 = vmatprep.subr.mxu0 %v2319_v31 }
 0x917   :  { %v2205_v11 = vsel %vm192_vm0, %v2189_v51, 0.0  ;;  %v2188_v3 = vadd.f32 %v2158_v39, %v7677_v8  ;;  %6450 = vmatpush3.msra.mxu0 %v2319_v31  ;;  %v2318_v39 = vld [vmem:[%s8854_s2 + $0xa0] sm:$0xff] }
 0x918   :  { %2206 = vadd.xlane.f32.xlu0 %v2205_v11  ;;  %6451 = vmatprep.subr.mxu0 %v2318_v39  ;;  %v2316_v11 = vld [vmem:[%s8854_s2 + $0x90] sm:$0xff] }
 0x919   :  { %v2202_v57 = vsel %vm192_vm0, %v2188_v3, 0.0  ;;  %6452 = vmatpush3.msra.mxu0 %v2318_v39 }
 0x91a   :  { %2203 = vadd.xlane.f32.xlu1 %v2202_v57 }
 0x956   :  { %v1862_v47 = vpop.xlane.xlu0 %1861 }
 0x957   :  { %v1874_v4 = vmul.f32 0.0625, %v1862_v47 }
 0x958   :  { %v1859_v29 = vpop.xlane.xlu1 %1858 }
 0x959   :  { %v1882_v33 = vadd.f32 1e-05, %v1874_v4  ;;  %v1873_v0 = vmul.f32 0.0625, %v1859_v29 }
 0x95b   :  { %6900 = vrsqrt.f32 %v1882_v33  ;;  %v1881_v6 = vadd.f32 1e-05, %v1873_v0 }
 0x95c   :  { %v1865_v20 = vpop.xlane.xlu1 %1864 }
 0x95d   :  { %6902 = vrsqrt.f32 %v1881_v6  ;;  %v1875_v49 = vmul.f32 0.0625, %v1865_v20 }
 0x95f   :  { %v1883_v25 = vadd.f32 1e-05, %v1875_v49 }
 0x960   :  { %v1868_v10 = vpop.xlane.xlu0 %1867 }
 0x961   :  { %6904 = vrsqrt.f32 %v1883_v25  ;;  %v1876_v2 = vmul.f32 0.0625, %v1868_v10 }
 0x963   :  { %v1884_v5 = vadd.f32 1e-05, %v1876_v2 }
 0x965   :  { %6906 = vrsqrt.f32 %v1884_v5 }
 0x968   :  { %v6901_v8 = vpop.eup %6900 }
 0x969   :  { %v1898_v24 = vmul.f32 %v6901_v8, %v1834_v27 }
 0x96a   :  { %v6903_v13 = vpop.eup %6902 }
 0x96b   :  { %v1897_v42 = vmul.f32 %v6903_v13, %v1833_v38  ;;  %v1906_v9 = vmul.f32 %v1898_v24, %v7645_v17 }
 0x96d   :  { %v1905_v22 = vmul.f32 %v1897_v42, %v7645_v17  ;;  %v7762_v12 = vadd.f32 %v1906_v9, %v7659_v36 }
 0x96e   :  { %v6905_v43 = vpop.eup %6904 }
 0x96f   :  { %v7759_v23 = vadd.f32 %v1905_v22, %v7659_v36  ;;  %v1899_v26 = vmul.f32 %v6905_v43, %v1835_v18  ;;  %v7809_v22 = vld [vmem:[%s8855_s3 + $0x14] ss:$0 sm:$0xff] }
 0x971   :  { %6399 = vmatprep.mubr.msk.f32.mxu1 %vm192_vm0, %v7759_v23  ;;  %v1907_v45 = vmul.f32 %v1899_v26, %v7645_v17 }
 0x972   :  { %v6907_v27 = vpop.eup %6906  ;;  %6400 = vmatmul.mubr.msk.f32.gmra.mxu1 %vm192_vm0, %v7762_v12 }
 0x973   :  { %v7770_v38 = vadd.f32 %v1907_v45, %v7659_v36  ;;  %v1900_v7 = vmul.f32 %v6907_v27, %v1836_v15 }
 0x975   :  { %6402 = vmatprep.mubr.msk.f32.mxu1 %vm192_vm0, %v7770_v38  ;;  %v1908_v14 = vmul.f32 %v1900_v7, %v7645_v17 }
 0x977   :  { %v7776_v18 = vadd.f32 %v1908_v14, %v7659_v36 }
 0x979   :  { %6403 = vmatmul.mubr.msk.f32.gmra.mxu1 %vm192_vm0, %v7776_v18 }
 0x995   :  { %v2201_v50 = vpop.xlane.xlu0 %2200 }
 0x996   :  { %v2221_v16 = vmul.f32 0.0625, %v2201_v50 }
 0x997   :  { %v2198_v19 = vpop.xlane.xlu1 %2197 }
 0x998   :  { %v2229_v21 = vsub.f32 %v2187_v60, %v2221_v16  ;;  %v2220_v40 = vmul.f32 0.0625, %v2198_v19  ;;  %v7819_v19 = vld [vmem:[%s8855_s3 + $0x15] ss:$0 sm:$0xff] }
 0x99a   :  { %v2228_v30 = vsub.f32 %v2186_v63, %v2220_v40  ;;  %v2237_v44 = vmul.f32 %v2229_v21, %v2229_v21 }
 0x99c   :  { %v2247_v15 = vsel %vm192_vm0, %v2237_v44, 0.0  ;;  %v2236_v48 = vmul.f32 %v2228_v30, %v2228_v30 }
 0x99d   :  { %2248 = vadd.xlane.f32.xlu0 %v2247_v15 }
 0x99e   :  { %v2244_v59 = vsel %vm192_vm0, %v2236_v48, 0.0 }
 0x99f   :  { %2245 = vadd.xlane.f32.xlu1 %v2244_v59 }
 0x9a1   :  { %v2207_v17 = vpop.xlane.xlu0 %2206 }
 0x9a2   :  { %v2223_v36 = vmul.f32 0.0625, %v2207_v17 }
 0x9a3   :  { %v2204_v58 = vpop.xlane.xlu1 %2203 }
 0x9a4   :  { %v7782_v1 = vsub.f32 %v2189_v51, %v2223_v36  ;;  %v2222_v34 = vmul.f32 0.0625, %v2204_v58  ;;  %v2317_v51 = vld [vmem:[%s8854_s2 + $0x98] sm:$0xff] }
 0x9a5   :  { %6433 = vmatprep.subr.mxu1 %v2317_v51 }
 0x9a6   :  { %v7784_v37 = vsub.f32 %v2188_v3, %v2222_v34  ;;  %v2239_v60 = vmul.f32 %v7782_v1, %v7782_v1  ;;  %6434 = vmatpush3.msra.mxu1 %v2317_v51 }
 0x9a7   :  { %6435 = vmatprep.subr.mxu1 %v2316_v11 }
 0x9a8   :  { %v2253_v63 = vsel %vm192_vm0, %v2239_v60, 0.0  ;;  %v2238_v46 = vmul.f32 %v7784_v37, %v7784_v37  ;;  %6436 = vmatpush3.msra.mxu1 %v2316_v11 }
 0x9a9   :  { %2254 = vadd.xlane.f32.xlu0 %v2253_v63 }
 0x9aa   :  { %v2250_v54 = vsel %vm192_vm0, %v2238_v46, 0.0 }
 0x9ab   :  { %2251 = vadd.xlane.f32.xlu1 %v2250_v54 }
 0xa26   :  { %v2249_v3 = vpop.xlane.xlu0 %2248 }
 0xa27   :  { %v2269_v57 = vmul.f32 0.0625, %v2249_v3 }
 0xa28   :  { %v2246_v47 = vpop.xlane.xlu1 %2245 }
 0xa29   :  { %v2277_v4 = vadd.f32 1e-05, %v2269_v57  ;;  %v2268_v29 = vmul.f32 0.0625, %v2246_v47 }
 0xa2b   :  { %6908 = vrsqrt.f32 %v2277_v4  ;;  %v2276_v33 = vadd.f32 1e-05, %v2268_v29 }
 0xa2d   :  { %6910 = vrsqrt.f32 %v2276_v33 }
 0xa32   :  { %v6401_v0 = vpop.f32.mrf.mxu1  ;;  %v2255_v6 = vpop.xlane.xlu0 %2254 }
 0xa33   :  { %v2271_v20 = vmul.f32 0.0625, %v2255_v6  ;;  %v2034_v49 = vadd.f32 %v6401_v0, %v7720_v53 }
 0xa34   :  { %v2252_v25 = vpop.xlane.xlu1 %2251  ;;  %v2028_v10 = vpop.f32.mrf.mxu1 }
 0xa35   :  { %v2279_v2 = vadd.f32 1e-05, %v2271_v20  ;;  %v2270_v5 = vmul.f32 0.0625, %v2252_v25  ;;  %v2029_v8 = vadd.f32 %v2028_v10, %v7720_v53  ;;  %v2052_v9 = vmax.f32 %v2034_v49, 0.0  ;;  %v7891_v49 = vld [vmem:[%s8855_s3 + $0x17] ss:$0 sm:$0xff] }
 0xa37   :  { %6912 = vrsqrt.f32 %v2279_v2  ;;  %v2278_v24 = vadd.f32 1e-05, %v2270_v5  ;;  %v2051_v13 = vmax.f32 %v2029_v8, 0.0 }
 0xa38   :  { %v6909_v42 = vpop.eup %6908 }
 0xa39   :  { %v2293_v43 = vmul.f32 %v6909_v42, %v2229_v21  ;;  %6914 = vrsqrt.f32 %v2278_v24  ;;  %v6404_v26 = vpop.f32.mrf.mxu1  ;;  %6427 = vmatprep.mubr.msk.f32.mxu0 %vm2056_vm3, %v2051_v13 }
 0xa3a   :  { %v6911_v45 = vpop.eup %6910  ;;  %6428 = vmatmul.mubr.msk.f32.gmra.mxu0 %vm2056_vm3, %v2052_v9  ;;  %v2044_v27 = vadd.f32 %v6404_v26, %v7720_v53 }
 0xa3b   :  { %v2038_v7 = vpop.f32.mrf.mxu1  ;;  %v2292_v14 = vmul.f32 %v6911_v45, %v2228_v30  ;;  %v2301_v50 = vmul.f32 %v2293_v43, %v7809_v22 }
 0xa3c   :  { %v2039_v16 = vadd.f32 %v2038_v7, %v7720_v53  ;;  %v2054_v44 = vmax.f32 %v2044_v27, 0.0 }
 0xa3d   :  { %v2300_v21 = vmul.f32 %v2292_v14, %v7809_v22  ;;  %v7827_v30 = vadd.f32 %v2301_v50, %v7819_v19 }
 0xa3e   :  { %v2053_v40 = vmax.f32 %v2039_v16, 0.0 }
 0xa3f   :  { %v7823_v15 = vadd.f32 %v2300_v21, %v7819_v19 }
 0xa40   :  { %6430 = vmatprep.mubr.msk.f32.mxu0 %vm2056_vm3, %v2053_v40 }
 0xa41   :  { %6431 = vmatmul.mubr.msk.f32.gmra.mxu0 %vm2056_vm3, %v2054_v44  ;;  %6437 = vmatprep.mubr.msk.f32.mxu1 %vm192_vm0, %v7823_v15 }
 0xa42   :  { %6438 = vmatmul.mubr.msk.f32.vlgmr.msra.gmra.mxu1 %vm192_vm0, %v7827_v30  ;;  %6453 = vmatprep.mubr.msk.f32.mxu0 %vm192_vm0, %v7188_v28 }
 0xa44   :  { %v6913_v53 = vpop.eup %6912 }
 0xa45   :  { %6454 = vmatmul.mubr.msk.f32.vlgmr.msra.gmra.mxu0 %vm192_vm0, %v7197_v35  ;;  %v2295_v48 = vmul.f32 %v6913_v53, %v7782_v1 }
 0xa46   :  { %v6915_v59 = vpop.eup %6914  ;;  %6456 = vmatprep.mubr.msk.f32.mxu0 %vm192_vm0, %v7192_v32 }
 0xa47   :  { %v2294_v17 = vmul.f32 %v6915_v59, %v7784_v37  ;;  %v2303_v36 = vmul.f32 %v2295_v48, %v7809_v22 }
 0xa49   :  { %6457 = vmatmul.mubr.msk.f32.gmra.mxu0 %vm192_vm0, %v7206_v41  ;;  %v2302_v58 = vmul.f32 %v2294_v17, %v7809_v22  ;;  %v7852_v1 = vadd.f32 %v2303_v36, %v7819_v19 }
 0xa4a   :  { %6459 = vmatprep.mubr.msk.f32.mxu0 %vm192_vm0, %v7231_v56 }
 0xa4b   :  { %v7849_v34 = vadd.f32 %v2302_v58, %v7819_v19 }
 0xa4d   :  { %6440 = vmatprep.mubr.msk.f32.mxu1 %vm192_vm0, %v7849_v34  ;;  %6460 = vmatmul.mubr.msk.f32.gmra.mxu0 %vm192_vm0, %v7229_v55 }
 0xa4e   :  { %6441 = vmatmul.mubr.msk.f32.gmra.mxu1 %vm192_vm0, %v7852_v1  ;;  %6462 = vmatprep.mubr.msk.f32.mxu0 %vm192_vm0, %v7239_v62 }
 0xa51   :  { %6463 = vmatmul.mubr.msk.f32.gmra.mxu0 %vm192_vm0, %v7237_v61 }
 0xafa   :  { %v6429_v37 = vpop.f32.mrf.mxu0 }
 0xafb   :  { %v2173_v60 = vadd.f32 %v6429_v37, %v7742_v52 }
 0xafc   :  { %v2167_v63 = vpop.f32.mrf.mxu0 }
 0xafd   :  { %v7866_v46 = vadd.f32 %v2173_v60, %v7762_v12  ;;  %v2168_v54 = vadd.f32 %v2167_v63, %v7742_v52  ;;  %v7879_v12 = vld [vmem:[%s8855_s3 + $0x16] ss:$0 sm:$0xff] }
 0xaff   :  { %v7870_v31 = vadd.f32 %v2168_v54, %v7759_v23  ;;  %v2211_v51 = vsel %vm192_vm0, %v7866_v46, 0.0 }
 0xb00   :  { %2212 = vadd.xlane.f32.xlu1 %v2211_v51 }
 0xb01   :  { %v6432_v39 = vpop.f32.mrf.mxu0  ;;  %v2208_v57 = vsel %vm192_vm0, %v7870_v31, 0.0 }
 0xb02   :  { %v6439_v11 = vpop.f32.mrf.mxu1  ;;  %v2183_v44 = vadd.f32 %v6432_v39, %v7742_v52 }
 0xb03   :  { %v2177_v3 = vpop.f32.mrf.mxu0  ;;  %v2431_v7 = vadd.f32 %v6439_v11, %v7879_v12 }
 0xb04   :  { %v2178_v47 = vadd.f32 %v2177_v3, %v7742_v52  ;;  %2209 = vadd.xlane.f32.xlu1 %v2208_v57  ;;  %v2425_v23 = vpop.f32.mrf.mxu1  ;;  %v2193_v53 = vadd.f32 %v2183_v44, %v7776_v18 }
 0xb05   :  { %v2426_v4 = vadd.f32 %v2425_v23, %v7879_v12  ;;  %v6455_v29 = vpop.f32.mrf.mxu0  ;;  %v2677_v50 = vmul.f32 0.35355338, %v2431_v7 }
 0xb06   :  { %v7884_v33 = vadd.f32 %v2178_v47, %v7770_v38  ;;  %v2537_v13 = vadd.f32 %v6455_v29, %v7891_v49  ;;  %v2217_v48 = vsel %vm192_vm0, %v2193_v53, 0.0 }
 0xb07   :  { %v2676_v0 = vmul.f32 0.35355338, %v2426_v4  ;;  %v2531_v6 = vpop.f32.mrf.mxu0 }
 0xb08   :  { %v2214_v20 = vsel %vm192_vm0, %v7884_v33, 0.0  ;;  %v2532_v45 = vadd.f32 %v2531_v6, %v7891_v49 }
 0xb09   :  { %v6458_v25 = vpop.f32.mrf.mxu0  ;;  %2215 = vadd.xlane.f32.xlu1 %v2214_v20  ;;  %6489 = vmatprep.mubr.msk.f32.mxu0 %vm562_vm1, %v2676_v0 }
 0xb0a   :  { %v2547_v10 = vadd.f32 %v6458_v25, %v7891_v49 }
 0xb0b   :  { %v2541_v2 = vpop.f32.mrf.mxu0 }
 0xb0c   :  { %v2542_v38 = vadd.f32 %v2541_v2, %v7891_v49  ;;  %6481 = vmatprep.subr.msk.mxu0 %vm562_vm1, %v2547_v10  ;;  %2944 = vrot.lane.b32.xlu0 %v2547_v10, %s7068_s4 }
 0xb0d   :  { %v6461_v5 = vpop.f32.mrf.mxu0  ;;  %6482 = vmatpush3.xpose.msk.msra.mxu0 %vm562_vm1, %v2547_v10 }
 0xb0e   :  { %v7900_v8 = vadd.f32 %v6461_v5, %v7891_v49  ;;  %6483 = vmatprep.subr.msk.mxu0 %vm562_vm1, %v2542_v38  ;;  %v6442_v42 = vpop.f32.mrf.mxu1  ;;  %v2320_v5 = vld [vmem:[%s8854_s2 + $0xb0] sm:$0xff] }
 0xb0f   :  { %v2551_v24 = vpop.f32.mrf.mxu0  ;;  %v2441_v16 = vadd.f32 %v6442_v42, %v7879_v12 }
 0xb10   :  { %v7905_v9 = vadd.f32 %v2551_v24, %v7891_v49  ;;  %v2435_v27 = vpop.f32.mrf.mxu1 }
 0xb11   :  { %v6464_v43 = vpop.f32.mrf.mxu0  ;;  %6484 = vmatpush3.xpose.msk.msra.mxu0 %vm562_vm1, %v2542_v38  ;;  %v2436_v14 = vadd.f32 %v2435_v27, %v7879_v12  ;;  %v2679_v40 = vmul.f32 0.35355338, %v2441_v16 }
 0xb12   :  { %v7909_v26 = vadd.f32 %v6464_v43, %v7891_v49  ;;  %6485 = vmatprep.subr.msk.mxu0 %vm562_vm1, %v2537_v13 }
 0xb13   :  { %v2678_v21 = vmul.f32 0.35355338, %v2436_v14  ;;  %v7969_v24 = vpop.f32.mrf.mxu0 }
 0xb15   :  { %6486 = vmatpush3.xpose.msk.msra.mxu0 %vm562_vm1, %v2537_v13 }
 0xb16   :  { %6487 = vmatprep.subr.msk.mxu0 %vm562_vm1, %v2532_v45 }
 0xb19   :  { %6488 = vmatpush3.xpose.msk.msra.mxu0 %vm562_vm1, %v2532_v45 }
 0xb1a   :  { %2940 = vrot.lane.b32.xlu1 %v2537_v13, %s7068_s4 }
 0xb1c   :  { %6490 = vmatmul.mubr.msk.f32.vlgmr.msra.gmra.mxu0 %vm562_vm1, %v2677_v50 }
 0xb1d   :  { %6492 = vmatprep.mubr.msk.f32.mxu0 %vm562_vm1, %v2678_v21 }
 0xb1e   :  { %2942 = vrot.lane.b32.xlu1 %v2542_v38, %s7068_s4  ;;  %v2321_v38 = vld [vmem:[%s8854_s2 + $0xb8] sm:$0xff] }
 0xb1f   :  { %6465 = vmatprep.subr.mxu1 %v2321_v38 }
 0xb20   :  { %6493 = vmatmul.mubr.msk.f32.gmra.mxu0 %vm562_vm1, %v2679_v40  ;;  %6466 = vmatpush3.msra.mxu1 %v2321_v38 }
 0xb21   :  { %6467 = vmatprep.subr.mxu1 %v2320_v5 }
 0xb22   :  { %2938 = vrot.lane.b32.xlu1 %v2532_v45, %s7068_s4  ;;  %6468 = vmatpush3.msra.mxu1 %v2320_v5 }
 0xb26   :  { %2930 = vrot.lane.b32.xlu1 %v2676_v0, %s7068_s4 }
 0xb2a   :  { %2932 = vrot.lane.b32.xlu1 %v2677_v50, %s7068_s4 }
 0xb2b   :  { %2218 = vadd.xlane.f32.xlu0 %v2217_v48 }
 0xb2e   :  { %2934 = vrot.lane.b32.xlu1 %v2678_v21, %s7068_s4 }
 0xb32   :  { %2936 = vrot.lane.b32.xlu1 %v2679_v40, %s7068_s4 }
 0xb7e   :  { %v2945_v59 = vpop.permute.xlu0 %2944 }
 0xb7f   :  { %6509 = vmatprep.subr.msk.mxu0 %vm562_vm1, %v2945_v59 }
 0xb80   :  { %6510 = vmatpush3.xpose.msk.msra.mxu0 %vm562_vm1, %v2945_v59 }
 0xb89   :  { %v2213_v52 = vpop.xlane.xlu1 %2212 }
 0xb8a   :  { %v2225_v17 = vmul.f32 0.0625, %v2213_v52 }
 0xb8c   :  { %v7935_v18 = vsub.f32 %v7866_v46, %v2225_v17 }
 0xb8d   :  { %v2210_v36 = vpop.xlane.xlu1 %2209 }
 0xb8e   :  { %v2224_v58 = vmul.f32 0.0625, %v2210_v36  ;;  %v2241_v37 = vmul.f32 %v7935_v18, %v7935_v18 }
 0xb90   :  { %v7940_v60 = vsub.f32 %v7870_v31, %v2224_v58  ;;  %v2259_v63 = vsel %vm192_vm0, %v2241_v37, 0.0 }
 0xb91   :  { %2260 = vadd.xlane.f32.xlu0 %v2259_v63 }
 0xb92   :  { %v2216_v54 = vpop.xlane.xlu1 %2215  ;;  %v2240_v51 = vmul.f32 %v7940_v60, %v7940_v60 }
 0xb93   :  { %v2226_v39 = vmul.f32 0.0625, %v2216_v54 }
 0xb94   :  { %v2256_v11 = vsel %vm192_vm0, %v2240_v51, 0.0 }
 0xb95   :  { %v7947_v46 = vsub.f32 %v7884_v33, %v2226_v39  ;;  %2257 = vadd.xlane.f32.xlu1 %v2256_v11 }
 0xb96   :  { %v2941_v3 = vpop.permute.xlu1 %2940 }
 0xb97   :  { %v2242_v57 = vmul.f32 %v7947_v46, %v7947_v46 }
 0xb99   :  { %v2262_v31 = vsel %vm192_vm0, %v2242_v57, 0.0 }
 0xb9a   :  { %v2943_v47 = vpop.permute.xlu1 %2942  ;;  %2263 = vadd.xlane.f32.xlu0 %v2262_v31 }
 0xb9b   :  { %6511 = vmatprep.subr.msk.mxu0 %vm562_vm1, %v2943_v47 }
 0xb9c   :  { %6512 = vmatpush3.xpose.msk.msra.mxu0 %vm562_vm1, %v2943_v47 }
 0xb9d   :  { %6513 = vmatprep.subr.msk.mxu0 %vm562_vm1, %v2941_v3 }
 0xb9e   :  { %v2939_v23 = vpop.permute.xlu1 %2938 }
 0xba0   :  { %6514 = vmatpush3.xpose.msk.msra.mxu0 %vm562_vm1, %v2941_v3 }
 0xba1   :  { %6515 = vmatprep.subr.msk.mxu0 %vm562_vm1, %v2939_v23 }
 0xba2   :  { %v2931_v4 = vpop.permute.xlu1 %2930 }
 0xba3   :  { %6517 = vmatprep.mubr.msk.f32.mxu0 %vm562_vm1, %v2931_v4 }
 0xba4   :  { %6516 = vmatpush3.xpose.msk.msra.mxu0 %vm562_vm1, %v2939_v23 }
 0xba6   :  { %v2933_v29 = vpop.permute.xlu1 %2932 }
 0xba7   :  { %6518 = vmatmul.mubr.msk.f32.vlgmr.msra.gmra.mxu0 %vm562_vm1, %v2933_v29 }
 0xbaa   :  { %v2935_v33 = vpop.permute.xlu1 %2934 }
 0xbab   :  { %6520 = vmatprep.mubr.msk.f32.mxu0 %vm562_vm1, %v2935_v33 }
 0xbae   :  { %v2937_v0 = vpop.permute.xlu1 %2936 }
 0xbaf   :  { %6521 = vmatmul.mubr.msk.f32.gmra.mxu0 %vm562_vm1, %v2937_v0 }
 0xbb4   :  { %v2219_v6 = vpop.xlane.xlu0 %2218 }
 0xbb5   :  { %v2227_v20 = vmul.f32 0.0625, %v2219_v6 }
 0xbb7   :  { %v2235_v25 = vsub.f32 %v2193_v53, %v2227_v20 }
 0xbb9   :  { %v2243_v10 = vmul.f32 %v2235_v25, %v2235_v25 }
 0xbbb   :  { %v2265_v2 = vsel %vm192_vm0, %v2243_v10, 0.0 }
 0xbbc   :  { %2266 = vadd.xlane.f32.xlu0 %v2265_v2 }
 0xbdc   :  { %v6491_v13 = vpop.f32.mrf.mxu0 }
 0xbdd   :  { %v2792_v42 = vsel %vm672_vm2, %v6491_v13, -inf }
 0xbde   :  { %v7972_v43 = vpop.f32.mrf.mxu0  ;;  %2793 = vmax.xlane.f32.xlu0 %v2792_v42 }
 0xbdf   :  { %v2789_v45 = vsel %vm672_vm2, %v7972_v43, -inf }
 0xbe0   :  { %v7976_v27 = vpop.f32.mrf.mxu0 }
 0xbe1   :  { %v2798_v7 = vsel %vm672_vm2, %v7976_v27, -inf }
 0xbe2   :  { %2790 = vmax.xlane.f32.xlu0 %v2789_v45  ;;  %v7980_v14 = vpop.f32.mrf.mxu0 }
 0xbe3   :  { %v2795_v50 = vsel %vm672_vm2, %v7980_v14, -inf }
 0xbe6   :  { %2799 = vmax.xlane.f32.xlu0 %v2798_v7 }
 0xbea   :  { %2796 = vmax.xlane.f32.xlu0 %v2795_v50 }
 0xc1a   :  { %v2261_v16 = vpop.xlane.xlu0 %2260 }
 0xc1b   :  { %v2273_v21 = vmul.f32 0.0625, %v2261_v16 }
 0xc1d   :  { %v2281_v40 = vadd.f32 1e-05, %v2273_v21 }
 0xc1e   :  { %v2258_v44 = vpop.xlane.xlu1 %2257 }
 0xc1f   :  { %6916 = vrsqrt.f32 %v2281_v40  ;;  %v2272_v53 = vmul.f32 0.0625, %v2258_v44 }
 0xc21   :  { %v2280_v48 = vadd.f32 1e-05, %v2272_v53 }
 0xc23   :  { %6918 = vrsqrt.f32 %v2280_v48  ;;  %v2264_v59 = vpop.xlane.xlu0 %2263 }
 0xc24   :  { %v2274_v52 = vmul.f32 0.0625, %v2264_v59 }
 0xc26   :  { %v2282_v17 = vadd.f32 1e-05, %v2274_v52 }
 0xc28   :  { %6920 = vrsqrt.f32 %v2282_v17 }
 0xc2c   :  { %v6917_v36 = vpop.eup %6916 }
 0xc2d   :  { %v2297_v58 = vmul.f32 %v6917_v36, %v7935_v18 }
 0xc2f   :  { %v2305_v54 = vmul.f32 %v2297_v58, %v7809_v22 }
 0xc30   :  { %v6919_v37 = vpop.eup %6918 }
 0xc31   :  { %v2296_v63 = vmul.f32 %v6919_v37, %v7940_v60  ;;  %v7992_v3 = vadd.f32 %v2305_v54, %v7819_v19 }
 0xc33   :  { %v2304_v51 = vmul.f32 %v2296_v63, %v7809_v22 }
 0xc35   :  { %v6921_v39 = vpop.eup %6920  ;;  %v7989_v11 = vadd.f32 %v2304_v51, %v7819_v19 }
 0xc36   :  { %v2298_v57 = vmul.f32 %v6921_v39, %v7947_v46 }
 0xc37   :  { %6443 = vmatprep.mubr.msk.f32.mxu1 %vm192_vm0, %v7989_v11 }
 0xc38   :  { %6444 = vmatmul.mubr.msk.f32.gmra.mxu1 %vm192_vm0, %v7992_v3  ;;  %v2306_v18 = vmul.f32 %v2298_v57, %v7809_v22 }
 0xc3a   :  { %v8001_v60 = vadd.f32 %v2306_v18, %v7819_v19 }
 0xc3c   :  { %6446 = vmatprep.mubr.msk.f32.mxu1 %vm192_vm0, %v8001_v60 }
 0xc45   :  { %v2267_v31 = vpop.xlane.xlu0 %2266 }
 0xc46   :  { %v2275_v47 = vmul.f32 0.0625, %v2267_v31 }
 0xc48   :  { %v2283_v23 = vadd.f32 1e-05, %v2275_v47 }
 0xc4a   :  { %6922 = vrsqrt.f32 %v2283_v23 }
 0xc57   :  { %v6923_v4 = vpop.eup %6922 }
 0xc58   :  { %v2299_v46 = vmul.f32 %v6923_v4, %v2235_v25 }
 0xc5a   :  { %v2307_v29 = vmul.f32 %v2299_v46, %v7809_v22 }
 0xc5c   :  { %v8007_v33 = vadd.f32 %v2307_v29, %v7819_v19 }
 0xc5e   :  { %6447 = vmatmul.mubr.msk.f32.gmra.mxu1 %vm192_vm0, %v8007_v33 }
 0xc5f   :  { %6469 = vmatprep.mubr.msk.f32.mxu1 %vm192_vm0, %v7188_v28 }
 0xc62   :  { %6470 = vmatmul.mubr.msk.f32.vlgmr.msra.gmra.mxu1 %vm192_vm0, %v7197_v35 }
 0xc63   :  { %6472 = vmatprep.mubr.msk.f32.mxu1 %vm192_vm0, %v7192_v32 }
 0xc66   :  { %6473 = vmatmul.mubr.msk.f32.gmra.mxu1 %vm192_vm0, %v7206_v41 }
 0xc67   :  { %6475 = vmatprep.mubr.msk.f32.mxu1 %vm192_vm0, %v7231_v56  ;;  %v6519_v22 = vpop.f32.mrf.mxu0  ;;  %v2794_v19 = vpop.xlane.xlu0 %2793 }
 0xc68   :  { %v2802_v0 = vsub.f32 %v6491_v13, %v2794_v19  ;;  %v3050_v5 = vsel %vm672_vm2, %v6519_v22, -inf }
 0xc69   :  { %v3028_v6 = vpop.f32.mrf.mxu0 }
 0xc6a   :  { %v2807_v20 = vmul.f32 1.442695, %v2802_v0  ;;  %6476 = vmatmul.mubr.msk.f32.gmra.mxu1 %vm192_vm0, %v7229_v55  ;;  %v3047_v25 = vsel %vm672_vm2, %v3028_v6, -inf }
 0xc6b   :  { %3048 = vmax.xlane.f32.xlu0 %v3047_v25  ;;  %6478 = vmatprep.mubr.msk.f32.mxu1 %vm192_vm0, %v7239_v62  ;;  %v2791_v10 = vpop.xlane.xlu0 %2790 }
 0xc6c   :  { %6924 = vpow2.f32 %v2807_v20  ;;  %v2801_v2 = vsub.f32 %v7972_v43, %v2791_v10 }
 0xc6e   :  { %v2805_v38 = vmul.f32 1.442695, %v2801_v2  ;;  %6479 = vmatmul.mubr.msk.f32.gmra.mxu1 %vm192_vm0, %v7237_v61 }
 0xc6f   :  { %v6522_v13 = vpop.f32.mrf.mxu0  ;;  %3051 = vmax.xlane.f32.xlu0 %v3050_v5  ;;  %v2800_v42 = vpop.xlane.xlu0 %2799 }
 0xc70   :  { %6926 = vpow2.f32 %v2805_v38  ;;  %v2804_v45 = vsub.f32 %v7976_v27, %v2800_v42  ;;  %v3056_v21 = vsel %vm672_vm2, %v6522_v13, -inf }
 0xc71   :  { %v3038_v7 = vpop.f32.mrf.mxu0 }
 0xc72   :  { %v2811_v50 = vmul.f32 1.442695, %v2804_v45  ;;  %v3053_v16 = vsel %vm672_vm2, %v3038_v7, -inf }
 0xc73   :  { %3054 = vmax.xlane.f32.xlu1 %v3053_v16  ;;  %3057 = vmax.xlane.f32.xlu0 %v3056_v21  ;;  %v2797_v43 = vpop.xlane.xlu0 %2796 }
 0xc74   :  { %6928 = vpow2.f32 %v2811_v50  ;;  %v2803_v40 = vsub.f32 %v7980_v14, %v2797_v43 }
 0xc76   :  { %v2809_v44 = vmul.f32 1.442695, %v2803_v40  ;;  %v2570_v40 = vld [vmem:[%s8855_s3 + $0x20] ss:$0 sm:$0xff] }
 0xc78   :  { %6930 = vpow2.f32 %v2809_v44 }
 0xc79   :  { %v8034_v53 = vpop.eup %6924 }
 0xc7a   :  { %v2816_v48 = vsel %vm672_vm2, %v8034_v53, 0.0 }
 0xc7b   :  { %2817 = vadd.xlane.f32.xlu0 %v2816_v48 }
 0xc7d   :  { %v6927_v27 = vpop.eup %6926 }
 0xc7e   :  { %v2813_v59 = vsel %vm672_vm2, %v6927_v27, 0.0 }
 0xc7f   :  { %2814 = vadd.xlane.f32.xlu1 %v2813_v59 }
 0xc81   :  { %v8039_v52 = vpop.eup %6928 }
 0xc82   :  { %v2822_v17 = vsel %vm672_vm2, %v8039_v52, 0.0 }
 0xc83   :  { %2823 = vadd.xlane.f32.xlu0 %v2822_v17 }
 0xc85   :  { %v8043_v36 = vpop.eup %6930 }
 0xc86   :  { %v2819_v14 = vsel %vm672_vm2, %v8043_v36, 0.0 }
 0xc87   :  { %2820 = vadd.xlane.f32.xlu1 %v2819_v14 }
 0xcf4   :  { %v3049_v58 = vpop.xlane.xlu0 %3048 }
 0xcf5   :  { %v3059_v37 = vsub.f32 %v3028_v6, %v3049_v58 }
 0xcf7   :  { %v3063_v63 = vmul.f32 1.442695, %v3059_v37 }
 0xcf8   :  { %v3052_v54 = vpop.xlane.xlu0 %3051  ;;  %v8063_v5 = vpop.f32.mrf.mxu1 }
 0xcf9   :  { %6932 = vpow2.f32 %v3063_v63  ;;  %v3060_v51 = vsub.f32 %v6519_v22, %v3052_v54 }
 0xcfb   :  { %v3065_v39 = vmul.f32 1.442695, %v3060_v51 }
 0xcfc   :  { %v3055_v57 = vpop.xlane.xlu1 %3054  ;;  %v3058_v18 = vpop.xlane.xlu0 %3057 }
 0xcfd   :  { %6934 = vpow2.f32 %v3065_v39  ;;  %v3061_v31 = vsub.f32 %v3038_v7, %v3055_v57  ;;  %v3062_v47 = vsub.f32 %v6522_v13, %v3058_v18  ;;  %v8066_v13 = vpop.f32.mrf.mxu1 }
 0xcff   :  { %v3067_v23 = vmul.f32 1.442695, %v3061_v31  ;;  %v3069_v4 = vmul.f32 1.442695, %v3062_v47 }
 0xd01   :  { %6936 = vpow2.f32 %v3067_v23 }
 0xd02   :  { %6938 = vpow2.f32 %v3069_v4 }
 0xd04   :  { %v2818_v42 = vpop.xlane.xlu0 %2817 }
 0xd06   :  { %v8047_v46 = vpop.eup %6932 }
 0xd07   :  { %v3071_v29 = vsel %vm672_vm2, %v8047_v46, 0.0 }
 0xd08   :  { %v2815_v19 = vpop.xlane.xlu1 %2814  ;;  %3072 = vadd.xlane.f32.xlu1 %v3071_v29 }
 0xd09   :  { %6940 = vrcp.f32 %v2815_v19 }
 0xd0a   :  { %v8051_v0 = vpop.eup %6934  ;;  %6942 = vrcp.f32 %v2818_v42 }
 0xd0b   :  { %v3074_v22 = vsel %vm672_vm2, %v8051_v0, 0.0 }
 0xd0c   :  { %3075 = vadd.xlane.f32.xlu0 %v3074_v22  ;;  %v2824_v16 = vpop.xlane.xlu0 %2823 }
 0xd0e   :  { %v8055_v6 = vpop.eup %6936 }
 0xd0f   :  { %v8057_v20 = vpop.eup %6938  ;;  %v3077_v25 = vsel %vm672_vm2, %v8055_v6, 0.0 }
 0xd10   :  { %3078 = vadd.xlane.f32.xlu1 %v3077_v25  ;;  %v3080_v10 = vsel %vm672_vm2, %v8057_v20, 0.0  ;;  %v2821_v45 = vpop.xlane.xlu1 %2820 }
 0xd11   :  { %3081 = vadd.xlane.f32.xlu0 %v3080_v10  ;;  %6944 = vrcp.f32 %v2821_v45 }
 0xd12   :  { %6946 = vrcp.f32 %v2824_v16 }
 0xd16   :  { %v6941_v2 = vpop.eup %6940 }
 0xd17   :  { %v2829_v38 = vmul.f32 %v6941_v2, %v6927_v27  ;;  %v6943_v37 = vpop.eup %6942 }
 0xd18   :  { %v2830_v57 = vmul.f32 %v6943_v37, %v8034_v53 }
 0xd19   :  { %6503 = vmatprep.mubr.msk.f32.mxu1 %vm672_vm2, %v2829_v38 }
 0xd1e   :  { %v8068_v7 = vpop.f32.mrf.mxu1  ;;  %v6945_v54 = vpop.eup %6944 }
 0xd1f   :  { %v6947_v31 = vpop.eup %6946  ;;  %v2831_v23 = vmul.f32 %v6945_v54, %v8043_v36 }
 0xd20   :  { %v8070_v50 = vpop.f32.mrf.mxu1  ;;  %v2832_v53 = vmul.f32 %v6947_v31, %v8039_v52 }
 0xd22   :  { %v6471_v21 = vpop.f32.mrf.mxu1 }
 0xd23   :  { %v2643_v14 = vadd.f32 %v6471_v21, %v2570_v40 }
 0xd24   :  { %v2637_v43 = vpop.f32.mrf.mxu1 }
 0xd25   :  { %v2638_v63 = vadd.f32 %v2637_v43, %v2570_v40 }
 0xd26   :  { %v6474_v44 = vpop.f32.mrf.mxu1 }
 0xd27   :  { %v2653_v48 = vadd.f32 %v6474_v44, %v2570_v40 }
 0xd28   :  { %v2647_v27 = vpop.f32.mrf.mxu1 }
 0xd29   :  { %v2648_v59 = vadd.f32 %v2647_v27, %v2570_v40  ;;  %6495 = vmatprep.subr.mxu1 %v2653_v48  ;;  %3101 = vrot.lane.b32.xlu1 %v2653_v48, %s7068_s4 }
 0xd2a   :  { %v6477_v17 = vpop.f32.mrf.mxu1  ;;  %6496 = vmatpush3.msra.mxu1 %v2653_v48 }
 0xd2b   :  { %6497 = vmatprep.subr.mxu1 %v2648_v59  ;;  %3099 = vrot.lane.b32.xlu0 %v2648_v59, %s7068_s4  ;;  %v8088_v4 = vadd.f32 %v6477_v17, %v2570_v40 }
 0xd2c   :  { %v2657_v58 = vpop.f32.mrf.mxu1  ;;  %6498 = vmatpush3.msra.mxu1 %v2648_v59 }
 0xd2d   :  { %6499 = vmatprep.subr.mxu1 %v2643_v14  ;;  %3097 = vrot.lane.b32.xlu1 %v2643_v14, %s7068_s4  ;;  %v8094_v29 = vadd.f32 %v2657_v58, %v2570_v40 }
 0xd2e   :  { %v6480_v51 = vpop.f32.mrf.mxu1  ;;  %6500 = vmatpush3.msra.mxu1 %v2643_v14 }
 0xd2f   :  { %v8078_v39 = vadd.f32 %v6480_v51, %v2570_v40  ;;  %6501 = vmatprep.subr.mxu1 %v2638_v63 }
 0xd30   :  { %v2667_v18 = vpop.f32.mrf.mxu1  ;;  %6502 = vmatpush3.msra.mxu1 %v2638_v63 }
 0xd31   :  { %v8081_v47 = vadd.f32 %v2667_v18, %v2570_v40  ;;  %6551 = vmatprep.subr.mxu0 %v8078_v39  ;;  %3095 = vrot.lane.b32.xlu1 %v2638_v63, %s7068_s4  ;;  %v2446_v40 = vadd.f32 %v8066_v13, %v7879_v12 }
 0xd32   :  { %6504 = vmatmul.mubr.msk.f32.vlgmr.msra.gmra.mxu1 %vm672_vm2, %v2830_v57  ;;  %6552 = vmatpush3.msra.mxu0 %v8078_v39 }
 0xd33   :  { %6506 = vmatprep.mubr.msk.f32.mxu1 %vm672_vm2, %v2831_v23  ;;  %6553 = vmatprep.subr.mxu0 %v8081_v47  ;;  %v8120_v13 = vmul.f32 0.35355338, %v2446_v40 }
 0xd34   :  { %6554 = vmatpush3.msra.mxu0 %v8081_v47 }
 0xd35   :  { %6555 = vmatprep.subr.mxu0 %v8088_v4 }
 0xd36   :  { %6507 = vmatmul.mubr.msk.f32.gmra.mxu1 %vm672_vm2, %v2832_v53  ;;  %6556 = vmatpush3.msra.mxu0 %v8088_v4 }
 0xd37   :  { %6557 = vmatprep.subr.mxu0 %v8094_v29 }
 0xd38   :  { %6558 = vmatpush3.msra.mxu0 %v8094_v29 }
 0xd91   :  { %v3073_v36 = vpop.xlane.xlu1 %3072 }
 0xd92   :  { %6948 = vrcp.f32 %v3073_v36 }
 0xd95   :  { %v3076_v19 = vpop.xlane.xlu0 %3075 }
 0xd96   :  { %6950 = vrcp.f32 %v3076_v19 }
 0xd99   :  { %v3079_v22 = vpop.xlane.xlu1 %3078 }
 0xd9a   :  { %6952 = vrcp.f32 %v3079_v22  ;;  %v3082_v25 = vpop.xlane.xlu0 %3081 }
 0xd9b   :  { %6954 = vrcp.f32 %v3082_v25 }
 0xd9d   :  { %v3102_v52 = vpop.permute.xlu1 %3101 }
 0xd9e   :  { %6523 = vmatprep.subr.mxu1 %v3102_v52  ;;  %v3100_v2 = vpop.permute.xlu0 %3099 }
 0xd9f   :  { %v6949_v10 = vpop.eup %6948  ;;  %6524 = vmatpush3.msra.mxu1 %v3102_v52 }
 0xda0   :  { %6525 = vmatprep.subr.mxu1 %v3100_v2  ;;  %v3087_v38 = vmul.f32 %v6949_v10, %v8047_v46  ;;  %v8108_v46 = vadd.f32 %v7969_v24, %v7891_v49  ;;  %v2451_v49 = vadd.f32 %v8063_v5, %v7879_v12  ;;  %v2456_v24 = vadd.f32 %v8070_v50, %v7879_v12 }
 0xda1   :  { %v3098_v42 = vpop.permute.xlu1 %3097  ;;  %6526 = vmatpush3.msra.mxu1 %v3100_v2 }
 0xda2   :  { %6527 = vmatprep.subr.mxu1 %v3098_v42  ;;  %6531 = vmatprep.mubr.msk.f32.mxu1 %vm672_vm2, %v3087_v38  ;;  %v3226_v27 = vmul.f32 0.35355338, %v2456_v24 }
 0xda3   :  { %v6951_v45 = vpop.eup %6950  ;;  %6528 = vmatpush3.msra.mxu1 %v3098_v42 }
 0xda4   :  { %v3088_v21 = vmul.f32 %v6951_v45, %v8051_v0 }
 0xda5   :  { %v3096_v16 = vpop.permute.xlu1 %3095 }
 0xda6   :  { %6529 = vmatprep.subr.mxu1 %v3096_v16 }
 0xda7   :  { %v6953_v43 = vpop.eup %6952  ;;  %6530 = vmatpush3.msra.mxu1 %v3096_v16 }
 0xda8   :  { %v6955_v44 = vpop.eup %6954  ;;  %6532 = vmatmul.mubr.msk.f32.vlgmr.msra.gmra.mxu1 %vm672_vm2, %v3088_v21  ;;  %6537 = vmatprep.subr.msk.mxu1 %vm562_vm1, %v7909_v26  ;;  %v3089_v48 = vmul.f32 %v6953_v43, %v8055_v6  ;;  %v3225_v6 = vmul.f32 0.35355338, %v2451_v49 }
 0xda9   :  { %6538 = vmatpush3.xpose.msk.msra.mxu1 %vm562_vm1, %v7909_v26  ;;  %v3090_v0 = vmul.f32 %v6955_v44, %v8057_v20  ;;  %v2461_v20 = vadd.f32 %v8068_v7, %v7879_v12 }
 0xdaa   :  { %6534 = vmatprep.mubr.msk.f32.mxu1 %vm672_vm2, %v3089_v48  ;;  %6539 = vmatprep.subr.msk.mxu1 %vm562_vm1, %v8108_v46 }
 0xdab   :  { %v3227_v59 = vmul.f32 0.35355338, %v2461_v20 }
 0xdac   :  { %6535 = vmatmul.mubr.msk.f32.gmra.mxu1 %vm672_vm2, %v3090_v0 }
 0xdad   :  { %6540 = vmatpush3.xpose.msk.msra.mxu1 %vm562_vm1, %v8108_v46  ;;  %6545 = vmatprep.mubr.msk.f32.mxu1 %vm562_vm1, %v8120_v13 }
 0xdae   :  { %6541 = vmatprep.subr.msk.mxu1 %vm562_vm1, %v7900_v8 }
 0xdb1   :  { %6542 = vmatpush3.xpose.msk.msra.mxu1 %vm562_vm1, %v7900_v8 }
 0xdb2   :  { %6543 = vmatprep.subr.msk.mxu1 %vm562_vm1, %v7905_v9 }
 0xdb5   :  { %6544 = vmatpush3.xpose.msk.msra.mxu1 %vm562_vm1, %v7905_v9 }
 0xdb8   :  { %6546 = vmatmul.mubr.msk.f32.vlgmr.msra.gmra.mxu1 %vm562_vm1, %v3225_v6 }
 0xdb9   :  { %6548 = vmatprep.mubr.msk.f32.mxu1 %vm562_vm1, %v3226_v27 }
 0xdbc   :  { %6549 = vmatmul.mubr.msk.f32.gmra.mxu1 %vm562_vm1, %v3227_v59 }
 0xdf2   :  { %v8144_v5 = vpop.f32.mrf.mxu1 }
 0xdf4   :  { %v8146_v17 = vpop.f32.mrf.mxu1 }
 0xdf6   :  { %v8148_v50 = vpop.f32.mrf.mxu1 }
 0xdf8   :  { %v8150_v14 = vpop.f32.mrf.mxu1 }
 0xe68   :  { %v8152_v58 = vpop.f32.mrf.mxu1 }
 0xe6a   :  { %v8154_v37 = vpop.f32.mrf.mxu1 }
 0xe6c   :  { %v8156_v12 = vpop.f32.mrf.mxu1 }
 0xe6e   :  { %v8158_v7 = vpop.f32.mrf.mxu1 }
 0xe78   :  { %v6547_v63 = vpop.f32.mrf.mxu1 }
 0xe79   :  { %v3340_v54 = vsel %vm672_vm2, %v6547_v63, -inf }
 0xe7a   :  { %3341 = vmax.xlane.f32.xlu1 %v3340_v54  ;;  %v3318_v51 = vpop.f32.mrf.mxu1 }
 0xe7b   :  { %v3337_v57 = vsel %vm672_vm2, %v3318_v51, -inf }
 0xe7c   :  { %3338 = vmax.xlane.f32.xlu0 %v3337_v57  ;;  %v6550_v18 = vpop.f32.mrf.mxu1 }
 0xe7d   :  { %v3346_v53 = vsel %vm672_vm2, %v6550_v18, -inf }
 0xe7e   :  { %v3328_v31 = vpop.f32.mrf.mxu1 }
 0xe7f   :  { %v3343_v23 = vsel %vm672_vm2, %v3328_v31, -inf }
 0xe80   :  { %3344 = vmax.xlane.f32.xlu0 %v3343_v23 }
 0xe84   :  { %3347 = vmax.xlane.f32.xlu0 %v3346_v53 }
 0xe8b   :  { %3492 = vrot.lane.b32.xlu1 %v7909_v26, %s7068_s4 }
 0xe8f   :  { %3488 = vrot.lane.b32.xlu1 %v7900_v8, %s7068_s4 }
 0xf03   :  { %v3342_v36 = vpop.xlane.xlu1 %3341 }
 0xf04   :  { %v3350_v19 = vsub.f32 %v6547_v63, %v3342_v36 }
 0xf05   :  { %v3339_v22 = vpop.xlane.xlu0 %3338 }
 0xf06   :  { %v3355_v25 = vmul.f32 1.442695, %v3350_v19  ;;  %v3349_v52 = vsub.f32 %v3318_v51, %v3339_v22 }
 0xf07   :  { %v3493_v10 = vpop.permute.xlu1 %3492 }
 0xf08   :  { %6956 = vpow2.f32 %v3355_v25  ;;  %v3353_v2 = vmul.f32 1.442695, %v3349_v52  ;;  %6565 = vmatprep.subr.msk.mxu0 %vm562_vm1, %v3493_v10  ;;  %v2324_v25 = vld [vmem:[%s8854_s2 + $0xd0] sm:$0xff] }
 0xf09   :  { %v3345_v8 = vpop.xlane.xlu0 %3344 }
 0xf0a   :  { %6958 = vpow2.f32 %v3353_v2  ;;  %v3351_v43 = vsub.f32 %v3328_v31, %v3345_v8 }
 0xf0c   :  { %v3357_v44 = vmul.f32 1.442695, %v3351_v43 }
 0xf0d   :  { %v3348_v16 = vpop.xlane.xlu0 %3347 }
 0xf0e   :  { %v3352_v21 = vsub.f32 %v6550_v18, %v3348_v16 }
 0xf10   :  { %v3359_v40 = vmul.f32 1.442695, %v3352_v21 }
 0xf12   :  { %6960 = vpow2.f32 %v3359_v40 }
 0xf13   :  { %6962 = vpow2.f32 %v3357_v44 }
 0xf15   :  { %v6957_v38 = vpop.eup %6956 }
 0xf16   :  { %v3364_v42 = vsel %vm672_vm2, %v6957_v38, 0.0 }
 0xf17   :  { %v6959_v45 = vpop.eup %6958  ;;  %3365 = vadd.xlane.f32.xlu0 %v3364_v42 }
 0xf18   :  { %v3361_v26 = vsel %vm672_vm2, %v6959_v45, 0.0 }
 0xf19   :  { %3362 = vadd.xlane.f32.xlu1 %v3361_v26 }
 0xf1f   :  { %v6961_v48 = vpop.eup %6960 }
 0xf20   :  { %v6963_v0 = vpop.eup %6962  ;;  %v3370_v49 = vsel %vm672_vm2, %v6961_v48, 0.0 }
 0xf21   :  { %v3367_v24 = vsel %vm672_vm2, %v6963_v0, 0.0 }
 0xf2a   :  { %3486 = vrot.lane.b32.xlu1 %v7905_v9, %s7068_s4  ;;  %v3489_v9 = vpop.permute.xlu1 %3488 }
 0xf2d   :  { %3490 = vrot.lane.b32.xlu0 %v8108_v46, %s7068_s4 }
 0xf4c   :  { %3371 = vadd.xlane.f32.xlu0 %v3370_v49 }
 0xf4e   :  { %3368 = vadd.xlane.f32.xlu1 %v3367_v24 }
 0xf5f   :  { %3480 = vrot.lane.b32.xlu1 %v3225_v6, %s7068_s4 }
 0xf62   :  { %3478 = vrot.lane.b32.xlu0 %v8120_v13, %s7068_s4 }
 0xf63   :  { %3484 = vrot.lane.b32.xlu1 %v3227_v59, %s7068_s4 }
 0xf66   :  { %3482 = vrot.lane.b32.xlu0 %v3226_v27, %s7068_s4  ;;  %v2325_v27 = vld [vmem:[%s8854_s2 + $0xd8] sm:$0xff] }
 0xfa0   :  { %v3366_v46 = vpop.xlane.xlu0 %3365 }
 0xfa1   :  { %6964 = vrcp.f32 %v3366_v46 }
 0xfa2   :  { %v3363_v20 = vpop.xlane.xlu1 %3362 }
 0xfa3   :  { %6966 = vrcp.f32 %v3363_v20 }
 0xfa4   :  { %v3491_v6 = vpop.permute.xlu0 %3490 }
 0xfa6   :  { %v3487_v13 = vpop.permute.xlu1 %3486 }
 0xfae   :  { %v6965_v63 = vpop.eup %6964 }
 0xfaf   :  { %v3378_v57 = vmul.f32 %v6965_v63, %v6957_v38 }
 0xfb0   :  { %v6967_v54 = vpop.eup %6966 }
 0xfb1   :  { %v3377_v51 = vmul.f32 %v6967_v54, %v6959_v45 }
 0xfb3   :  { %6559 = vmatprep.mubr.msk.f32.mxu0 %vm672_vm2, %v3377_v51 }
 0xfb4   :  { %6560 = vmatmul.mubr.msk.f32.vlgmr.msra.gmra.mxu0 %vm672_vm2, %v3378_v57 }
 0xfb5   :  { %6566 = vmatpush3.xpose.msk.msra.mxu0 %vm562_vm1, %v3493_v10 }
 0xfb6   :  { %6567 = vmatprep.subr.msk.mxu0 %vm562_vm1, %v3491_v6 }
 0xfb9   :  { %6568 = vmatpush3.xpose.msk.msra.mxu0 %vm562_vm1, %v3491_v6 }
 0xfba   :  { %6569 = vmatprep.subr.msk.mxu0 %vm562_vm1, %v3489_v9 }
 0xfbd   :  { %6570 = vmatpush3.xpose.msk.msra.mxu0 %vm562_vm1, %v3489_v9 }
 0xfbe   :  { %6571 = vmatprep.subr.msk.mxu0 %vm562_vm1, %v3487_v13 }
 0xfc1   :  { %6572 = vmatpush3.xpose.msk.msra.mxu0 %vm562_vm1, %v3487_v13 }
 0xfc2   :  { %6609 = vmatprep.subr.mxu0 %v2325_v27 }
 0xfd5   :  { %v3372_v59 = vpop.xlane.xlu0 %3371 }
 0xfd6   :  { %6968 = vrcp.f32 %v3372_v59 }
 0xfd7   :  { %v3369_v18 = vpop.xlane.xlu1 %3368 }
 0xfd8   :  { %6970 = vrcp.f32 %v3369_v18 }
 0xfd9   :  { %v3479_v36 = vpop.permute.xlu0 %3478 }
 0xfdb   :  { %v3481_v22 = vpop.permute.xlu1 %3480 }
 0xfdd   :  { %v3483_v52 = vpop.permute.xlu0 %3482 }
 0xfdf   :  { %v3485_v10 = vpop.permute.xlu1 %3484 }
 0xfe3   :  { %v6969_v31 = vpop.eup %6968 }
 0xfe4   :  { %v3380_v19 = vmul.f32 %v6969_v31, %v6961_v48 }
 0xfe5   :  { %v6971_v23 = vpop.eup %6970 }
 0xfe6   :  { %v3379_v53 = vmul.f32 %v6971_v23, %v6963_v0 }
 0xfe8   :  { %6562 = vmatprep.mubr.msk.f32.mxu0 %vm672_vm2, %v3379_v53 }
 0xfe9   :  { %6563 = vmatmul.mubr.msk.f32.gmra.mxu0 %vm672_vm2, %v3380_v19 }
 0xfea   :  { %6573 = vmatprep.mubr.msk.f32.mxu0 %vm562_vm1, %v3479_v36 }
 0xfed   :  { %6574 = vmatmul.mubr.msk.f32.vlgmr.msra.gmra.mxu0 %vm562_vm1, %v3481_v22 }
 0xfee   :  { %6610 = vmatpush3.msra.mxu0 %v2325_v27  ;;  %6576 = vmatprep.mubr.msk.f32.mxu0 %vm562_vm1, %v3483_v52 }
 0xfef   :  { %6611 = vmatprep.subr.mxu0 %v2324_v25 }
 0xff0   :  { %6612 = vmatpush3.msra.mxu0 %v2324_v25 }
 0xff1   :  { %6653 = vmatprep.subr.msk.mxu0 %vm192_vm0, %v7206_v41  ;;  %6577 = vmatmul.mubr.msk.f32.gmra.mxu0 %vm562_vm1, %v3485_v10  ;;  %v2322_v10 = vld [vmem:[%s8854_s2 + $0xc0] sm:$0xff] }
0x1074   :  { %v8205_v2 = vpop.f32.mrf.mxu0 }
0x1076   :  { %v8207_v38 = vpop.f32.mrf.mxu0 }
0x10a9   :  { %v8209_v42 = vpop.f32.mrf.mxu0 }
0x10ab   :  { %v8211_v45 = vpop.f32.mrf.mxu0 }
0x10ad   :  { %v6575_v26 = vpop.f32.mrf.mxu0 }
0x10ae   :  { %v3598_v8 = vsel %vm672_vm2, %v6575_v26, -inf }
0x10af   :  { %3599 = vmax.xlane.f32.xlu1 %v3598_v8  ;;  %v3576_v16 = vpop.f32.mrf.mxu0 }
0x10b0   :  { %v3595_v21 = vsel %vm672_vm2, %v3576_v16, -inf }
0x10b1   :  { %3596 = vmax.xlane.f32.xlu0 %v3595_v21  ;;  %v6578_v43 = vpop.f32.mrf.mxu0 }
0x10b2   :  { %v3604_v48 = vsel %vm672_vm2, %v6578_v43, -inf }
0x10b3   :  { %v3586_v40 = vpop.f32.mrf.mxu0 }
0x10b4   :  { %v3601_v44 = vsel %vm672_vm2, %v3586_v40, -inf }
0x10b5   :  { %3602 = vmax.xlane.f32.xlu0 %v3601_v44 }
0x10b9   :  { %3605 = vmax.xlane.f32.xlu0 %v3604_v48 }
0x10c0   :  { %3649 = vrot.lane.b32.xlu1 %v8078_v39, %s7068_s4 }
0x10c4   :  { %3645 = vrot.lane.b32.xlu1 %v8088_v4, %s7068_s4 }
0x1138   :  { %v3600_v0 = vpop.xlane.xlu1 %3599 }
0x1139   :  { %v3608_v49 = vsub.f32 %v6575_v26, %v3600_v0  ;;  %v2333_v26 = vld [vmem:[%s8854_s2 + $0x118] sm:$0xff] }
0x113a   :  { %v3597_v24 = vpop.xlane.xlu0 %3596 }
0x113b   :  { %v3613_v9 = vmul.f32 1.442695, %v3608_v49  ;;  %v3607_v46 = vsub.f32 %v3576_v16, %v3597_v24 }
0x113c   :  { %v3650_v20 = vpop.permute.xlu1 %3649 }
0x113d   :  { %6972 = vpow2.f32 %v3613_v9  ;;  %v3611_v63 = vmul.f32 1.442695, %v3607_v46  ;;  %6579 = vmatprep.subr.mxu1 %v3650_v20  ;;  %v2332_v46 = vld [vmem:[%s8854_s2 + $0x110] sm:$0xff] }
0x113e   :  { %6580 = vmatpush3.msra.mxu1 %v3650_v20  ;;  %v3603_v4 = vpop.xlane.xlu0 %3602 }
0x113f   :  { %6974 = vpow2.f32 %v3611_v63  ;;  %v3609_v13 = vsub.f32 %v3586_v40, %v3603_v4 }
0x1141   :  { %v3615_v59 = vmul.f32 1.442695, %v3609_v13 }
0x1142   :  { %v3606_v6 = vpop.xlane.xlu0 %3605 }
0x1143   :  { %v3610_v27 = vsub.f32 %v6578_v43, %v3606_v6  ;;  %6976 = vpow2.f32 %v3615_v59 }
0x1145   :  { %v3617_v18 = vmul.f32 1.442695, %v3610_v27 }
0x1147   :  { %6978 = vpow2.f32 %v3617_v18 }
0x114a   :  { %v6973_v54 = vpop.eup %6972 }
0x114b   :  { %v3622_v51 = vsel %vm672_vm2, %v6973_v54, 0.0 }
0x114c   :  { %v6975_v57 = vpop.eup %6974  ;;  %3623 = vadd.xlane.f32.xlu0 %v3622_v51  ;;  %v2328_v51 = vld [vmem:[%s8854_s2 + $0xf0] sm:$0xff] }
0x114d   :  { %v3619_v39 = vsel %vm672_vm2, %v6975_v57, 0.0 }
0x114e   :  { %3620 = vadd.xlane.f32.xlu1 %v3619_v39 }
0x1150   :  { %v6977_v31 = vpop.eup %6976 }
0x1151   :  { %v3625_v53 = vsel %vm672_vm2, %v6977_v31, 0.0 }
0x1154   :  { %v6979_v23 = vpop.eup %6978 }
0x1155   :  { %v3628_v36 = vsel %vm672_vm2, %v6979_v23, 0.0 }
0x115f   :  { %3643 = vrot.lane.b32.xlu1 %v8094_v29, %s7068_s4 }
0x1162   :  { %3647 = vrot.lane.b32.xlu0 %v8081_v47, %s7068_s4  ;;  %v3646_v47 = vpop.permute.xlu1 %3645 }
0x1181   :  { %3626 = vadd.xlane.f32.xlu0 %v3625_v53 }
0x1183   :  { %3629 = vadd.xlane.f32.xlu1 %v3628_v36 }
0x1194   :  { %3210 = vrot.lane.b32.xlu1 %v8152_v58, %s7069_s16  ;;  %v2323_v58 = vld [vmem:[%s8854_s2 + $0xc8] sm:$0xff] }
0x1197   :  { %3208 = vrot.lane.b32.xlu0 %v8154_v37, %s7069_s16 }
0x1198   :  { %3214 = vrot.lane.b32.xlu1 %v8156_v12, %s7069_s16 }
0x119b   :  { %3212 = vrot.lane.b32.xlu0 %v8158_v7, %s7069_s16 }
0x11d5   :  { %v3624_v29 = vpop.xlane.xlu0 %3623 }
0x11d6   :  { %6980 = vrcp.f32 %v3624_v29 }
0x11d7   :  { %v3621_v19 = vpop.xlane.xlu1 %3620 }
0x11d8   :  { %6982 = vrcp.f32 %v3621_v19 }
0x11d9   :  { %v3648_v22 = vpop.permute.xlu0 %3647 }
0x11da   :  { %6581 = vmatprep.subr.mxu1 %v3648_v22 }
0x11db   :  { %6582 = vmatpush3.msra.mxu1 %v3648_v22  ;;  %v3644_v25 = vpop.permute.xlu1 %3643 }
0x11dc   :  { %6583 = vmatprep.subr.mxu1 %v3646_v47 }
0x11dd   :  { %6584 = vmatpush3.msra.mxu1 %v3646_v47 }
0x11de   :  { %6585 = vmatprep.subr.mxu1 %v3644_v25 }
0x11df   :  { %6586 = vmatpush3.msra.mxu1 %v3644_v25 }
0x11e0   :  { %6593 = vmatprep.subr.mxu1 %v2323_v58 }
0x11e3   :  { %v6981_v37 = vpop.eup %6980 }
0x11e4   :  { %v3636_v52 = vmul.f32 %v6981_v37, %v6973_v54  ;;  %v2330_v54 = vld [vmem:[%s8854_s2 + $0x100] sm:$0xff] }
0x11e5   :  { %v6983_v12 = vpop.eup %6982 }
0x11e6   :  { %v3635_v7 = vmul.f32 %v6983_v12, %v6975_v57  ;;  %v2326_v57 = vld [vmem:[%s8854_s2 + $0xe0] sm:$0xff] }
0x11e8   :  { %6587 = vmatprep.mubr.msk.f32.mxu1 %vm672_vm2, %v3635_v7 }
0x11e9   :  { %6588 = vmatmul.mubr.msk.f32.vlgmr.msra.gmra.mxu1 %vm672_vm2, %v3636_v52 }
0x11ea   :  { %6594 = vmatpush3.msra.mxu1 %v2323_v58 }
0x11eb   :  { %6595 = vmatprep.subr.mxu1 %v2322_v10 }
0x11ec   :  { %6596 = vmatpush3.msra.mxu1 %v2322_v10 }
0x11ed   :  { %6625 = vmatprep.subr.mxu1 %v2333_v26 }
0x120a   :  { %v3627_v8 = vpop.xlane.xlu0 %3626 }
0x120b   :  { %6984 = vrcp.f32 %v3627_v8 }
0x120c   :  { %v3630_v16 = vpop.xlane.xlu1 %3629 }
0x120d   :  { %6986 = vrcp.f32 %v3630_v16 }
0x120e   :  { %v3209_v43 = vpop.permute.xlu0 %3208 }
0x120f   :  { %v3220_v49 = vsel %vm562_vm1, %v8146_v17, %v3209_v43  ;;  %v2331_v17 = vld [vmem:[%s8854_s2 + $0x108] sm:$0xff] }
0x1210   :  { %v3211_v48 = vpop.permute.xlu1 %3210 }
0x1211   :  { %v3221_v9 = vsel %vm562_vm1, %v8144_v5, %v3211_v48 }
0x1212   :  { %v3213_v24 = vpop.permute.xlu0 %3212 }
0x1213   :  { %v3222_v20 = vsel %vm562_vm1, %v8150_v14, %v3213_v24  ;;  %v2329_v14 = vld [vmem:[%s8854_s2 + $0xf8] sm:$0xff] }
0x1214   :  { %v3215_v63 = vpop.permute.xlu1 %3214 }
0x1215   :  { %v3223_v5 = vsel %vm562_vm1, %v8148_v50, %v3215_v63  ;;  %v2327_v50 = vld [vmem:[%s8854_s2 + $0xe8] sm:$0xff] }
0x1218   :  { %v6985_v21 = vpop.eup %6984 }
0x1219   :  { %v3637_v40 = vmul.f32 %v6985_v21, %v6977_v31  ;;  %v3772_v31 = vld [vmem:[%s8855_s3 + $0x21] ss:$0 sm:$0xff] }
0x121a   :  { %v6987_v44 = vpop.eup %6986 }
0x121b   :  { %6590 = vmatprep.mubr.msk.f32.mxu1 %vm672_vm2, %v3637_v40  ;;  %v3638_v0 = vmul.f32 %v6987_v44, %v6979_v23 }
0x121d   :  { %6591 = vmatmul.mubr.msk.f32.gmra.mxu1 %vm672_vm2, %v3638_v0 }
0x121e   :  { %6597 = vmatprep.mubr.msk.f32.mxu1 %vm192_vm0, %v3220_v49 }
0x1221   :  { %6598 = vmatmul.mubr.msk.f32.vlgmr.msra.gmra.mxu1 %vm192_vm0, %v3221_v9 }
0x1222   :  { %6626 = vmatpush3.msra.mxu1 %v2333_v26  ;;  %6600 = vmatprep.mubr.msk.f32.mxu1 %vm192_vm0, %v3222_v20 }
0x1223   :  { %6627 = vmatprep.subr.mxu1 %v2332_v46 }
0x1224   :  { %6628 = vmatpush3.msra.mxu1 %v2332_v46 }
0x1225   :  { %6629 = vmatprep.subr.mxu1 %v2331_v17  ;;  %6601 = vmatmul.mubr.msk.f32.gmra.mxu1 %vm192_vm0, %v3223_v5 }
0x1226   :  { %6630 = vmatpush3.msra.mxu1 %v2331_v17 }
0x1227   :  { %6631 = vmatprep.subr.mxu1 %v2330_v54 }
0x1228   :  { %6632 = vmatpush3.msra.mxu1 %v2330_v54 }
0x1229   :  { %6633 = vmatprep.subr.mxu1 %v2329_v14 }
0x122a   :  { %6634 = vmatpush3.msra.mxu1 %v2329_v14 }
0x122b   :  { %6635 = vmatprep.subr.mxu1 %v2328_v51 }
0x122c   :  { %6636 = vmatpush3.msra.mxu1 %v2328_v51 }
0x122d   :  { %6637 = vmatprep.subr.mxu1 %v2327_v50 }
0x122e   :  { %6638 = vmatpush3.msra.mxu1 %v2327_v50 }
0x122f   :  { %6639 = vmatprep.subr.mxu1 %v2326_v57 }
0x1230   :  { %6640 = vmatpush3.msra.mxu1 %v2326_v57 }
0x1231   :  { %6667 = vmatprep.subr.msk.mxu1 %vm192_vm0, %v7237_v61 }
0x12a9   :  { %v6589_v39 = vpop.f32.mrf.mxu1 }
0x12aa   :  { %3758 = vrot.lane.b32.xlu1 %v6589_v39, %s7069_s16 }
0x12ab   :  { %v3733_v4 = vpop.f32.mrf.mxu1 }
0x12ac   :  { %3756 = vrot.lane.b32.xlu0 %v3733_v4, %s7069_s16 }
0x12dd   :  { %v6592_v6 = vpop.f32.mrf.mxu1 }
0x12de   :  { %3762 = vrot.lane.b32.xlu1 %v6592_v6, %s7069_s16 }
0x12df   :  { %v3743_v13 = vpop.f32.mrf.mxu1 }
0x12e0   :  { %3760 = vrot.lane.b32.xlu0 %v3743_v13, %s7069_s16 }
0x12e1   :  { %v6599_v27 = vpop.f32.mrf.mxu1 }
0x12e2   :  { %v3869_v36 = vadd.f32 %v6599_v27, %v3772_v31 }
0x12e3   :  { %v3863_v59 = vpop.f32.mrf.mxu1 }
0x12e4   :  { %v3864_v23 = vadd.f32 %v3863_v59, %v3772_v31  ;;  %v3903_v19 = vadd.f32 %v3869_v36, %v7827_v30 }
0x12e5   :  { %v6602_v18 = vpop.f32.mrf.mxu1 }
0x12e6   :  { %v3902_v47 = vadd.f32 %v3864_v23, %v7823_v15  ;;  %v3879_v22 = vadd.f32 %v6602_v18, %v3772_v31  ;;  %v3915_v37 = vsel %vm192_vm0, %v3903_v19, 0.0 }
0x12e7   :  { %v3873_v53 = vpop.f32.mrf.mxu1 }
0x12e8   :  { %v3874_v29 = vadd.f32 %v3873_v53, %v3772_v31  ;;  %v3912_v58 = vsel %vm192_vm0, %v3902_v47, 0.0  ;;  %v3905_v12 = vadd.f32 %v3879_v22, %v7852_v1 }
0x12ea   :  { %v3904_v25 = vadd.f32 %v3874_v29, %v7849_v34  ;;  %v3921_v52 = vsel %vm192_vm0, %v3905_v12, 0.0 }
0x12ec   :  { %v3918_v7 = vsel %vm192_vm0, %v3904_v25, 0.0 }
0x12ff   :  { %3913 = vadd.xlane.f32.xlu0 %v3912_v58 }
0x1302   :  { %3916 = vadd.xlane.f32.xlu1 %v3915_v37 }
0x1303   :  { %3919 = vadd.xlane.f32.xlu0 %v3918_v7 }
0x1307   :  { %3922 = vadd.xlane.f32.xlu0 %v3921_v52 }
0x131c   :  { %v3759_v15 = vpop.permute.xlu1 %3758 }
0x131d   :  { %v3769_v34 = vsel %vm562_vm1, %v8205_v2, %v3759_v15 }
0x131e   :  { %v3757_v10 = vpop.permute.xlu0 %3756 }
0x131f   :  { %v3768_v30 = vsel %vm562_vm1, %v8207_v38, %v3757_v10 }
0x1320   :  { %6603 = vmatprep.mubr.msk.f32.mxu1 %vm192_vm0, %v3768_v30 }
0x1321   :  { %6604 = vmatmul.mubr.msk.f32.gmra.mxu1 %vm192_vm0, %v3769_v34 }
0x1350   :  { %v3763_v1 = vpop.permute.xlu1 %3762 }
0x1351   :  { %v3771_v16 = vsel %vm562_vm1, %v8209_v42, %v3763_v1 }
0x1352   :  { %v3761_v26 = vpop.permute.xlu0 %3760 }
0x1353   :  { %v3770_v8 = vsel %vm562_vm1, %v8211_v45, %v3761_v26 }
0x1354   :  { %6606 = vmatprep.mubr.msk.f32.mxu1 %vm192_vm0, %v3770_v8 }
0x1355   :  { %6607 = vmatmul.mubr.msk.f32.gmra.mxu1 %vm192_vm0, %v3771_v16 }
0x1388   :  { %v3914_v0 = vpop.xlane.xlu0 %3913 }
0x1389   :  { %v3936_v46 = vmul.f32 0.0625, %v3914_v0 }
0x138b   :  { %v3917_v49 = vpop.xlane.xlu1 %3916  ;;  %v8318_v54 = vsub.f32 %v3902_v47, %v3936_v46  ;;  %v3910_v46 = vld [vmem:[%s8855_s3 + $0x24] ss:$0 sm:$0xff] }
0x138c   :  { %v3920_v42 = vpop.xlane.xlu0 %3919  ;;  %v3937_v24 = vmul.f32 0.0625, %v3917_v49 }
0x138d   :  { %v3952_v27 = vmul.f32 %v8318_v54, %v8318_v54 }
0x138e   :  { %v8316_v63 = vsub.f32 %v3903_v19, %v3937_v24 }
0x1390   :  { %v3923_v9 = vpop.xlane.xlu0 %3922  ;;  %v3953_v4 = vmul.f32 %v8316_v63, %v8316_v63 }
0x1391   :  { %v3939_v17 = vmul.f32 0.0625, %v3923_v9 }
0x1393   :  { %v8321_v50 = vsub.f32 %v3905_v12, %v3939_v17 }
0x1395   :  { %v3955_v59 = vmul.f32 %v8321_v50, %v8321_v50 }
0x13e1   :  { %v6605_v38 = vpop.f32.mrf.mxu1 }
0x13e2   :  { %v3889_v21 = vadd.f32 %v6605_v38, %v3772_v31 }
0x13e3   :  { %v3883_v43 = vpop.f32.mrf.mxu1 }
0x13e4   :  { %v3907_v2 = vadd.f32 %v3889_v21, %v7992_v3  ;;  %v3884_v40 = vadd.f32 %v3883_v43, %v3772_v31 }
0x13e6   :  { %v3906_v44 = vadd.f32 %v3884_v40, %v7989_v11  ;;  %v3927_v48 = vsel %vm192_vm0, %v3907_v2, 0.0  ;;  %v3938_v11 = vmul.f32 0.0625, %v3920_v42 }
0x13e7   :  { %3928 = vadd.xlane.f32.xlu0 %v3927_v48 }
0x13e8   :  { %v3924_v45 = vsel %vm192_vm0, %v3906_v44, 0.0  ;;  %v8327_v6 = vsub.f32 %v3904_v25, %v3938_v11 }
0x13e9   :  { %3925 = vadd.xlane.f32.xlu1 %v3924_v45 }
0x13ea   :  { %v3954_v18 = vmul.f32 %v8327_v6, %v8327_v6 }
0x13ec   :  { %v3966_v23 = vsel %vm192_vm0, %v3954_v18, 0.0 }
0x1415   :  { %v6608_v20 = vpop.f32.mrf.mxu1 }
0x1416   :  { %v3899_v3 = vadd.f32 %v6608_v20, %v3772_v31 }
0x1417   :  { %v3893_v5 = vpop.f32.mrf.mxu1 }
0x1418   :  { %v3909_v14 = vadd.f32 %v3899_v3, %v8007_v33  ;;  %v3894_v51 = vadd.f32 %v3893_v5, %v3772_v31  ;;  %v3963_v33 = vsel %vm192_vm0, %v3953_v4, 0.0  ;;  %v3969_v31 = vsel %vm192_vm0, %v3955_v59, 0.0 }
0x141a   :  { %v3908_v57 = vadd.f32 %v3894_v51, %v8001_v60  ;;  %v3933_v39 = vsel %vm192_vm0, %v3909_v14, 0.0  ;;  %v3960_v60 = vsel %vm192_vm0, %v3952_v27, 0.0 }
0x141b   :  { %3934 = vadd.xlane.f32.xlu0 %v3933_v39 }
0x141c   :  { %v3930_v13 = vsel %vm192_vm0, %v3908_v57, 0.0 }
0x141d   :  { %3931 = vadd.xlane.f32.xlu1 %v3930_v13 }
0x141f   :  { %3964 = vadd.xlane.f32.xlu0 %v3963_v33 }
0x1421   :  { %3961 = vadd.xlane.f32.xlu1 %v3960_v60 }
0x1423   :  { %3970 = vadd.xlane.f32.xlu0 %v3969_v31 }
0x1425   :  { %3967 = vadd.xlane.f32.xlu1 %v3966_v23 }
0x1470   :  { %v3929_v53 = vpop.xlane.xlu0 %3928 }
0x1471   :  { %v3941_v36 = vmul.f32 0.0625, %v3929_v53 }
0x1472   :  { %v3926_v47 = vpop.xlane.xlu1 %3925 }
0x1473   :  { %v8340_v29 = vsub.f32 %v3907_v2, %v3941_v36  ;;  %v3940_v19 = vmul.f32 0.0625, %v3926_v47 }
0x1475   :  { %v8342_v22 = vsub.f32 %v3906_v44, %v3940_v19  ;;  %v3957_v25 = vmul.f32 %v8340_v29, %v8340_v29 }
0x1477   :  { %v3975_v58 = vsel %vm192_vm0, %v3957_v25, 0.0  ;;  %v3956_v37 = vmul.f32 %v8342_v22, %v8342_v22 }
0x1478   :  { %3976 = vadd.xlane.f32.xlu0 %v3975_v58 }
0x1479   :  { %v3972_v12 = vsel %vm192_vm0, %v3956_v37, 0.0 }
0x147a   :  { %3973 = vadd.xlane.f32.xlu1 %v3972_v12 }
0x14a4   :  { %v3935_v7 = vpop.xlane.xlu0 %3934 }
0x14a5   :  { %v3943_v52 = vmul.f32 0.0625, %v3935_v7 }
0x14a6   :  { %v3932_v15 = vpop.xlane.xlu1 %3931 }
0x14a7   :  { %v8350_v10 = vsub.f32 %v3909_v14, %v3943_v52  ;;  %v3942_v30 = vmul.f32 0.0625, %v3932_v15  ;;  %v3911_v14 = vld [vmem:[%s8855_s3 + $0x25] ss:$0 sm:$0xff] }
0x14a8   :  { %v3965_v34 = vpop.xlane.xlu0 %3964 }
0x14a9   :  { %v8352_v1 = vsub.f32 %v3908_v57, %v3942_v30  ;;  %v3985_v26 = vmul.f32 0.0625, %v3965_v34  ;;  %v3959_v8 = vmul.f32 %v8350_v10, %v8350_v10 }
0x14aa   :  { %v3962_v16 = vpop.xlane.xlu1 %3961 }
0x14ab   :  { %v3993_v38 = vadd.f32 1e-05, %v3985_v26  ;;  %v3984_v21 = vmul.f32 0.0625, %v3962_v16  ;;  %v3981_v43 = vsel %vm192_vm0, %v3959_v8, 0.0  ;;  %v3958_v2 = vmul.f32 %v8352_v1, %v8352_v1 }
0x14ac   :  { %3982 = vadd.xlane.f32.xlu0 %v3981_v43  ;;  %v3971_v40 = vpop.xlane.xlu0 %3970 }
0x14ad   :  { %6988 = vrsqrt.f32 %v3993_v38  ;;  %v3992_v44 = vadd.f32 1e-05, %v3984_v21  ;;  %v3987_v48 = vmul.f32 0.0625, %v3971_v40  ;;  %v3978_v45 = vsel %vm192_vm0, %v3958_v2, 0.0  ;;  %v4032_v38 = vld [vmem:[%s8855_s3 + $0x22] ss:$0 sm:$0xff] }
0x14ae   :  { %3979 = vadd.xlane.f32.xlu1 %v3978_v45  ;;  %v3968_v0 = vpop.xlane.xlu1 %3967 }
0x14af   :  { %6990 = vrsqrt.f32 %v3992_v44  ;;  %v3995_v42 = vadd.f32 1e-05, %v3987_v48  ;;  %v3986_v49 = vmul.f32 0.0625, %v3968_v0 }
0x14b1   :  { %6992 = vrsqrt.f32 %v3995_v42  ;;  %v3994_v24 = vadd.f32 1e-05, %v3986_v49 }
0x14b3   :  { %6994 = vrsqrt.f32 %v3994_v24 }
0x14ba   :  { %v6989_v9 = vpop.eup %6988 }
0x14bb   :  { %v4009_v20 = vmul.f32 %v6989_v9, %v8316_v63 }
0x14bc   :  { %v6991_v17 = vpop.eup %6990 }
0x14bd   :  { %v4008_v3 = vmul.f32 %v6991_v17, %v8318_v54  ;;  %v4017_v11 = vmul.f32 %v4009_v20, %v3910_v46 }
0x14be   :  { %v6993_v5 = vpop.eup %6992 }
0x14bf   :  { %v4016_v51 = vmul.f32 %v4008_v3, %v3910_v46  ;;  %v4011_v57 = vmul.f32 %v6993_v5, %v8321_v50  ;;  %v8372_v27 = vadd.f32 %v4017_v11, %v3911_v14 }
0x14c0   :  { %v6995_v39 = vpop.eup %6994 }
0x14c1   :  { %v8369_v4 = vadd.f32 %v4016_v51, %v3911_v14  ;;  %v4010_v13 = vmul.f32 %v6995_v39, %v8327_v6  ;;  %v4019_v63 = vmul.f32 %v4011_v57, %v3910_v46  ;;  %v4170_v39 = vld [vmem:[%s8855_s3 + $0x23] ss:$0 sm:$0xff] }
0x14c3   :  { %6613 = vmatprep.mubr.msk.f32.mxu0 %vm192_vm0, %v8369_v4  ;;  %v4018_v54 = vmul.f32 %v4010_v13, %v3910_v46  ;;  %v8384_v50 = vadd.f32 %v4019_v63, %v3911_v14 }
0x14c4   :  { %6614 = vmatmul.mubr.msk.f32.vlgmr.msra.gmra.mxu0 %vm192_vm0, %v8372_v27 }
0x14c5   :  { %6654 = vmatpush3.xpose.msk.msra.mxu0 %vm192_vm0, %v7206_v41  ;;  %v8380_v33 = vadd.f32 %v4018_v54, %v3911_v14 }
0x14c6   :  { %6655 = vmatprep.subr.msk.mxu0 %vm192_vm0, %v7192_v32 }
0x14c7   :  { %6616 = vmatprep.mubr.msk.f32.mxu0 %vm192_vm0, %v8380_v33 }
0x14c8   :  { %6617 = vmatmul.mubr.msk.f32.gmra.mxu0 %vm192_vm0, %v8384_v50 }
0x14c9   :  { %6656 = vmatpush3.xpose.msk.msra.mxu0 %vm192_vm0, %v7192_v32 }
0x14ca   :  { %6657 = vmatprep.subr.msk.mxu0 %vm192_vm0, %v7197_v35 }
0x14cd   :  { %6658 = vmatpush3.xpose.msk.msra.mxu0 %vm192_vm0, %v7197_v35 }
0x14ce   :  { %6659 = vmatprep.subr.msk.mxu0 %vm192_vm0, %v7188_v28 }
0x14d1   :  { %6660 = vmatpush3.xpose.msk.msra.mxu0 %vm192_vm0, %v7188_v28 }
0x1501   :  { %v3977_v41 = vpop.xlane.xlu0 %3976 }
0x1502   :  { %v3989_v6 = vmul.f32 0.0625, %v3977_v41 }
0x1503   :  { %v3974_v59 = vpop.xlane.xlu1 %3973 }
0x1504   :  { %v3997_v60 = vadd.f32 1e-05, %v3989_v6  ;;  %v3988_v18 = vmul.f32 0.0625, %v3974_v59 }
0x1506   :  { %6996 = vrsqrt.f32 %v3997_v60  ;;  %v3996_v31 = vadd.f32 1e-05, %v3988_v18 }
0x1508   :  { %6998 = vrsqrt.f32 %v3996_v31 }
0x1513   :  { %v6997_v32 = vpop.eup %6996 }
0x1514   :  { %v4013_v23 = vmul.f32 %v6997_v32, %v8340_v29 }
0x1515   :  { %v6999_v53 = vpop.eup %6998 }
0x1516   :  { %v4012_v35 = vmul.f32 %v6999_v53, %v8342_v22  ;;  %v4021_v36 = vmul.f32 %v4013_v23, %v3910_v46 }
0x1518   :  { %v4020_v47 = vmul.f32 %v4012_v35, %v3910_v46  ;;  %v8404_v25 = vadd.f32 %v4021_v36, %v3911_v14 }
0x151a   :  { %v8402_v19 = vadd.f32 %v4020_v47, %v3911_v14 }
0x151c   :  { %6619 = vmatprep.mubr.msk.f32.mxu0 %vm192_vm0, %v8402_v19 }
0x151d   :  { %6620 = vmatmul.mubr.msk.f32.gmra.mxu0 %vm192_vm0, %v8404_v25 }
0x1535   :  { %v3983_v28 = vpop.xlane.xlu0 %3982 }
0x1536   :  { %v3991_v58 = vmul.f32 0.0625, %v3983_v28 }
0x1537   :  { %v3980_v37 = vpop.xlane.xlu1 %3979 }
0x1538   :  { %v3999_v12 = vadd.f32 1e-05, %v3991_v58  ;;  %v3990_v29 = vmul.f32 0.0625, %v3980_v37 }
0x153a   :  { %7000 = vrsqrt.f32 %v3999_v12  ;;  %v3998_v7 = vadd.f32 1e-05, %v3990_v29 }
0x153c   :  { %7002 = vrsqrt.f32 %v3998_v7 }
0x1547   :  { %v7001_v22 = vpop.eup %7000 }
0x1548   :  { %v4015_v52 = vmul.f32 %v7001_v22, %v8350_v10 }
0x1549   :  { %v7003_v15 = vpop.eup %7002 }
0x154a   :  { %v4014_v30 = vmul.f32 %v7003_v15, %v8352_v1  ;;  %v4023_v34 = vmul.f32 %v4015_v52, %v3910_v46 }
0x154c   :  { %v4022_v26 = vmul.f32 %v4014_v30, %v3910_v46  ;;  %v8414_v16 = vadd.f32 %v4023_v34, %v3911_v14 }
0x154e   :  { %v8412_v8 = vadd.f32 %v4022_v26, %v3911_v14 }
0x1550   :  { %6622 = vmatprep.mubr.msk.f32.mxu0 %vm192_vm0, %v8412_v8 }
0x1551   :  { %6623 = vmatmul.mubr.msk.f32.gmra.mxu0 %vm192_vm0, %v8414_v16 }
0x1584   :  { %v6615_v10 = vpop.f32.mrf.mxu0 }
0x1585   :  { %v4129_v21 = vadd.f32 %v6615_v10, %v4032_v38 }
0x1586   :  { %v4123_v43 = vpop.f32.mrf.mxu0 }
0x1587   :  { %v4124_v1 = vadd.f32 %v4123_v43, %v4032_v38  ;;  %v4163_v44 = vmax.f32 %v4129_v21, 0.0 }
0x1588   :  { %v6618_v2 = vpop.f32.mrf.mxu0 }
0x1589   :  { %v4162_v40 = vmax.f32 %v4124_v1, 0.0  ;;  %v4139_v48 = vadd.f32 %v6618_v2, %v4032_v38 }
0x158a   :  { %v4133_v45 = vpop.f32.mrf.mxu0 }
0x158b   :  { %v4134_v0 = vadd.f32 %v4133_v45, %v4032_v38  ;;  %6641 = vmatprep.mubr.msk.f32.mxu1 %vm2056_vm3, %v4162_v40  ;;  %v4165_v49 = vmax.f32 %v4139_v48, 0.0 }
0x158c   :  { %6642 = vmatmul.mubr.msk.f32.vlgmr.msra.gmra.mxu1 %vm2056_vm3, %v4163_v44 }
0x158d   :  { %v4164_v42 = vmax.f32 %v4134_v0, 0.0  ;;  %6668 = vmatpush3.xpose.msk.msra.mxu1 %vm192_vm0, %v7237_v61 }
0x158e   :  { %6669 = vmatprep.subr.msk.mxu1 %vm192_vm0, %v7239_v62 }
0x158f   :  { %6644 = vmatprep.mubr.msk.f32.mxu1 %vm2056_vm3, %v4164_v42 }
0x1590   :  { %6645 = vmatmul.mubr.msk.f32.gmra.mxu1 %vm2056_vm3, %v4165_v49 }
0x1591   :  { %6670 = vmatpush3.xpose.msk.msra.mxu1 %vm192_vm0, %v7239_v62 }
0x1592   :  { %6671 = vmatprep.subr.msk.mxu1 %vm192_vm0, %v7229_v55 }
0x1595   :  { %6672 = vmatpush3.xpose.msk.msra.mxu1 %vm192_vm0, %v7229_v55 }
0x1596   :  { %6673 = vmatprep.subr.msk.mxu1 %vm192_vm0, %v7231_v56 }
0x1599   :  { %6674 = vmatpush3.xpose.msk.msra.mxu1 %vm192_vm0, %v7231_v56 }
0x15dd   :  { %v6621_v61 = vpop.f32.mrf.mxu0 }
0x15de   :  { %v4149_v24 = vadd.f32 %v6621_v61, %v4032_v38 }
0x15df   :  { %v4143_v9 = vpop.f32.mrf.mxu0 }
0x15e0   :  { %v4144_v46 = vadd.f32 %v4143_v9, %v4032_v38  ;;  %v4167_v17 = vmax.f32 %v4149_v24, 0.0 }
0x15e2   :  { %v4166_v20 = vmax.f32 %v4144_v46, 0.0 }
0x15e4   :  { %6647 = vmatprep.mubr.msk.f32.mxu1 %vm2056_vm3, %v4166_v20 }
0x15e5   :  { %6648 = vmatmul.mubr.msk.f32.gmra.mxu1 %vm2056_vm3, %v4167_v17 }
0x1611   :  { %v6624_v62 = vpop.f32.mrf.mxu0 }
0x1612   :  { %v4159_v3 = vadd.f32 %v6624_v62, %v4032_v38 }
0x1613   :  { %v4153_v5 = vpop.f32.mrf.mxu0 }
0x1614   :  { %v4154_v55 = vadd.f32 %v4153_v5, %v4032_v38  ;;  %v4169_v14 = vmax.f32 %v4159_v3, 0.0 }
0x1616   :  { %v4168_v11 = vmax.f32 %v4154_v55, 0.0 }
0x1618   :  { %6650 = vmatprep.mubr.msk.f32.mxu1 %vm2056_vm3, %v4168_v11 }
0x1619   :  { %6651 = vmatmul.mubr.msk.f32.gmra.mxu1 %vm2056_vm3, %v4169_v14 }
0x164c   :  { %v6643_v56 = vpop.f32.mrf.mxu1 }
0x164d   :  { %v4267_v54 = vadd.f32 %v6643_v56, %v4170_v39 }
0x164e   :  { %v4261_v51 = vpop.f32.mrf.mxu1 }
0x164f   :  { %v4262_v59 = vadd.f32 %v4261_v51, %v4170_v39  ;;  %v4301_v31 = vadd.f32 %v4267_v54, %v8372_v27 }
0x1650   :  { %v6646_v57 = vpop.f32.mrf.mxu1 }
0x1651   :  { %v4300_v53 = vadd.f32 %v4262_v59, %v8369_v4  ;;  %v4313_v36 = vsel %vm192_vm0, %v4301_v31, 0.0  ;;  %v4277_v28 = vadd.f32 %v6646_v57, %v4170_v39 }
0x1652   :  { %v4271_v13 = vpop.f32.mrf.mxu1 }
0x1653   :  { %v4310_v47 = vsel %vm192_vm0, %v4300_v53, 0.0  ;;  %v4272_v37 = vadd.f32 %v4271_v13, %v4170_v39  ;;  %v4303_v29 = vadd.f32 %v4277_v28, %v8384_v50 }
0x1655   :  { %v4302_v22 = vadd.f32 %v4272_v37, %v8380_v33  ;;  %v4319_v15 = vsel %vm192_vm0, %v4303_v29, 0.0 }
0x1657   :  { %v4316_v30 = vsel %vm192_vm0, %v4302_v22, 0.0 }
0x16a5   :  { %v6649_v63 = vpop.f32.mrf.mxu1 }
0x16a6   :  { %v4287_v41 = vadd.f32 %v6649_v63, %v4170_v39 }
0x16a7   :  { %v4281_v6 = vpop.f32.mrf.mxu1 }
0x16a8   :  { %v4305_v60 = vadd.f32 %v4287_v41, %v8404_v25  ;;  %v4282_v18 = vadd.f32 %v4281_v6, %v4170_v39 }
0x16aa   :  { %v4304_v32 = vadd.f32 %v4282_v18, %v8402_v19  ;;  %v4325_v23 = vsel %vm192_vm0, %v4305_v60, 0.0 }
0x16ab   :  { %4326 = vadd.xlane.f32.xlu0 %v4325_v23 }
0x16ac   :  { %v4322_v35 = vsel %vm192_vm0, %v4304_v32, 0.0 }
0x16ad   :  { %4323 = vadd.xlane.f32.xlu1 %v4322_v35 }
0x16af   :  { %4314 = vadd.xlane.f32.xlu0 %v4313_v36 }
0x16b1   :  { %4311 = vadd.xlane.f32.xlu1 %v4310_v47 }
0x16d9   :  { %v6652_v25 = vpop.f32.mrf.mxu1 }
0x16da   :  { %v4297_v58 = vadd.f32 %v6652_v25, %v4170_v39 }
0x16db   :  { %v4291_v27 = vpop.f32.mrf.mxu1 }
0x16dc   :  { %v4307_v19 = vadd.f32 %v4297_v58, %v8414_v16  ;;  %v4292_v12 = vadd.f32 %v4291_v27, %v4170_v39  ;;  %v4308_v27 = vld [vmem:[%s8855_s3 + $0x26] ss:$0 sm:$0xff] }
0x16de   :  { %v4306_v4 = vadd.f32 %v4292_v12, %v8412_v8  ;;  %v4331_v7 = vsel %vm192_vm0, %v4307_v19, 0.0 }
0x16df   :  { %4332 = vadd.xlane.f32.xlu0 %v4331_v7 }
0x16e0   :  { %v4328_v52 = vsel %vm192_vm0, %v4306_v4, 0.0 }
0x16e1   :  { %4329 = vadd.xlane.f32.xlu1 %v4328_v52 }
0x16e3   :  { %4320 = vadd.xlane.f32.xlu0 %v4319_v15 }
0x16e5   :  { %4317 = vadd.xlane.f32.xlu1 %v4316_v30 }
0x1734   :  { %v4327_v34 = vpop.xlane.xlu0 %4326 }
0x1735   :  { %v4339_v26 = vmul.f32 0.0625, %v4327_v34 }
0x1736   :  { %v4324_v16 = vpop.xlane.xlu1 %4323 }
0x1737   :  { %v8464_v50 = vsub.f32 %v4305_v60, %v4339_v26  ;;  %v4338_v8 = vmul.f32 0.0625, %v4324_v16 }
0x1738   :  { %v4315_v38 = vpop.xlane.xlu0 %4314 }
0x1739   :  { %v8466_v10 = vsub.f32 %v4304_v32, %v4338_v8  ;;  %v4335_v21 = vmul.f32 0.0625, %v4315_v38  ;;  %v4355_v33 = vmul.f32 %v8464_v50, %v8464_v50 }
0x173a   :  { %v4312_v43 = vpop.xlane.xlu1 %4311 }
0x173b   :  { %v4343_v1 = vsub.f32 %v4301_v31, %v4335_v21  ;;  %v4334_v2 = vmul.f32 0.0625, %v4312_v43  ;;  %v4373_v40 = vsel %vm192_vm0, %v4355_v33, 0.0  ;;  %v4354_v44 = vmul.f32 %v8466_v10, %v8466_v10 }
0x173c   :  { %4374 = vadd.xlane.f32.xlu0 %v4373_v40 }
0x173d   :  { %v8473_v48 = vsub.f32 %v4300_v53, %v4334_v2  ;;  %v4370_v45 = vsel %vm192_vm0, %v4354_v44, 0.0  ;;  %v4351_v0 = vmul.f32 %v4343_v1, %v4343_v1 }
0x173e   :  { %4371 = vadd.xlane.f32.xlu1 %v4370_v45 }
0x173f   :  { %v4361_v42 = vsel %vm192_vm0, %v4351_v0, 0.0  ;;  %v4350_v49 = vmul.f32 %v8473_v48, %v8473_v48 }
0x1740   :  { %4362 = vadd.xlane.f32.xlu0 %v4361_v42 }
0x1741   :  { %v4358_v61 = vsel %vm192_vm0, %v4350_v49, 0.0 }
0x1742   :  { %4359 = vadd.xlane.f32.xlu1 %v4358_v61 }
0x1768   :  { %v4333_v24 = vpop.xlane.xlu0 %4332 }
0x1769   :  { %v4341_v9 = vmul.f32 0.0625, %v4333_v24 }
0x176a   :  { %v4330_v46 = vpop.xlane.xlu1 %4329 }
0x176b   :  { %v8480_v20 = vsub.f32 %v4307_v19, %v4341_v9  ;;  %v4340_v17 = vmul.f32 0.0625, %v4330_v46 }
0x176c   :  { %v4321_v62 = vpop.xlane.xlu0 %4320 }
0x176d   :  { %v8482_v3 = vsub.f32 %v4306_v4, %v4340_v17  ;;  %v4337_v5 = vmul.f32 0.0625, %v4321_v62  ;;  %v4357_v55 = vmul.f32 %v8480_v20, %v8480_v20 }
0x176e   :  { %v4318_v11 = vpop.xlane.xlu1 %4317 }
0x176f   :  { %v8486_v14 = vsub.f32 %v4303_v29, %v4337_v5  ;;  %v4336_v56 = vmul.f32 0.0625, %v4318_v11  ;;  %v4379_v51 = vsel %vm192_vm0, %v4357_v55, 0.0  ;;  %v4356_v57 = vmul.f32 %v8482_v3, %v8482_v3  ;;  %v4309_v29 = vld [vmem:[%s8855_s3 + $0x27] ss:$0 sm:$0xff] }
0x1770   :  { %4380 = vadd.xlane.f32.xlu0 %v4379_v51 }
0x1771   :  { %v8491_v39 = vsub.f32 %v4302_v22, %v4336_v56  ;;  %v4376_v13 = vsel %vm192_vm0, %v4356_v57, 0.0  ;;  %v4353_v63 = vmul.f32 %v8486_v14, %v8486_v14 }
0x1772   :  { %4377 = vadd.xlane.f32.xlu1 %v4376_v13 }
0x1773   :  { %v4367_v54 = vsel %vm192_vm0, %v4353_v63, 0.0  ;;  %v4352_v41 = vmul.f32 %v8491_v39, %v8491_v39 }
0x1774   :  { %4368 = vadd.xlane.f32.xlu0 %v4367_v54 }
0x1775   :  { %v4364_v6 = vsel %vm192_vm0, %v4352_v41, 0.0 }
0x1776   :  { %4365 = vadd.xlane.f32.xlu1 %v4364_v6 }
0x17c5   :  { %v4375_v59 = vpop.xlane.xlu0 %4374 }
0x17c6   :  { %v4387_v60 = vmul.f32 0.0625, %v4375_v59 }
0x17c7   :  { %v4372_v18 = vpop.xlane.xlu1 %4371 }
0x17c8   :  { %v4395_v31 = vadd.f32 1e-05, %v4387_v60  ;;  %v4386_v32 = vmul.f32 0.0625, %v4372_v18 }
0x17c9   :  { %v4363_v23 = vpop.xlane.xlu0 %4362 }
0x17ca   :  { %7004 = vrsqrt.f32 %v4395_v31  ;;  %v4394_v53 = vadd.f32 1e-05, %v4386_v32  ;;  %v4383_v35 = vmul.f32 0.0625, %v4363_v23  ;;  %v4960_v32 = vld [vmem:[#allocation2 + $0xf0] sm:$0xff]  ;;  %v4959_v23 = vld [vmem:[#allocation2 + $0xe8] sm:$0xff] }
0x17cb   :  { %v4360_v36 = vpop.xlane.xlu1 %4359 }
0x17cc   :  { %7006 = vrsqrt.f32 %v4394_v53  ;;  %v4391_v47 = vadd.f32 1e-05, %v4383_v35  ;;  %v4382_v25 = vmul.f32 0.0625, %v4360_v36  ;;  %v4958_v53 = vld [vmem:[#allocation2 + $0xe0] sm:$0xff]  ;;  %v5024_v35 = vld [vmem:[#allocation2 + $0x2f0] sm:$0xff]  ;;  %v4957_v36 = vld [vmem:[#allocation2 + $0xd8] sm:$0xff] }
0x17ce   :  { %7008 = vrsqrt.f32 %v4391_v47  ;;  %v4390_v28 = vadd.f32 1e-05, %v4382_v25  ;;  %v5023_v47 = vld [vmem:[#allocation2 + $0x2e8] sm:$0xff]  ;;  %v4956_v25 = vld [vmem:[#allocation2 + $0xd0] sm:$0xff] }
0x17d0   :  { %7010 = vrsqrt.f32 %v4390_v28  ;;  %v5022_v28 = vld [vmem:[#allocation2 + $0x2e0] sm:$0xff] }
0x17d7   :  { %v7005_v58 = vpop.eup %7004 }
0x17d8   :  { %v4411_v37 = vmul.f32 %v7005_v58, %v8464_v50  ;;  %v5021_v58 = vld [vmem:[#allocation2 + $0x2d8] sm:$0xff] }
0x17d9   :  { %v7007_v19 = vpop.eup %7006 }
0x17da   :  { %v4419_v12 = vmul.f32 %v4411_v37, %v4308_v27  ;;  %v4410_v4 = vmul.f32 %v7007_v19, %v8466_v10  ;;  %v5020_v37 = vld [vmem:[#allocation2 + $0x2d0] sm:$0xff]  ;;  %v4954_v19 = vld [vmem:[#allocation2 + $0xc0] sm:$0xff] }
0x17db   :  { %v7009_v7 = vpop.eup %7008 }
0x17dc   :  { %v4407_v22 = vmul.f32 %v7009_v7, %v4343_v1  ;;  %v4418_v52 = vmul.f32 %v4410_v4, %v4308_v27  ;;  %v4427_v30 = vadd.f32 %v4419_v12, %v4309_v29  ;;  %v5019_v12 = vld [vmem:[#allocation2 + $0x2c8] sm:$0xff]  ;;  %v5018_v4 = vld [vmem:[#allocation2 + $0x2c0] sm:$0xff]  ;;  %v4952_v7 = vld [vmem:[#allocation2 + $0xb0] sm:$0xff] }
0x17dd   :  { %v7011_v15 = vpop.eup %7010 }
0x17de   :  { %v4415_v34 = vmul.f32 %v4407_v22, %v4308_v27  ;;  %v4426_v26 = vadd.f32 %v4418_v52, %v4309_v29  ;;  %v4406_v16 = vmul.f32 %v7011_v15, %v8473_v48  ;;  %v4435_v50 = vmul.f32 0.25, %v4427_v30  ;;  %v5017_v22 = vld [vmem:[#allocation2 + $0x2b8] sm:$0xff]  ;;  %v4951_v52 = vld [vmem:[#allocation2 + $0xa8] sm:$0xff]  ;;  %v5016_v15 = vld [vmem:[#allocation2 + $0x2b0] sm:$0xff] }
0x17df   :  { %v4950_v30 = vld [vmem:[#allocation2 + $0xa0] sm:$0xff] }
0x17e0   :  { %v4434_v8 = vmul.f32 0.25, %v4426_v26  ;;  %v4414_v38 = vmul.f32 %v4406_v16, %v4308_v27  ;;  %v4423_v21 = vadd.f32 %v4415_v34, %v4309_v29  ;;  %v5015_v34 = vld [vmem:[#allocation2 + $0x2a8] sm:$0xff]  ;;  %v4949_v26 = vld [vmem:[#allocation2 + $0x98] sm:$0xff]  ;;  %v5014_v16 = vld [vmem:[#allocation2 + $0x2a0] sm:$0xff] }
0x17e2   :  { %6675 = vmatprep.mubr.msk.f32.mxu1 %vm192_vm0, %v4434_v8  ;;  %v4422_v33 = vadd.f32 %v4414_v38, %v4309_v29  ;;  %v4431_v10 = vmul.f32 0.25, %v4423_v21  ;;  %v4948_v8 = vld [vmem:[#allocation2 + $0x90] sm:$0xff]  ;;  %v5013_v38 = vld [vmem:[#allocation2 + $0x298] sm:$0xff] }
0x17e3   :  { %6676 = vmatmul.mubr.msk.f32.vlgmr.msra.gmra.mxu1 %vm192_vm0, %v4435_v50  ;;  %v4947_v50 = vld [vmem:[#allocation2 + $0x88] sm:$0xff]  ;;  %v5012_v21 = vld [vmem:[#allocation2 + $0x290] sm:$0xff] }
0x17e4   :  { %v4430_v43 = vmul.f32 0.25, %v4422_v33  ;;  %v4946_v33 = vld [vmem:[#allocation2 + $0x80] sm:$0xff] }
0x17e6   :  { %6661 = vmatprep.mubr.msk.f32.mxu0 %vm192_vm0, %v4430_v43  ;;  %v5011_v43 = vld [vmem:[#allocation2 + $0x288] sm:$0xff] }
0x17e7   :  { %6662 = vmatmul.mubr.msk.f32.vlgmr.msra.gmra.mxu0 %vm192_vm0, %v4431_v10  ;;  %v4945_v10 = vld [vmem:[#allocation2 + $0x78] sm:$0xff] }
0x17f9   :  { %v4381_v1 = vpop.xlane.xlu0 %4380 }
0x17fa   :  { %v4389_v2 = vmul.f32 0.0625, %v4381_v1  ;;  %v5010_v1 = vld [vmem:[#allocation2 + $0x280] sm:$0xff] }
0x17fb   :  { %v4378_v40 = vpop.xlane.xlu1 %4377 }
0x17fc   :  { %v4397_v44 = vadd.f32 1e-05, %v4389_v2  ;;  %v4388_v48 = vmul.f32 0.0625, %v4378_v40  ;;  %v4944_v2 = vld [vmem:[#allocation2 + $0x70] sm:$0xff]  ;;  %v5009_v40 = vld [vmem:[#allocation2 + $0x278] sm:$0xff] }
0x17fd   :  { %v4369_v45 = vpop.xlane.xlu0 %4368 }
0x17fe   :  { %7012 = vrsqrt.f32 %v4397_v44  ;;  %v4396_v0 = vadd.f32 1e-05, %v4388_v48  ;;  %v4385_v42 = vmul.f32 0.0625, %v4369_v45  ;;  %v4943_v44 = vld [vmem:[#allocation2 + $0x68] sm:$0xff]  ;;  %v5008_v48 = vld [vmem:[#allocation2 + $0x270] sm:$0xff]  ;;  %v4942_v45 = vld [vmem:[#allocation2 + $0x60] sm:$0xff] }
0x17ff   :  { %v4366_v49 = vpop.xlane.xlu1 %4365 }
0x1800   :  { %7014 = vrsqrt.f32 %v4396_v0  ;;  %v4393_v61 = vadd.f32 1e-05, %v4385_v42  ;;  %v4384_v24 = vmul.f32 0.0625, %v4366_v49  ;;  %v5007_v0 = vld [vmem:[#allocation2 + $0x268] sm:$0xff]  ;;  %v4941_v42 = vld [vmem:[#allocation2 + $0x58] sm:$0xff]  ;;  %v5006_v49 = vld [vmem:[#allocation2 + $0x260] sm:$0xff] }
0x1802   :  { %7016 = vrsqrt.f32 %v4393_v61  ;;  %v4392_v9 = vadd.f32 1e-05, %v4384_v24  ;;  %v4940_v61 = vld [vmem:[#allocation2 + $0x50] sm:$0xff]  ;;  %v5005_v24 = vld [vmem:[#allocation2 + $0x258] sm:$0xff] }
0x1804   :  { %7018 = vrsqrt.f32 %v4392_v9  ;;  %v4939_v9 = vld [vmem:[#allocation2 + $0x48] sm:$0xff] }
0x180b   :  { %v7013_v46 = vpop.eup %7012 }
0x180c   :  { %v4413_v17 = vmul.f32 %v7013_v46, %v8480_v20  ;;  %v5004_v46 = vld [vmem:[#allocation2 + $0x250] sm:$0xff] }
0x180d   :  { %v7015_v62 = vpop.eup %7014 }
0x180e   :  { %v4412_v5 = vmul.f32 %v7015_v62, %v8482_v3  ;;  %v4421_v55 = vmul.f32 %v4413_v17, %v4308_v27  ;;  %v4938_v17 = vld [vmem:[#allocation2 + $0x40] sm:$0xff]  ;;  %v5003_v62 = vld [vmem:[#allocation2 + $0x248] sm:$0xff] }
0x180f   :  { %v7017_v11 = vpop.eup %7016 }
0x1810   :  { %v4420_v56 = vmul.f32 %v4412_v5, %v4308_v27  ;;  %v4409_v51 = vmul.f32 %v7017_v11, %v8486_v14  ;;  %v4429_v13 = vadd.f32 %v4421_v55, %v4309_v29  ;;  %v4961_v14 = vld [vmem:[#allocation2 + $0xf8] sm:$0xff]  ;;  %v5002_v55 = vld [vmem:[#allocation2 + $0x240] sm:$0xff]  ;;  %v4936_v11 = vld [vmem:[#allocation2 + $0x30] sm:$0xff] }
0x1811   :  { %v7019_v57 = vpop.eup %7018  ;;  %5199 = vmatprep.subr.mxu0 %v4961_v14  ;;  %v4937_v5 = vld [vmem:[#allocation2 + $0x38] sm:$0xff]  ;;  %v4994_v14 = vld [vmem:[#allocation2 + $0x200] sm:$0xff] }
0x1812   :  { %v4428_v63 = vadd.f32 %v4420_v56, %v4309_v29  ;;  %v4408_v54 = vmul.f32 %v7019_v57, %v8491_v39  ;;  %v4417_v41 = vmul.f32 %v4409_v51, %v4308_v27  ;;  %v4437_v60 = vmul.f32 0.25, %v4429_v13  ;;  %v5025_v39 = vld [vmem:[#allocation2 + $0x2f8] sm:$0xff]  ;;  %5200 = vmatpush1.msra.mxu0 %v4960_v32  ;;  %v4935_v51 = vld [vmem:[#allocation2 + $0x28] sm:$0xff]  ;;  %v5000_v57 = vld [vmem:[#allocation2 + $0x230] sm:$0xff] }
0x1813   :  { %5270 = vmatprep.subr.mxu1 %v5025_v39  ;;  %5201 = vmatprep.subr.mxu0 %v4959_v23  ;;  %v5001_v56 = vld [vmem:[#allocation2 + $0x238] sm:$0xff]  ;;  %v4934_v13 = vld [vmem:[#allocation2 + $0x20] sm:$0xff]  ;;  %v4992_v32 = vld [vmem:[#allocation2 + $0x1f0] sm:$0xff] }
0x1814   :  { %v4436_v6 = vmul.f32 0.25, %v4428_v63  ;;  %v4416_v59 = vmul.f32 %v4408_v54, %v4308_v27  ;;  %v4425_v18 = vadd.f32 %v4417_v41, %v4309_v29  ;;  %5271 = vmatpush1.msra.mxu1 %v5024_v35  ;;  %5202 = vmatpush1.msra.mxu0 %v4958_v53  ;;  %v4955_v27 = vld [vmem:[#allocation2 + $0xc8] sm:$0xff]  ;;  %v4933_v54 = vld [vmem:[#allocation2 + $0x18] sm:$0xff]  ;;  %v4998_v41 = vld [vmem:[#allocation2 + $0x220] sm:$0xff] }
0x1815   :  { %5272 = vmatprep.subr.mxu1 %v5023_v47  ;;  %5203 = vmatprep.subr.mxu0 %v4957_v36  ;;  %v4999_v63 = vld [vmem:[#allocation2 + $0x228] sm:$0xff]  ;;  %v5057_v23 = vld [vmem:[#allocation2 + $0x3f8] sm:$0xff]  ;;  %v5056_v53 = vld [vmem:[#allocation2 + $0x3f0] sm:$0xff] }
0x1816   :  { %6678 = vmatprep.mubr.msk.f32.mxu1 %vm192_vm0, %v4436_v6  ;;  %v4424_v20 = vadd.f32 %v4416_v59, %v4309_v29  ;;  %v4433_v31 = vmul.f32 0.25, %v4425_v18  ;;  %5273 = vmatpush1.msra.mxu1 %v5022_v28  ;;  %v4953_v29 = vld [vmem:[#allocation2 + $0xb8] sm:$0xff]  ;;  %v4932_v6 = vld [vmem:[#allocation2 + $0x10] sm:$0xff]  ;;  %v4991_v39 = vld [vmem:[#allocation2 + $0x1e8] sm:$0xff] }
0x1817   :  { %6679 = vmatmul.mubr.msk.f32.gmra.mxu1 %vm192_vm0, %v4437_v60  ;;  %5204 = vmatpush1.msra.mxu0 %v4956_v25  ;;  %v4997_v59 = vld [vmem:[#allocation2 + $0x218] sm:$0xff]  ;;  %v4931_v60 = vld [vmem:[#allocation2 + $0x8] sm:$0xff]  ;;  %v4996_v18 = vld [vmem:[#allocation2 + $0x210] sm:$0xff] }
0x1818   :  { %v4432_v3 = vmul.f32 0.25, %v4424_v20  ;;  %5274 = vmatprep.subr.mxu1 %v5021_v58  ;;  %5205 = vmatprep.subr.mxu0 %v4955_v27  ;;  %v4930_v20 = vld [vmem:[#allocation2] sm:$0xff]  ;;  %v4989_v36 = vld [vmem:[#allocation2 + $0x1d8] sm:$0xff]  ;;  %v5055_v47 = vld [vmem:[#allocation2 + $0x3e8] sm:$0xff] }
0x1819   :  { %5275 = vmatpush1.msra.mxu1 %v5020_v37  ;;  %5206 = vmatpush1.msra.mxu0 %v4954_v19  ;;  %v4990_v35 = vld [vmem:[#allocation2 + $0x1e0] sm:$0xff]  ;;  %v4988_v25 = vld [vmem:[#allocation2 + $0x1d0] sm:$0xff]  ;;  %v4987_v58 = vld [vmem:[#allocation2 + $0x1c8] sm:$0xff] }
0x181a   :  { %6664 = vmatprep.mubr.msk.f32.mxu0 %vm192_vm0, %v4432_v3  ;;  %5276 = vmatprep.subr.mxu1 %v5019_v12  ;;  %v4995_v3 = vld [vmem:[#allocation2 + $0x208] sm:$0xff]  ;;  %v5054_v28 = vld [vmem:[#allocation2 + $0x3e0] sm:$0xff]  ;;  %v5053_v27 = vld [vmem:[#allocation2 + $0x3d8] sm:$0xff] }
0x181b   :  { %6665 = vmatmul.mubr.msk.f32.gmra.mxu0 %vm192_vm0, %v4433_v31  ;;  %5207 = vmatprep.subr.mxu0 %v4953_v29  ;;  %v4993_v31 = vld [vmem:[#allocation2 + $0x1f8] sm:$0xff]  ;;  %v4986_v37 = vld [vmem:[#allocation2 + $0x1c0] sm:$0xff]  ;;  %v5052_v19 = vld [vmem:[#allocation2 + $0x3d0] sm:$0xff] }
0x181c   :  { %5277 = vmatpush1.msra.mxu1 %v5018_v4  ;;  %5208 = vmatpush1.msra.mxu0 %v4952_v7  ;;  %v4985_v12 = vld [vmem:[#allocation2 + $0x1b8] sm:$0xff]  ;;  %v5051_v29 = vld [vmem:[#allocation2 + $0x3c8] sm:$0xff]  ;;  %v4984_v4 = vld [vmem:[#allocation2 + $0x1b0] sm:$0xff] }
0x181d   :  { %5278 = vmatprep.subr.mxu1 %v5017_v22  ;;  %5209 = vmatprep.subr.mxu0 %v4951_v52  ;;  %v5050_v7 = vld [vmem:[#allocation2 + $0x3c0] sm:$0xff] }
0x181e   :  { %5279 = vmatpush1.msra.mxu1 %v5016_v15  ;;  %5210 = vmatpush1.msra.mxu0 %v4950_v30  ;;  %v4983_v15 = vld [vmem:[#allocation2 + $0x1a8] sm:$0xff]  ;;  %v5049_v30 = vld [vmem:[#allocation2 + $0x3b8] sm:$0xff] }
0x181f   :  { %5280 = vmatprep.subr.mxu1 %v5015_v34  ;;  %5211 = vmatprep.subr.mxu0 %v4949_v26  ;;  %v4982_v34 = vld [vmem:[#allocation2 + $0x1a0] sm:$0xff] }
0x1820   :  { %5281 = vmatpush1.msra.mxu1 %v5014_v16  ;;  %5212 = vmatpush1.msra.mxu0 %v4948_v8  ;;  %v5048_v8 = vld [vmem:[#allocation2 + $0x3b0] sm:$0xff] }
0x1821   :  { %5282 = vmatprep.subr.mxu1 %v5013_v38  ;;  %5213 = vmatprep.subr.mxu0 %v4947_v50  ;;  %v4981_v50 = vld [vmem:[#allocation2 + $0x198] sm:$0xff] }
0x1822   :  { %5283 = vmatpush1.msra.mxu1 %v5012_v21  ;;  %5214 = vmatpush1.msra.mxu0 %v4946_v33  ;;  %v5047_v21 = vld [vmem:[#allocation2 + $0x3a8] sm:$0xff]  ;;  %v4980_v33 = vld [vmem:[#allocation2 + $0x190] sm:$0xff] }
0x1823   :  { %5284 = vmatprep.subr.mxu1 %v5011_v43  ;;  %5215 = vmatprep.subr.mxu0 %v4945_v10 }
0x1824   :  { %5285 = vmatpush1.msra.mxu1 %v5010_v1  ;;  %5216 = vmatpush1.msra.mxu0 %v4944_v2 }
0x1825   :  { %5286 = vmatprep.subr.mxu1 %v5009_v40  ;;  %5217 = vmatprep.subr.mxu0 %v4943_v44  ;;  %v5046_v40 = vld [vmem:[#allocation2 + $0x3a0] sm:$0xff]  ;;  %v4979_v44 = vld [vmem:[#allocation2 + $0x188] sm:$0xff] }
0x1826   :  { %5287 = vmatpush1.msra.mxu1 %v5008_v48  ;;  %5218 = vmatpush1.msra.mxu0 %v4942_v45  ;;  %v5045_v48 = vld [vmem:[#allocation2 + $0x398] sm:$0xff]  ;;  %v4978_v45 = vld [vmem:[#allocation2 + $0x180] sm:$0xff] }
0x1827   :  { %5288 = vmatprep.subr.mxu1 %v5007_v0  ;;  %5219 = vmatprep.subr.mxu0 %v4941_v42 }
0x1828   :  { %5289 = vmatpush1.msra.mxu1 %v5006_v49  ;;  %5220 = vmatpush1.msra.mxu0 %v4940_v61  ;;  %v5044_v61 = vld [vmem:[#allocation2 + $0x390] sm:$0xff] }
0x1829   :  { %5290 = vmatprep.subr.mxu1 %v5005_v24  ;;  %5221 = vmatprep.subr.mxu0 %v4939_v9  ;;  %v4977_v24 = vld [vmem:[#allocation2 + $0x178] sm:$0xff]  ;;  %v5043_v9 = vld [vmem:[#allocation2 + $0x388] sm:$0xff] }
0x182a   :  { %5291 = vmatpush1.msra.mxu1 %v5004_v46  ;;  %5222 = vmatpush1.msra.mxu0 %v4938_v17  ;;  %v4976_v46 = vld [vmem:[#allocation2 + $0x170] sm:$0xff] }
0x182b   :  { %5292 = vmatprep.subr.mxu1 %v5003_v62  ;;  %5223 = vmatprep.subr.mxu0 %v4937_v5 }
0x182c   :  { %5293 = vmatpush1.msra.mxu1 %v5002_v55  ;;  %5224 = vmatpush1.msra.mxu0 %v4936_v11  ;;  %v5042_v55 = vld [vmem:[#allocation2 + $0x380] sm:$0xff] }
0x182d   :  { %5294 = vmatprep.subr.mxu1 %v5001_v56  ;;  %5225 = vmatprep.subr.mxu0 %v4935_v51 }
0x182e   :  { %5295 = vmatpush1.msra.mxu1 %v5000_v57  ;;  %5226 = vmatpush1.msra.mxu0 %v4934_v13  ;;  %v4975_v13 = vld [vmem:[#allocation2 + $0x168] sm:$0xff] }
0x182f   :  { %5296 = vmatprep.subr.mxu1 %v4999_v63  ;;  %5227 = vmatprep.subr.mxu0 %v4933_v54  ;;  %v5041_v63 = vld [vmem:[#allocation2 + $0x378] sm:$0xff]  ;;  %v4974_v54 = vld [vmem:[#allocation2 + $0x160] sm:$0xff] }
0x1830   :  { %5297 = vmatpush1.msra.mxu1 %v4998_v41  ;;  %5228 = vmatpush1.msra.mxu0 %v4932_v6  ;;  %v5040_v41 = vld [vmem:[#allocation2 + $0x370] sm:$0xff]  ;;  %v4973_v6 = vld [vmem:[#allocation2 + $0x158] sm:$0xff] }
0x1831   :  { %5298 = vmatprep.subr.mxu1 %v4997_v59  ;;  %5229 = vmatprep.subr.mxu0 %v4931_v60 }
0x1832   :  { %5299 = vmatpush1.msra.mxu1 %v4996_v18  ;;  %5230 = vmatpush1.msra.mxu0 %v4930_v20 }
0x1833   :  { %5300 = vmatprep.subr.mxu1 %v4995_v3  ;;  %5231 = vmatprep.subr.mxu0 %v4993_v31  ;;  %v5039_v3 = vld [vmem:[#allocation2 + $0x368] sm:$0xff]  ;;  %v4972_v31 = vld [vmem:[#allocation2 + $0x150] sm:$0xff] }
0x1834   :  { %5301 = vmatpush1.msra.mxu1 %v4994_v14  ;;  %5232 = vmatpush2.msra.mxu0 %v4992_v32  ;;  %v5038_v14 = vld [vmem:[#allocation2 + $0x360] sm:$0xff] }
0x1835   :  { %5302 = vmatprep.subr.mxu1 %v5057_v23  ;;  %5233 = vmatprep.subr.mxu0 %v4991_v39  ;;  %v4971_v39 = vld [vmem:[#allocation2 + $0x148] sm:$0xff] }
0x1836   :  { %5303 = vmatpush2.msra.mxu1 %v5056_v53  ;;  %5234 = vmatpush2.msra.mxu0 %v4990_v35  ;;  %v5037_v53 = vld [vmem:[#allocation2 + $0x358] sm:$0xff]  ;;  %v4970_v35 = vld [vmem:[#allocation2 + $0x140] sm:$0xff] }
0x1837   :  { %5235 = vmatprep.subr.mxu0 %v4989_v36  ;;  %5304 = vmatprep.subr.mxu1 %v5055_v47 }
0x1838   :  { %5236 = vmatpush2.msra.mxu0 %v4988_v25  ;;  %5305 = vmatpush2.msra.mxu1 %v5054_v28 }
0x1839   :  { %5237 = vmatprep.subr.mxu0 %v4987_v58  ;;  %5306 = vmatprep.subr.mxu1 %v5053_v27  ;;  %v5036_v58 = vld [vmem:[#allocation2 + $0x350] sm:$0xff]  ;;  %v4969_v27 = vld [vmem:[#allocation2 + $0x138] sm:$0xff] }
0x183a   :  { %5238 = vmatpush2.msra.mxu0 %v4986_v37  ;;  %5307 = vmatpush2.msra.mxu1 %v5052_v19  ;;  %v5035_v37 = vld [vmem:[#allocation2 + $0x348] sm:$0xff] }
0x183b   :  { %5239 = vmatprep.subr.mxu0 %v4985_v12  ;;  %5308 = vmatprep.subr.mxu1 %v5051_v29 }
0x183c   :  { %5240 = vmatpush2.msra.mxu0 %v4984_v4  ;;  %5309 = vmatpush2.msra.mxu1 %v5050_v7  ;;  %v4968_v4 = vld [vmem:[#allocation2 + $0x130] sm:$0xff]  ;;  %v5034_v7 = vld [vmem:[#allocation2 + $0x340] sm:$0xff] }
0x183d   :  { %5241 = vmatprep.subr.mxu0 %v4983_v15  ;;  %5310 = vmatprep.subr.mxu1 %v5049_v30  ;;  %v4967_v15 = vld [vmem:[#allocation2 + $0x128] sm:$0xff] }
0x183e   :  { %5242 = vmatpush2.msra.mxu0 %v4982_v34  ;;  %5311 = vmatpush2.msra.mxu1 %v5048_v8  ;;  %v5033_v34 = vld [vmem:[#allocation2 + $0x338] sm:$0xff] }
0x183f   :  { %5243 = vmatprep.subr.mxu0 %v4981_v50  ;;  %5312 = vmatprep.subr.mxu1 %v5047_v21 }
0x1840   :  { %5244 = vmatpush2.msra.mxu0 %v4980_v33  ;;  %5313 = vmatpush2.msra.mxu1 %v5046_v40  ;;  %v4965_v33 = vld [vmem:[#allocation2 + $0x118] sm:$0xff] }
0x1841   :  { %5245 = vmatprep.subr.mxu0 %v4979_v44  ;;  %5314 = vmatprep.subr.mxu1 %v5045_v48  ;;  %v5029_v40 = vld [vmem:[#allocation2 + $0x318] sm:$0xff]  ;;  %v4962_v44 = vld [vmem:[#allocation2 + $0x100] sm:$0xff] }
0x1842   :  { %5246 = vmatpush2.msra.mxu0 %v4978_v45  ;;  %5315 = vmatpush2.msra.mxu1 %v5044_v61  ;;  %v5027_v61 = vld [vmem:[#allocation2 + $0x308] sm:$0xff] }
0x1843   :  { %5247 = vmatprep.subr.mxu0 %v4977_v24  ;;  %5316 = vmatprep.subr.mxu1 %v5043_v9  ;;  %v5026_v24 = vld [vmem:[#allocation2 + $0x300] sm:$0xff]  ;;  %v5153_v9 = vld [vmem:[#allocation2 + $0x6f8] sm:$0xff] }
0x1844   :  { %5248 = vmatpush2.msra.mxu0 %v4976_v46  ;;  %5317 = vmatpush2.msra.mxu1 %v5042_v55 }
0x1845   :  { %5249 = vmatprep.subr.mxu0 %v4975_v13  ;;  %5318 = vmatprep.subr.mxu1 %v5041_v63 }
0x1846   :  { %5250 = vmatpush2.msra.mxu0 %v4974_v54  ;;  %5319 = vmatpush2.msra.mxu1 %v5040_v41 }
0x1847   :  { %5251 = vmatprep.subr.mxu0 %v4973_v6  ;;  %5320 = vmatprep.subr.mxu1 %v5039_v3 }
0x1848   :  { %5252 = vmatpush2.msra.mxu0 %v4972_v31  ;;  %5321 = vmatpush2.msra.mxu1 %v5038_v14 }
0x1849   :  { %5253 = vmatprep.subr.mxu0 %v4971_v39  ;;  %5322 = vmatprep.subr.mxu1 %v5037_v53 }
0x184a   :  { %5254 = vmatpush2.msra.mxu0 %v4970_v35  ;;  %5323 = vmatpush2.msra.mxu1 %v5036_v58 }
0x184b   :  { %5255 = vmatprep.subr.mxu0 %v4969_v27  ;;  %5324 = vmatprep.subr.mxu1 %v5035_v37 }
0x184c   :  { %5256 = vmatpush2.msra.mxu0 %v4968_v4  ;;  %5325 = vmatpush2.msra.mxu1 %v5034_v7 }
0x184d   :  { %5257 = vmatprep.subr.mxu0 %v4967_v15  ;;  %5326 = vmatprep.subr.mxu1 %v5033_v34 }
0x18a3   :  { %v8521_v22 = vpop.f32.mrf.mxu1 }
0x18a4   :  { %v4807_v1 = vrot.slane %v8521_v22, 5  ;;  %v4793_v42 = vrot.slane %v8521_v22, 1  ;;  %v4811_v62 = vrot.slane %v8521_v22, 6  ;;  %v4797_v51 = vrot.slane %v8521_v22, 2 }
0x18a5   :  { %v8538_v11 = vpop.f32.mrf.mxu1  ;;  %v4815_v60 = vrot.slane %v8521_v22, 7  ;;  %v4801_v47 = vrot.slane %v8521_v22, 3 }
0x18a6   :  { %v4770_v18 = vrot.slane %v8538_v11, 2  ;;  %v4784_v20 = vrot.slane %v8538_v11, 6  ;;  %v4766_v12 = vrot.slane %v8538_v11, 1  ;;  %v4780_v29 = vrot.slane %v8538_v11, 5 }
0x18a7   :  { %v8523_v52 = vpop.f32.mrf.mxu0  ;;  %v4774_v50 = vrot.slane %v8538_v11, 3  ;;  %v4788_v21 = vrot.slane %v8538_v11, 7 }
0x18a8   :  { %v4563_v26 = vrot.slane %v8523_v52, 1  ;;  %v4577_v16 = vrot.slane %v8523_v52, 5  ;;  %v6748_v36 = vpack.i.bf16 %v4770_v18, %v4784_v20  ;;  %v4567_v25 = vrot.slane %v8523_v52, 2 }
0x18a9   :  { %v8527_v38 = vpop.f32.mrf.mxu0  ;;  %v4581_v28 = vrot.slane %v8523_v52, 6  ;;  %v6743_v8 = vpack.i.bf16 %v4766_v12, %v4780_v29  ;;  %v6758_v48 = vpack.i.bf16 %v4774_v50, %v4788_v21  ;;  %v4571_v45 = vrot.slane %v8523_v52, 3 }
0x18aa   :  { %v6708_v43 = vpack.i.bf16 %v4563_v26, %v4577_v16  ;;  %v4550_v10 = vrot.slane %v8527_v38, 5  ;;  %v4536_v2 = vrot.slane %v8527_v38, 1  ;;  %v4554_v49 = vrot.slane %v8527_v38, 6  ;;  %v4966_v26 = vld [vmem:[#allocation2 + $0x120] sm:$0xff]  ;;  %v5032_v16 = vld [vmem:[#allocation2 + $0x330] sm:$0xff] }
0x18ab   :  { %v4540_v5 = vrot.slane %v8527_v38, 2  ;;  %v4558_v57 = vrot.slane %v8527_v38, 7  ;;  %v4544_v23 = vrot.slane %v8527_v38, 3  ;;  %v6753_v30 = vpack.i.bf16 %v4567_v25, %v4581_v28  ;;  %5258 = vmatpush2.msra.mxu0 %v4966_v26  ;;  %5327 = vmatpush2.msra.mxu1 %v5032_v16 }
0x18ac   :  { %6709 = vrot.lane.b32.xlu0 %v6708_v43, %s7070_s10  ;;  %v6713_v0 = vpack.i.bf16 %v4807_v1, %v4550_v10  ;;  %v6718_v17 = vpack.i.bf16 %v4793_v42, %v4536_v2  ;;  %v6723_v56 = vpack.i.bf16 %v4811_v62, %v4554_v49  ;;  %v5031_v43 = vld [vmem:[#allocation2 + $0x328] sm:$0xff]  ;;  %v4964_v10 = vld [vmem:[#allocation2 + $0x110] sm:$0xff]  ;;  %v5030_v1 = vld [vmem:[#allocation2 + $0x320] sm:$0xff]  ;;  %5259 = vmatprep.subr.mxu0 %v4965_v33 }
0x18ad   :  { %v6728_v59 = vpack.i.bf16 %v4797_v51, %v4540_v5  ;;  %v6733_v32 = vpack.i.bf16 %v4815_v60, %v4558_v57  ;;  %v6738_v19 = vpack.i.bf16 %v4801_v47, %v4544_v23  ;;  %v4963_v2 = vld [vmem:[#allocation2 + $0x108] sm:$0xff]  ;;  %5328 = vmatprep.subr.mxu1 %v5031_v43  ;;  %5260 = vmatpush2.msra.mxu0 %v4964_v10  ;;  %v5028_v42 = vld [vmem:[#allocation2 + $0x310] sm:$0xff]  ;;  %v5089_v49 = vld [vmem:[#allocation2 + $0x4f8] sm:$0xff] }
0x18ae   :  { %6714 = vrot.lane.b32.xlu1 %v6713_v0, %s7070_s10  ;;  %v4585_v0 = vrot.slane %v8523_v52, 7  ;;  %5329 = vmatpush2.msra.mxu1 %v5030_v1 }
0x18af   :  { %5261 = vmatprep.subr.mxu0 %v4963_v2  ;;  %5330 = vmatprep.subr.mxu1 %v5029_v40 }
0x18b0   :  { %6719 = vrot.lane.b32.xlu0 %v6718_v17, %s7070_s10  ;;  %5262 = vmatpush2.msra.mxu0 %v4962_v44  ;;  %v6763_v46 = vpack.i.bf16 %v4571_v45, %v4585_v0  ;;  %v4805_v44 = vrot.slane %v8521_v22, 4  ;;  %v4778_v0 = vrot.slane %v8538_v11, 4 }
0x18b1   :  { %5331 = vmatpush2.msra.mxu1 %v5028_v42  ;;  %5341 = vmatprep.subr.mxu0 %v5089_v49  ;;  %v4575_v42 = vrot.slane %v8523_v52, 4 }
0x18b2   :  { %6724 = vrot.lane.b32.xlu1 %v6723_v56, %s7071_s11  ;;  %5332 = vmatprep.subr.mxu1 %v5027_v61 }
0x18b3   :  { %5333 = vmatpush2.msra.mxu1 %v5026_v24 }
0x18b4   :  { %6729 = vrot.lane.b32.xlu0 %v6728_v59, %s7071_s11  ;;  %5412 = vmatprep.subr.mxu1 %v5153_v9  ;;  %v4548_v9 = vrot.slane %v8527_v38, 4 }
0x18b6   :  { %6734 = vrot.lane.b32.xlu1 %v6733_v32, %s7072_s12 }
0x18b8   :  { %6749 = vrot.lane.b32.xlu0 %v6748_v36, %s7071_s11 }
0x18ba   :  { %6739 = vrot.lane.b32.xlu1 %v6738_v19, %s7072_s12 }
0x18bc   :  { %6754 = vrot.lane.b32.xlu0 %v6753_v30, %s7071_s11 }
0x18be   :  { %6744 = vrot.lane.b32.xlu1 %v6743_v8, %s7070_s10 }
0x18c2   :  { %6759 = vrot.lane.b32.xlu1 %v6758_v48, %s7072_s12 }
0x18c6   :  { %6764 = vrot.lane.b32.xlu1 %v6763_v46, %s7072_s12 }
0x18d7   :  { %v8565_v17 = vpop.f32.mrf.mxu1 }
0x18d8   :  { %v4877_v56 = vrot.slane %v8565_v17, 6  ;;  %v4873_v57 = vrot.slane %v8565_v17, 5  ;;  %v4881_v6 = vrot.slane %v8565_v17, 7  ;;  %v4859_v59 = vrot.slane %v8565_v17, 1 }
0x18d9   :  { %v8581_v60 = vpop.f32.mrf.mxu1  ;;  %v4867_v14 = vrot.slane %v8565_v17, 3  ;;  %v4863_v32 = vrot.slane %v8565_v17, 2 }
0x18da   :  { %v4836_v23 = vrot.slane %v8581_v60, 2  ;;  %v4850_v39 = vrot.slane %v8581_v60, 6  ;;  %v4832_v36 = vrot.slane %v8581_v60, 1  ;;  %v4846_v47 = vrot.slane %v8581_v60, 5 }
0x18db   :  { %v8567_v62 = vpop.f32.mrf.mxu0  ;;  %v4840_v25 = vrot.slane %v8581_v60, 3  ;;  %v4854_v28 = vrot.slane %v8581_v60, 7 }
0x18dc   :  { %v6808_v58 = vpack.i.bf16 %v4836_v23, %v4850_v39  ;;  %v6793_v27 = vpack.i.bf16 %v4832_v36, %v4846_v47  ;;  %v4630_v37 = vrot.slane %v8567_v62, 1  ;;  %v4644_v19 = vrot.slane %v8567_v62, 5 }
0x18dd   :  { %v8569_v5 = vpop.f32.mrf.mxu0  ;;  %v6813_v12 = vpack.i.bf16 %v4840_v25, %v4854_v28  ;;  %v4638_v29 = vrot.slane %v8567_v62, 3  ;;  %v4652_v7 = vrot.slane %v8567_v62, 7  ;;  %v4634_v15 = vrot.slane %v8567_v62, 2 }
0x18de   :  { %v4621_v55 = vrot.slane %v8569_v5, 6  ;;  %v4617_v51 = vrot.slane %v8569_v5, 5  ;;  %v4625_v54 = vrot.slane %v8569_v5, 7  ;;  %v4603_v41 = vrot.slane %v8569_v5, 1 }
0x18df   :  { %v4611_v3 = vrot.slane %v8569_v5, 3  ;;  %v4607_v31 = vrot.slane %v8569_v5, 2  ;;  %v6798_v4 = vpack.i.bf16 %v4630_v37, %v4644_v19  ;;  %v4648_v30 = vrot.slane %v8567_v62, 6 }
0x18e0   :  { %v6778_v13 = vpack.i.bf16 %v4877_v56, %v4621_v55  ;;  %v6768_v63 = vpack.i.bf16 %v4873_v57, %v4617_v51  ;;  %v6788_v18 = vpack.i.bf16 %v4881_v6, %v4625_v54  ;;  %v6773_v20 = vpack.i.bf16 %v4859_v59, %v4603_v41 }
0x18e1   :  { %v6803_v53 = vpack.i.bf16 %v4867_v14, %v4611_v3  ;;  %v6783_v35 = vpack.i.bf16 %v4863_v32, %v4607_v31  ;;  %v6823_v34 = vpack.i.bf16 %v4638_v29, %v4652_v7  ;;  %v6818_v26 = vpack.i.bf16 %v4634_v15, %v4648_v30 }
0x18e2   :  { %6779 = vrot.lane.b32.xlu1 %v6778_v13, %s7071_s11  ;;  %6769 = vrot.lane.b32.xlu0 %v6768_v63, %s7070_s10 }
0x18e6   :  { %6789 = vrot.lane.b32.xlu1 %v6788_v18, %s7072_s12  ;;  %6774 = vrot.lane.b32.xlu0 %v6773_v20, %s7070_s10 }
0x18ea   :  { %6804 = vrot.lane.b32.xlu1 %v6803_v53, %s7072_s12  ;;  %6784 = vrot.lane.b32.xlu0 %v6783_v35, %s7071_s11 }
0x18ee   :  { %6809 = vrot.lane.b32.xlu1 %v6808_v58, %s7071_s11  ;;  %6794 = vrot.lane.b32.xlu0 %v6793_v27, %s7070_s10 }
0x18f2   :  { %6814 = vrot.lane.b32.xlu1 %v6813_v12, %s7072_s12  ;;  %6799 = vrot.lane.b32.xlu0 %v6798_v4, %s7070_s10 }
0x18f6   :  { %6824 = vrot.lane.b32.xlu1 %v6823_v34, %s7072_s12  ;;  %6819 = vrot.lane.b32.xlu0 %v6818_v26, %s7071_s11 }
0x191e   :  { %v6710_v16 = vpop.permute.xlu0 %6709 }
0x191f   :  { %v6712_v10 = vunpack.i.h.bf16 %v6710_v16  ;;  %v6711_v1 = vunpack.i.l.bf16 %v6710_v16 }
0x1920   :  { %v6715_v8 = vpop.permute.xlu1 %6714 }
0x1921   :  { %v6717_v2 = vunpack.i.h.bf16 %v6715_v8  ;;  %v6716_v48 = vunpack.i.l.bf16 %v6715_v8  ;;  %v4596_v55 = vsel %vm672_vm2, %v8523_v52, %v6712_v10  ;;  %v4599_v56 = vsel %vm672_vm2, %v4575_v42, %v6711_v1  ;;  %v5088_v1 = vld [vmem:[#allocation2 + $0x4f0] sm:$0xff]  ;;  %v5086_v42 = vld [vmem:[#allocation2 + $0x4e0] sm:$0xff] }
0x1922   :  { %v6720_v50 = vpop.permute.xlu0 %6719 }
0x1923   :  { %v6722_v49 = vunpack.i.h.bf16 %v6720_v50  ;;  %v6721_v61 = vunpack.i.l.bf16 %v6720_v50  ;;  %v4828_v51 = vsel %vm672_vm2, %v4805_v44, %v6717_v2  ;;  %v4593_v63 = vsel %vm672_vm2, %v4548_v9, %v6716_v48  ;;  %v5087_v48 = vld [vmem:[#allocation2 + $0x4e8] sm:$0xff]  ;;  %v5084_v9 = vld [vmem:[#allocation2 + $0x4d0] sm:$0xff] }
0x1924   :  { %v6725_v21 = vpop.permute.xlu1 %6724 }
0x1925   :  { %v6727_v24 = vunpack.i.h.bf16 %v6725_v21  ;;  %v4825_v59 = vsel %vm672_vm2, %v8521_v22, %v6722_v49  ;;  %v4589_v18 = vsel %vm672_vm2, %v8527_v38, %v6721_v61  ;;  %v6726_v20 = vunpack.i.l.bf16 %v6725_v21  ;;  %v5152_v49 = vld [vmem:[#allocation2 + $0x6f0] sm:$0xff]  ;;  %v5085_v61 = vld [vmem:[#allocation2 + $0x4d8] sm:$0xff] }
0x1926   :  { %v6730_v33 = vpop.permute.xlu0 %6729 }
0x1927   :  { %v6732_v46 = vunpack.i.h.bf16 %v6730_v33  ;;  %v4829_v52 = vsel %vm2056_vm3, %v4828_v51, %v6727_v24  ;;  %v6731_v3 = vunpack.i.l.bf16 %v6730_v33  ;;  %v4594_v4 = vsel %vm2056_vm3, %v4593_v63, %v6726_v20  ;;  %v5151_v24 = vld [vmem:[#allocation2 + $0x6e8] sm:$0xff]  ;;  %v5082_v51 = vld [vmem:[#allocation2 + $0x4c0] sm:$0xff]  ;;  %v5144_v20 = vld [vmem:[#allocation2 + $0x6b0] sm:$0xff] }
0x1928   :  { %v6735_v43 = vpop.permute.xlu1 %6734  ;;  %v5147_v63 = vld [vmem:[#allocation2 + $0x6c8] sm:$0xff] }
0x1929   :  { %v6737_v57 = vunpack.i.h.bf16 %v6735_v43  ;;  %v4826_v31 = vsel %vm2056_vm3, %v4825_v59, %v6732_v46  ;;  %v6736_v39 = vunpack.i.l.bf16 %v6735_v43  ;;  %v5150_v46 = vld [vmem:[#allocation2 + $0x6e0] sm:$0xff]  ;;  %v5145_v59 = vld [vmem:[#allocation2 + $0x6b8] sm:$0xff] }
0x192a   :  { %v6750_v45 = vpop.permute.xlu0 %6749 }
0x192b   :  { %v4830_v53 = vsel %vm4591_vm4, %v4829_v52, %v6737_v57  ;;  %v6752_v35 = vunpack.i.h.bf16 %v6750_v45  ;;  %v6751_v22 = vunpack.i.l.bf16 %v6750_v45  ;;  %v4595_v30 = vsel %vm4591_vm4, %v4594_v4, %v6736_v39  ;;  %v5148_v57 = vld [vmem:[#allocation2 + $0x6d0] sm:$0xff]  ;;  %v5077_v52 = vld [vmem:[#allocation2 + $0x498] sm:$0xff]  ;;  %v5074_v39 = vld [vmem:[#allocation2 + $0x480] sm:$0xff] }
0x192c   :  { %v6740_v40 = vpop.permute.xlu1 %6739  ;;  %v4908_v26 = vrot.slane %v4830_v53, 7  ;;  %v5140_v53 = vld [vmem:[#allocation2 + $0x690] sm:$0xff]  ;;  %v5066_v4 = vld [vmem:[#allocation2 + $0x440] sm:$0xff] }
0x192d   :  { %v6742_v54 = vunpack.i.h.bf16 %v6740_v40  ;;  %v6741_v47 = vunpack.i.l.bf16 %v6740_v40 }
0x192e   :  { %v6755_v14 = vpop.permute.xlu0 %6754 }
0x192f   :  { %v4827_v38 = vsel %vm4591_vm4, %v4826_v31, %v6742_v54  ;;  %v6757_v58 = vunpack.i.h.bf16 %v6755_v14  ;;  %v6756_v27 = vunpack.i.l.bf16 %v6755_v14  ;;  %v5080_v54 = vld [vmem:[#allocation2 + $0x4b0] sm:$0xff]  ;;  %v5142_v14 = vld [vmem:[#allocation2 + $0x6a0] sm:$0xff] }
0x1930   :  { %v6745_v13 = vpop.permute.xlu1 %6744  ;;  %v4907_v8 = vrot.slane %v4827_v38, 7  ;;  %v5076_v31 = vld [vmem:[#allocation2 + $0x490] sm:$0xff]  ;;  %v5071_v38 = vld [vmem:[#allocation2 + $0x468] sm:$0xff] }
0x1931   :  { %v6747_v41 = vunpack.i.h.bf16 %v6745_v13  ;;  %v6746_v6 = vunpack.i.l.bf16 %v6745_v13  ;;  %v4597_v33 = vsel %vm2056_vm3, %v4596_v55, %v6757_v58  ;;  %v4600_v2 = vsel %vm2056_vm3, %v4599_v56, %v6756_v27  ;;  %v5083_v55 = vld [vmem:[#allocation2 + $0x4c8] sm:$0xff]  ;;  %v5149_v56 = vld [vmem:[#allocation2 + $0x6d8] sm:$0xff]  ;;  %v5136_v58 = vld [vmem:[#allocation2 + $0x670] sm:$0xff] }
0x1932   :  { %v5081_v13 = vld [vmem:[#allocation2 + $0x4b8] sm:$0xff] }
0x1933   :  { %v4819_v32 = vsel %vm672_vm2, %v8538_v11, %v6747_v41  ;;  %v4822_v23 = vsel %vm672_vm2, %v4778_v0, %v6746_v6  ;;  %v4590_v11 = vsel %vm2056_vm3, %v4589_v18, %v6731_v3  ;;  %v5146_v41 = vld [vmem:[#allocation2 + $0x6c0] sm:$0xff]  ;;  %v5079_v6 = vld [vmem:[#allocation2 + $0x4a8] sm:$0xff]  ;;  %v5069_v27 = vld [vmem:[#allocation2 + $0x458] sm:$0xff] }
0x1934   :  { %v6760_v36 = vpop.permute.xlu1 %6759  ;;  %v4820_v37 = vsel %vm2056_vm3, %v4819_v32, %v6752_v35  ;;  %v4823_v19 = vsel %vm2056_vm3, %v4822_v23, %v6751_v22  ;;  %v4592_v16 = vsel %vm4591_vm4, %v4590_v11, %v6741_v47  ;;  %v5078_v18 = vld [vmem:[#allocation2 + $0x4a0] sm:$0xff]  ;;  %v5143_v3 = vld [vmem:[#allocation2 + $0x6a8] sm:$0xff]  ;;  %v5141_v23 = vld [vmem:[#allocation2 + $0x698] sm:$0xff] }
0x1935   :  { %v6762_v25 = vunpack.i.h.bf16 %v6760_v36  ;;  %v6761_v28 = vunpack.i.l.bf16 %v6760_v36  ;;  %v5075_v32 = vld [vmem:[#allocation2 + $0x488] sm:$0xff]  ;;  %v5073_v35 = vld [vmem:[#allocation2 + $0x478] sm:$0xff]  ;;  %v5072_v36 = vld [vmem:[#allocation2 + $0x470] sm:$0xff] }
0x1936   :  { %v5139_v22 = vld [vmem:[#allocation2 + $0x688] sm:$0xff]  ;;  %v5138_v47 = vld [vmem:[#allocation2 + $0x680] sm:$0xff] }
0x1937   :  { %v4821_v12 = vsel %vm4591_vm4, %v4820_v37, %v6762_v25  ;;  %v4824_v29 = vsel %vm4591_vm4, %v4823_v19, %v6761_v28  ;;  %v5137_v25 = vld [vmem:[#allocation2 + $0x678] sm:$0xff]  ;;  %v5070_v28 = vld [vmem:[#allocation2 + $0x460] sm:$0xff]  ;;  %v5135_v37 = vld [vmem:[#allocation2 + $0x668] sm:$0xff] }
0x1938   :  { %v4905_v7 = vrot.slane %v4821_v12, 7  ;;  %v6765_v15 = vpop.permute.xlu1 %6764  ;;  %v4906_v34 = vrot.slane %v4824_v29, 7  ;;  %v5068_v19 = vld [vmem:[#allocation2 + $0x450] sm:$0xff]  ;;  %v5134_v11 = vld [vmem:[#allocation2 + $0x660] sm:$0xff]  ;;  %v5067_v12 = vld [vmem:[#allocation2 + $0x448] sm:$0xff] }
0x1939   :  { %v6767_v50 = vunpack.i.h.bf16 %v6765_v15  ;;  %v6766_v21 = vunpack.i.l.bf16 %v6765_v15  ;;  %v5133_v29 = vld [vmem:[#allocation2 + $0x658] sm:$0xff] }
0x193a   :  { %v4923_v43 = vsel %vm4921_vm5, %v4595_v30, %v4906_v34  ;;  %v4922_v10 = vsel %vm4921_vm5, %v4592_v16, %v4905_v7  ;;  %v5132_v7 = vld [vmem:[#allocation2 + $0x650] sm:$0xff]  ;;  %v5065_v15 = vld [vmem:[#allocation2 + $0x438] sm:$0xff]  ;;  %v5131_v30 = vld [vmem:[#allocation2 + $0x648] sm:$0xff] }
0x193b   :  { %v4598_v40 = vsel %vm4591_vm4, %v4597_v33, %v6767_v50  ;;  %5263 = vmatprep.mubr.f32.mxu0 %v4923_v43  ;;  %v4601_v44 = vsel %vm4591_vm4, %v4600_v2, %v6766_v21  ;;  %v5064_v34 = vld [vmem:[#allocation2 + $0x430] sm:$0xff]  ;;  %v5063_v16 = vld [vmem:[#allocation2 + $0x428] sm:$0xff]  ;;  %v5062_v33 = vld [vmem:[#allocation2 + $0x420] sm:$0xff] }
0x193c   :  { %5264 = vmatmul.mubr.f32.vlgmr.msra.gmra.mxu0 %v4922_v10  ;;  %v4925_v45 = vsel %vm4921_vm5, %v4601_v44, %v4908_v26  ;;  %v4924_v0 = vsel %vm4921_vm5, %v4598_v40, %v4907_v8  ;;  %v5130_v26 = vld [vmem:[#allocation2 + $0x640] sm:$0xff]  ;;  %v5129_v8 = vld [vmem:[#allocation2 + $0x638] sm:$0xff]  ;;  %v5128_v43 = vld [vmem:[#allocation2 + $0x630] sm:$0xff] }
0x193d   :  { %5342 = vmatpush1.msra.mxu0 %v5088_v1  ;;  %5334 = vmatprep.mubr.f32.mxu1 %v4925_v45  ;;  %v5061_v10 = vld [vmem:[#allocation2 + $0x418] sm:$0xff]  ;;  %v5127_v1 = vld [vmem:[#allocation2 + $0x628] sm:$0xff]  ;;  %v5060_v2 = vld [vmem:[#allocation2 + $0x410] sm:$0xff] }
0x193e   :  { %5343 = vmatprep.subr.mxu0 %v5087_v48  ;;  %5335 = vmatmul.mubr.f32.vlgmr.msra.gmra.mxu1 %v4924_v0  ;;  %v5126_v40 = vld [vmem:[#allocation2 + $0x620] sm:$0xff]  ;;  %v5059_v44 = vld [vmem:[#allocation2 + $0x408] sm:$0xff]  ;;  %v5125_v48 = vld [vmem:[#allocation2 + $0x618] sm:$0xff] }
0x193f   :  { %5344 = vmatpush1.msra.mxu0 %v5086_v42  ;;  %5413 = vmatpush1.msra.mxu1 %v5152_v49  ;;  %v5058_v42 = vld [vmem:[#allocation2 + $0x400] sm:$0xff]  ;;  %v5124_v49 = vld [vmem:[#allocation2 + $0x610] sm:$0xff] }
0x1940   :  { %5345 = vmatprep.subr.mxu0 %v5085_v61  ;;  %5414 = vmatprep.subr.mxu1 %v5151_v24  ;;  %v5121_v61 = vld [vmem:[#allocation2 + $0x5f8] sm:$0xff]  ;;  %v5123_v24 = vld [vmem:[#allocation2 + $0x608] sm:$0xff] }
0x1941   :  { %5346 = vmatpush1.msra.mxu0 %v5084_v9  ;;  %5415 = vmatpush1.msra.mxu1 %v5150_v46  ;;  %v5120_v9 = vld [vmem:[#allocation2 + $0x5f0] sm:$0xff]  ;;  %v5122_v46 = vld [vmem:[#allocation2 + $0x600] sm:$0xff] }
0x1942   :  { %5347 = vmatprep.subr.mxu0 %v5083_v55  ;;  %5416 = vmatprep.subr.mxu1 %v5149_v56  ;;  %v5119_v55 = vld [vmem:[#allocation2 + $0x5e8] sm:$0xff]  ;;  %v5185_v56 = vld [vmem:[#allocation2 + $0x7f8] sm:$0xff] }
0x1943   :  { %5348 = vmatpush1.msra.mxu0 %v5082_v51  ;;  %5417 = vmatpush1.msra.mxu1 %v5148_v57 }
0x1944   :  { %5349 = vmatprep.subr.mxu0 %v5081_v13  ;;  %5418 = vmatprep.subr.mxu1 %v5147_v63  ;;  %v5118_v13 = vld [vmem:[#allocation2 + $0x5e0] sm:$0xff]  ;;  %v5184_v63 = vld [vmem:[#allocation2 + $0x7f0] sm:$0xff] }
0x1945   :  { %5350 = vmatpush1.msra.mxu0 %v5080_v54  ;;  %5419 = vmatpush1.msra.mxu1 %v5146_v41  ;;  %v5117_v54 = vld [vmem:[#allocation2 + $0x5d8] sm:$0xff]  ;;  %v5183_v41 = vld [vmem:[#allocation2 + $0x7e8] sm:$0xff] }
0x1946   :  { %5351 = vmatprep.subr.mxu0 %v5079_v6  ;;  %5420 = vmatprep.subr.mxu1 %v5145_v59  ;;  %v5116_v6 = vld [vmem:[#allocation2 + $0x5d0] sm:$0xff]  ;;  %v5182_v59 = vld [vmem:[#allocation2 + $0x7e0] sm:$0xff] }
0x1947   :  { %5352 = vmatpush1.msra.mxu0 %v5078_v18  ;;  %5421 = vmatpush1.msra.mxu1 %v5144_v20  ;;  %v5115_v18 = vld [vmem:[#allocation2 + $0x5c8] sm:$0xff]  ;;  %v5181_v20 = vld [vmem:[#allocation2 + $0x7d8] sm:$0xff] }
0x1948   :  { %5353 = vmatprep.subr.mxu0 %v5077_v52  ;;  %5422 = vmatprep.subr.mxu1 %v5143_v3 }
0x1949   :  { %5354 = vmatpush1.msra.mxu0 %v5076_v31  ;;  %5423 = vmatpush1.msra.mxu1 %v5142_v14  ;;  %v5114_v14 = vld [vmem:[#allocation2 + $0x5c0] sm:$0xff] }
0x194a   :  { %5355 = vmatprep.subr.mxu0 %v5075_v32  ;;  %5424 = vmatprep.subr.mxu1 %v5141_v23  ;;  %v5180_v32 = vld [vmem:[#allocation2 + $0x7d0] sm:$0xff] }
0x194b   :  { %5356 = vmatpush1.msra.mxu0 %v5074_v39  ;;  %5425 = vmatpush1.msra.mxu1 %v5140_v53  ;;  %v4844_v39 = vrot.slane %v8581_v60, 4 }
0x194c   :  { %5357 = vmatprep.subr.mxu0 %v5073_v35  ;;  %5426 = vmatprep.subr.mxu1 %v5139_v22  ;;  %v5113_v35 = vld [vmem:[#allocation2 + $0x5b8] sm:$0xff]  ;;  %v5179_v22 = vld [vmem:[#allocation2 + $0x7c8] sm:$0xff] }
0x194d   :  { %5358 = vmatpush1.msra.mxu0 %v5072_v36  ;;  %5427 = vmatpush1.msra.mxu1 %v5138_v47  ;;  %v4871_v36 = vrot.slane %v8565_v17, 4 }
0x194e   :  { %5359 = vmatprep.subr.mxu0 %v5071_v38  ;;  %5428 = vmatprep.subr.mxu1 %v5137_v25  ;;  %v5112_v38 = vld [vmem:[#allocation2 + $0x5b0] sm:$0xff]  ;;  %v5178_v25 = vld [vmem:[#allocation2 + $0x7c0] sm:$0xff] }
0x194f   :  { %5360 = vmatpush1.msra.mxu0 %v5070_v28  ;;  %5429 = vmatpush1.msra.mxu1 %v5136_v58  ;;  %v4615_v28 = vrot.slane %v8569_v5, 4 }
0x1950   :  { %5361 = vmatprep.subr.mxu0 %v5069_v27  ;;  %5430 = vmatprep.subr.mxu1 %v5135_v37  ;;  %v5111_v27 = vld [vmem:[#allocation2 + $0x5a8] sm:$0xff]  ;;  %v5177_v37 = vld [vmem:[#allocation2 + $0x7b8] sm:$0xff] }
0x1951   :  { %5362 = vmatpush1.msra.mxu0 %v5068_v19  ;;  %5431 = vmatpush1.msra.mxu1 %v5134_v11 }
0x1952   :  { %5363 = vmatprep.subr.mxu0 %v5067_v12  ;;  %5432 = vmatprep.subr.mxu1 %v5133_v29 }
0x1953   :  { %5364 = vmatpush1.msra.mxu0 %v5066_v4  ;;  %5433 = vmatpush1.msra.mxu1 %v5132_v7  ;;  %v5110_v7 = vld [vmem:[#allocation2 + $0x5a0] sm:$0xff] }
0x1954   :  { %5365 = vmatprep.subr.mxu0 %v5065_v15  ;;  %5434 = vmatprep.subr.mxu1 %v5131_v30  ;;  %v8645_v50 = vpop.permute.xlu1 %6779  ;;  %v8647_v21 = vpop.permute.xlu0 %6769 }
0x1955   :  { %5366 = vmatpush1.msra.mxu0 %v5064_v34  ;;  %5435 = vmatpush1.msra.mxu1 %v5130_v26  ;;  %v6772_v52 = vunpack.i.h.bf16 %v8647_v21  ;;  %v6771_v23 = vunpack.i.l.bf16 %v8647_v21  ;;  %v6782_v19 = vunpack.i.h.bf16 %v8645_v50  ;;  %v6781_v11 = vunpack.i.l.bf16 %v8645_v50 }
0x1956   :  { %5367 = vmatprep.subr.mxu0 %v5063_v16  ;;  %5436 = vmatprep.subr.mxu1 %v5129_v8  ;;  %v5176_v16 = vld [vmem:[#allocation2 + $0x7b0] sm:$0xff]  ;;  %v5109_v8 = vld [vmem:[#allocation2 + $0x598] sm:$0xff] }
0x1957   :  { %5368 = vmatpush1.msra.mxu0 %v5062_v33  ;;  %5437 = vmatpush1.msra.mxu1 %v5128_v43  ;;  %v4894_v12 = vsel %vm672_vm2, %v4871_v36, %v6772_v52  ;;  %v4659_v15 = vsel %vm672_vm2, %v4615_v28, %v6771_v23  ;;  %v5175_v33 = vld [vmem:[#allocation2 + $0x7a8] sm:$0xff]  ;;  %v5108_v43 = vld [vmem:[#allocation2 + $0x590] sm:$0xff]  ;;  %v5101_v36 = vld [vmem:[#allocation2 + $0x558] sm:$0xff] }
0x1958   :  { %5369 = vmatprep.subr.mxu0 %v5061_v10  ;;  %5438 = vmatprep.subr.mxu1 %v5127_v1  ;;  %v8649_v45 = vpop.permute.xlu1 %6789  ;;  %v8651_v0 = vpop.permute.xlu0 %6774  ;;  %v5174_v1 = vld [vmem:[#allocation2 + $0x7a0] sm:$0xff]  ;;  %v5103_v52 = vld [vmem:[#allocation2 + $0x568] sm:$0xff] }
0x1959   :  { %5370 = vmatpush1.msra.mxu0 %v5060_v2  ;;  %5439 = vmatpush1.msra.mxu1 %v5126_v40  ;;  %v6792_v30 = vunpack.i.h.bf16 %v8649_v45  ;;  %v6791_v34 = vunpack.i.l.bf16 %v8649_v45  ;;  %v5107_v2 = vld [vmem:[#allocation2 + $0x588] sm:$0xff]  ;;  %v4895_v40 = vsel %vm2056_vm3, %v4894_v12, %v6782_v19  ;;  %v5166_v28 = vld [vmem:[#allocation2 + $0x760] sm:$0xff]  ;;  %v5164_v12 = vld [vmem:[#allocation2 + $0x750] sm:$0xff] }
0x195a   :  { %5371 = vmatprep.subr.mxu0 %v5059_v44  ;;  %5440 = vmatprep.subr.mxu1 %v5125_v48  ;;  %v4642_v44 = vrot.slane %v8567_v62, 4  ;;  %v5098_v19 = vld [vmem:[#allocation2 + $0x540] sm:$0xff] }
0x195b   :  { %5372 = vmatpush1.msra.mxu0 %v5058_v42  ;;  %5441 = vmatpush1.msra.mxu1 %v5124_v49  ;;  %v5173_v42 = vld [vmem:[#allocation2 + $0x798] sm:$0xff]  ;;  %v5106_v49 = vld [vmem:[#allocation2 + $0x580] sm:$0xff] }
0x195c   :  { %5373 = vmatprep.subr.mxu0 %v5121_v61  ;;  %5442 = vmatprep.subr.mxu1 %v5123_v24  ;;  %v8653_v51 = vpop.permute.xlu1 %6804  ;;  %v8655_v57 = vpop.permute.xlu0 %6784  ;;  %v4660_v61 = vsel %vm2056_vm3, %v4659_v15, %v6781_v11  ;;  %v6777_v11 = vunpack.i.h.bf16 %v8651_v0 }
0x195d   :  { %5374 = vmatpush2.msra.mxu0 %v5120_v9  ;;  %5443 = vmatpush1.msra.mxu1 %v5122_v46  ;;  %v4896_v9 = vsel %vm4591_vm4, %v4895_v40, %v6792_v30  ;;  %v6787_v15 = vunpack.i.h.bf16 %v8655_v57  ;;  %v5163_v30 = vld [vmem:[#allocation2 + $0x748] sm:$0xff] }
0x195e   :  { %5375 = vmatprep.subr.mxu0 %v5119_v55  ;;  %5444 = vmatprep.subr.mxu1 %v5185_v56  ;;  %v5172_v56 = vld [vmem:[#allocation2 + $0x790] sm:$0xff]  ;;  %v4912_v23 = vrot.slane %v4896_v9, 7  ;;  %v5157_v9 = vld [vmem:[#allocation2 + $0x718] sm:$0xff] }
0x195f   :  { %5376 = vmatpush2.msra.mxu0 %v5118_v13  ;;  %5445 = vmatpush2.msra.mxu1 %v5184_v63  ;;  %v5105_v13 = vld [vmem:[#allocation2 + $0x578] sm:$0xff]  ;;  %v4661_v63 = vsel %vm4591_vm4, %v4660_v61, %v6791_v34 }
0x1960   :  { %5377 = vmatprep.subr.mxu0 %v5117_v54  ;;  %5446 = vmatprep.subr.mxu1 %v5183_v41  ;;  %v8658_v3 = vpop.permute.xlu1 %6809  ;;  %v8660_v31 = vpop.permute.xlu0 %6794 }
0x1961   :  { %v6796_v53 = vunpack.i.l.bf16 %v8660_v31  ;;  %5378 = vmatpush2.msra.mxu0 %v5116_v6  ;;  %5447 = vmatpush2.msra.mxu1 %v5182_v59  ;;  %v6811_v47 = vunpack.i.l.bf16 %v8658_v3  ;;  %v5171_v6 = vld [vmem:[#allocation2 + $0x788] sm:$0xff] }
0x1962   :  { %5379 = vmatprep.subr.mxu0 %v5115_v18  ;;  %5448 = vmatprep.subr.mxu1 %v5181_v20  ;;  %v5104_v18 = vld [vmem:[#allocation2 + $0x570] sm:$0xff]  ;;  %v5170_v20 = vld [vmem:[#allocation2 + $0x780] sm:$0xff] }
0x1963   :  { %v4888_v58 = vsel %vm672_vm2, %v4844_v39, %v6796_v53  ;;  %5380 = vmatpush2.msra.mxu0 %v5114_v14  ;;  %5449 = vmatpush2.msra.mxu1 %v5180_v32  ;;  %v5169_v14 = vld [vmem:[#allocation2 + $0x778] sm:$0xff]  ;;  %v6797_v39 = vunpack.i.h.bf16 %v8660_v31  ;;  %v5102_v53 = vld [vmem:[#allocation2 + $0x560] sm:$0xff] }
0x1964   :  { %5381 = vmatprep.subr.mxu0 %v5113_v35  ;;  %5450 = vmatprep.subr.mxu1 %v5179_v22  ;;  %v8672_v29 = vpop.permute.xlu1 %6814  ;;  %v8674_v4 = vpop.permute.xlu0 %6799  ;;  %v4889_v50 = vsel %vm2056_vm3, %v4888_v58, %v6811_v47  ;;  %v5168_v35 = vld [vmem:[#allocation2 + $0x770] sm:$0xff]  ;;  %v5167_v47 = vld [vmem:[#allocation2 + $0x768] sm:$0xff] }
0x1965   :  { %v6816_v26 = vunpack.i.l.bf16 %v8672_v29  ;;  %5382 = vmatpush2.msra.mxu0 %v5112_v38  ;;  %5451 = vmatpush2.msra.mxu1 %v5178_v25  ;;  %v6801_v21 = vunpack.i.l.bf16 %v8674_v4  ;;  %v5100_v38 = vld [vmem:[#allocation2 + $0x550] sm:$0xff]  ;;  %v6812_v25 = vunpack.i.h.bf16 %v8658_v3  ;;  %v5099_v58 = vld [vmem:[#allocation2 + $0x548] sm:$0xff]  ;;  %v4885_v31 = vsel %vm672_vm2, %v8581_v60, %v6797_v39  ;;  %v5497_v39 = vld [vmem:[%s8857_s5 + $0x60] sm:$0xff] }
0x1966   :  { %5383 = vmatprep.subr.mxu0 %v5111_v27  ;;  %5452 = vmatprep.subr.mxu1 %v5177_v37  ;;  %v6817_v27 = vunpack.i.h.bf16 %v8672_v29  ;;  %v5165_v37 = vld [vmem:[#allocation2 + $0x758] sm:$0xff]  ;;  %v6776_v3 = vunpack.i.l.bf16 %v8651_v0  ;;  %v5096_v60 = vld [vmem:[#allocation2 + $0x530] sm:$0xff]  ;;  %v6786_v29 = vunpack.i.l.bf16 %v8655_v57  ;;  %v6807_v57 = vunpack.i.h.bf16 %v8653_v51 }
0x1967   :  { %v4890_v10 = vsel %vm4591_vm4, %v4889_v50, %v6816_v26  ;;  %5384 = vmatpush2.msra.mxu0 %v5110_v7  ;;  %5453 = vmatpush2.msra.mxu1 %v5176_v16  ;;  %v4665_v54 = vsel %vm672_vm2, %v4642_v44, %v6801_v21  ;;  %v5097_v7 = vld [vmem:[#allocation2 + $0x538] sm:$0xff]  ;;  %v4886_v34 = vsel %vm2056_vm3, %v4885_v31, %v6812_v25  ;;  %v6802_v26 = vunpack.i.h.bf16 %v8674_v4  ;;  %v5162_v16 = vld [vmem:[#allocation2 + $0x740] sm:$0xff]  ;;  %v5160_v4 = vld [vmem:[#allocation2 + $0x730] sm:$0xff] }
0x1968   :  { %5385 = vmatprep.subr.mxu0 %v5109_v8  ;;  %v8685_v48 = vpop.permute.xlu1 %6824  ;;  %v8687_v45 = vpop.permute.xlu0 %6819  ;;  %v4910_v24 = vrot.slane %v4890_v10, 7  ;;  %5454 = vmatprep.subr.mxu1 %v5175_v33  ;;  %v5095_v8 = vld [vmem:[#allocation2 + $0x528] sm:$0xff]  ;;  %v4887_v50 = vsel %vm4591_vm4, %v4886_v34, %v6817_v27  ;;  %v5161_v21 = vld [vmem:[#allocation2 + $0x738] sm:$0xff]  ;;  %v5094_v33 = vld [vmem:[#allocation2 + $0x520] sm:$0xff] }
0x1969   :  { %v6826_v46 = vunpack.i.l.bf16 %v8685_v48  ;;  %v6821_v55 = vunpack.i.l.bf16 %v8687_v45  ;;  %5386 = vmatpush2.msra.mxu0 %v5108_v43  ;;  %5455 = vmatpush2.msra.mxu1 %v5174_v1  ;;  %v6822_v0 = vunpack.i.h.bf16 %v8687_v45  ;;  %v4891_v43 = vsel %vm672_vm2, %v8565_v17, %v6777_v11  ;;  %v5093_v10 = vld [vmem:[#allocation2 + $0x518] sm:$0xff]  ;;  %v5159_v44 = vld [vmem:[#allocation2 + $0x728] sm:$0xff]  ;;  %v5092_v45 = vld [vmem:[#allocation2 + $0x510] sm:$0xff] }
0x196a   :  { %5387 = vmatprep.subr.mxu0 %v5107_v2  ;;  %v4927_v41 = vsel %vm4921_vm5, %v4661_v63, %v4910_v24  ;;  %5456 = vmatprep.subr.mxu1 %v5173_v42  ;;  %v4656_v1 = vsel %vm672_vm2, %v8569_v5, %v6776_v3  ;;  %v6806_v2 = vunpack.i.l.bf16 %v8653_v51  ;;  %v4892_v40 = vsel %vm2056_vm3, %v4891_v43, %v6787_v15  ;;  %v5158_v24 = vld [vmem:[#allocation2 + $0x720] sm:$0xff]  ;;  %v5091_v5 = vld [vmem:[#allocation2 + $0x508] sm:$0xff]  ;;  %v5492_v31 = vld [vmem:[%s8857_s5 + $0x38] sm:$0xff] }
0x196b   :  { %v4666_v59 = vsel %vm2056_vm3, %v4665_v54, %v6821_v55  ;;  %5388 = vmatpush2.msra.mxu0 %v5106_v49  ;;  %5457 = vmatpush2.msra.mxu1 %v5172_v56  ;;  %v4657_v42 = vsel %vm2056_vm3, %v4656_v1, %v6786_v29  ;;  %v4909_v17 = vrot.slane %v4887_v50, 7  ;;  %v4662_v49 = vsel %vm672_vm2, %v8567_v62, %v6802_v26  ;;  %v5156_v55 = vld [vmem:[#allocation2 + $0x710] sm:$0xff]  ;;  %v5154_v63 = vld [vmem:[#allocation2 + $0x700] sm:$0xff]  ;;  %v5490_v11 = vld [vmem:[%s8857_s5 + $0x28] sm:$0xff] }
0x196c   :  { %5389 = vmatprep.subr.mxu0 %v5105_v13  ;;  %v4667_v32 = vsel %vm4591_vm4, %v4666_v59, %v6826_v46  ;;  %5405 = vmatprep.mubr.f32.mxu0 %v4927_v41  ;;  %v6827_v61 = vunpack.i.h.bf16 %v8685_v48  ;;  %v4663_v51 = vsel %vm2056_vm3, %v4662_v49, %v6822_v0  ;;  %v5090_v46 = vld [vmem:[#allocation2 + $0x500] sm:$0xff]  ;;  %v4893_v56 = vsel %vm4591_vm4, %v4892_v40, %v6807_v57  ;;  %v5155_v48 = vld [vmem:[#allocation2 + $0x708] sm:$0xff]  ;;  %v5516_v59 = vld [vmem:[%s8857_s5 + $0xf8] sm:$0xff] }
0x196d   :  { %5458 = vmatprep.subr.mxu1 %v5171_v6  ;;  %5390 = vmatpush2.msra.mxu0 %v5104_v18  ;;  %v4929_v22 = vsel %vm4921_vm5, %v4667_v32, %v4912_v23  ;;  %v4658_v62 = vsel %vm4591_vm4, %v4657_v42, %v6806_v2  ;;  %v4911_v41 = vrot.slane %v4893_v56, 7  ;;  %v5500_v18 = vld [vmem:[%s8857_s5 + $0x78] sm:$0xff]  ;;  %v5498_v32 = vld [vmem:[%s8857_s5 + $0x68] sm:$0xff]  ;;  %v5513_v23 = vld [vmem:[%s8857_s5 + $0xe0] sm:$0xff]  ;;  %v5189_v50 = vlaneseq }
0x196e   :  { %5459 = vmatpush2.msra.mxu1 %v5170_v20  ;;  %5391 = vmatprep.subr.mxu0 %v5103_v52  ;;  %v4926_v13 = vsel %vm4921_vm5, %v4658_v62, %v4909_v17  ;;  %v4664_v54 = vsel %vm4591_vm4, %v4663_v51, %v6827_v61  ;;  %v5515_v20 = vld [vmem:[%s8857_s5 + $0xf0] sm:$0xff]  ;;  %v5509_v25 = vld [vmem:[%s8857_s5 + $0xc0] sm:$0xff]  ;;  %v5504_v3 = vld [vmem:[%s8857_s5 + $0x98] sm:$0xff] }
0x196f   :  { %5460 = vmatprep.subr.mxu1 %v5169_v14  ;;  %5392 = vmatpush2.msra.mxu0 %v5102_v53  ;;  %v4928_v6 = vsel %vm4921_vm5, %v4664_v54, %v4911_v41  ;;  %v5499_v52 = vld [vmem:[%s8857_s5 + $0x70] sm:$0xff]  ;;  %v5514_v14 = vld [vmem:[%s8857_s5 + $0xe8] sm:$0xff]  ;;  %v5512_v53 = vld [vmem:[%s8857_s5 + $0xd8] sm:$0xff]  ;;  %v5190_v0 = vshrl.u32 %v5189_v50, 7 }
0x1970   :  { %5461 = vmatpush2.msra.mxu1 %v5168_v35  ;;  %5476 = vmatprep.mubr.f32.mxu1 %v4929_v22  ;;  %v5496_v35 = vld [vmem:[%s8857_s5 + $0x58] sm:$0xff]  ;;  %v5511_v22 = vld [vmem:[%s8857_s5 + $0xd0] sm:$0xff]  ;;  %v5502_v29 = vld [vmem:[%s8857_s5 + $0x88] sm:$0xff] }
0x1971   :  { %5393 = vmatprep.subr.mxu0 %v5101_v36  ;;  %5462 = vmatprep.subr.mxu1 %v5167_v47  ;;  %v5495_v36 = vld [vmem:[%s8857_s5 + $0x50] sm:$0xff]  ;;  %v5510_v47 = vld [vmem:[%s8857_s5 + $0xc8] sm:$0xff]  ;;  %v5488_v15 = vld [vmem:[%s8857_s5 + $0x18] sm:$0xff]  ;;  %v5195_v43 = vsub.s32 1, %v5190_v0 }
0x1972   :  { %5394 = vmatpush2.msra.mxu0 %v5100_v38  ;;  %5463 = vmatpush2.msra.mxu1 %v5166_v28  ;;  %v5494_v38 = vld [vmem:[%s8857_s5 + $0x48] sm:$0xff]  ;;  %v5493_v28 = vld [vmem:[%s8857_s5 + $0x40] sm:$0xff]  ;;  %v5507_v27 = vld [vmem:[%s8857_s5 + $0xb0] sm:$0xff] }
0x1973   :  { %5395 = vmatprep.subr.mxu0 %v5099_v58  ;;  %5464 = vmatprep.subr.mxu1 %v5165_v37  ;;  %v5508_v58 = vld [vmem:[%s8857_s5 + $0xb8] sm:$0xff]  ;;  %v5491_v37 = vld [vmem:[%s8857_s5 + $0x30] sm:$0xff]  ;;  %v5486_v34 = vld [vmem:[%s8857_s5 + $0x8] sm:$0xff] }
0x1974   :  { %5396 = vmatpush2.msra.mxu0 %v5098_v19  ;;  %5465 = vmatpush2.msra.mxu1 %v5164_v12  ;;  %v5506_v19 = vld [vmem:[%s8857_s5 + $0xa8] sm:$0xff]  ;;  %v5505_v12 = vld [vmem:[%s8857_s5 + $0xa0] sm:$0xff] }
0x1975   :  { %5397 = vmatprep.subr.mxu0 %v5097_v7  ;;  %5466 = vmatprep.subr.mxu1 %v5163_v30  ;;  %v5489_v7 = vld [vmem:[%s8857_s5 + $0x20] sm:$0xff]  ;;  %v5503_v30 = vld [vmem:[%s8857_s5 + $0x90] sm:$0xff]  ;;  %v5590_v54 = vld [vmem:[%s8858_s6 + $0x8] sm:$0xff] }
0x1976   :  { %5398 = vmatpush2.msra.mxu0 %v5096_v60  ;;  %5467 = vmatpush2.msra.mxu1 %v5162_v16  ;;  %v5487_v60 = vld [vmem:[%s8857_s5 + $0x10] sm:$0xff]  ;;  %v5501_v26 = vld [vmem:[%s8857_s5 + $0x80] sm:$0xff] }
0x1977   :  { %5399 = vmatprep.subr.mxu0 %v5095_v8  ;;  %5468 = vmatprep.subr.mxu1 %v5161_v21  ;;  %v5485_v16 = vld [vmem:[%s8857_s5] sm:$0xff]  ;;  %v7073_v8 = vmov 0.0   ;;  %v5191_v21 = vsub.s32 0, %v5190_v0 }
0x1978   :  { %5400 = vmatpush2.msra.mxu0 %v5094_v33  ;;  %5469 = vmatpush2.msra.mxu1 %v5160_v4  ;;  %v5894_v33 = vld [vmem:[%s8855_s3 + $0x30] ss:$8 sm:$0x3]  ;;  %v5589_v41 = vld [vmem:[%s8858_s6] sm:$0xff] }
0x1979   :  { %5401 = vmatprep.subr.mxu0 %v5093_v10  ;;  %5470 = vmatprep.subr.mxu1 %v5159_v44  ;;  %v5192_v4 = vrot.slane %v5894_v33, %v5191_v21  ;;  %v5196_v10 = vrot.slane %v5894_v33, %v5195_v43 }
0x197a   :  { %5402 = vmatpush2.msra.mxu0 %v5092_v45  ;;  %5471 = vmatpush2.msra.mxu1 %v5158_v24 }
0x197b   :  { %5403 = vmatprep.subr.mxu0 %v5091_v5  ;;  %5472 = vmatprep.subr.mxu1 %v5157_v9 }
0x197c   :  { %5404 = vmatpush2.msra.mxu0 %v5090_v46  ;;  %5473 = vmatpush2.msra.mxu1 %v5156_v55 }
0x197d   :  { %5406 = vmatmul.mubr.f32.vlgmr.msra.gmra.mxu0 %v4926_v13  ;;  %5474 = vmatprep.subr.mxu1 %v5155_v48  ;;  %v5593_v48 = vld [vmem:[%s8858_s6 + $0x20] sm:$0xff]  ;;  %v5592_v13 = vld [vmem:[%s8858_s6 + $0x18] sm:$0xff] }
0x197e   :  { %5475 = vmatpush2.msra.mxu1 %v5154_v63  ;;  %6172 = vmatprep.subr.mxu0 %v5516_v59  ;;  %v5591_v63 = vld [vmem:[%s8858_s6 + $0x10] sm:$0xff]  ;;  %s7075_s6 = smov [#allocation5]  }
0x197f   :  { %5477 = vmatmul.mubr.f32.vlgmr.msra.gmra.mxu1 %v4928_v6  ;;  %6173 = vmatpush3.msra.mxu0 %v5500_v18  ;;  %v5517_v59 = vld [vmem:[%s8855_s3 + $0x31] ss:$0 sm:$0xff]  ;;  %s5677_s11 = sshll.u32 %s7075_s6, 4  ;;  %s5678_s11 = int_to_ptr.vmem [resolvable:$true] %s5677_s11 }
0x1980   :  { %6174 = vmatprep.subr.mxu0 %v5515_v20  ;;  %6681 = vmatprep.subr.mxu1 %v7073_v8  ;;  %s7040_s12 = scalar_lea.vmem %s5678_s11, 32  ;;  %p7045_p6 = scmp.lt.s32.totalorder %s5678_s11, %s5678_s11 }
0x1981   :  { %6175 = vmatpush3.msra.mxu0 %v5499_v52  ;;  %6682 = vmatpush3.msra.mxu1 %v5593_v48  ;;  %p7041_p5 = scmp.ne.s32.totalorder %s5678_s11, %s7040_s12  ;;  %p7046_p7 = scmp.lt.s32.totalorder %s7040_s12, %s7040_s12 }
0x1982   :  { %6176 = vmatprep.subr.mxu0 %v5514_v14  ;;  %6683 = vmatprep.subr.mxu1 %v7073_v8 }
0x1983   :  { %6177 = vmatpush3.msra.mxu0 %v5498_v32  ;;  %6684 = vmatpush3.msra.mxu1 %v5592_v13  ;;  %v5594_v32 = vld [vmem:[%s8855_s3 + $0x32] ss:$0 sm:$0xff]  ;;  %p7047_p8 = por %p7046_p7, %p7045_p6 }
0x1984   :  { %6178 = vmatprep.subr.mxu0 %v5513_v23  ;;  %6685 = vmatprep.subr.mxu1 %v7073_v8 }
0x1985   :  { %6179 = vmatpush3.msra.mxu0 %v5497_v39  ;;  %6686 = vmatpush3.msra.mxu1 %v5591_v63  ;;  %p7048_p9 = pnand %p7047_p8, %p7041_p5 }
0x1986   :  { %6180 = vmatprep.subr.mxu0 %v5512_v53  ;;  %6687 = vmatprep.subr.mxu1 %v7073_v8 }
0x1987   :  { %6181 = vmatpush3.msra.mxu0 %v5496_v35  ;;  %6691 = vmatprep.mubr.msk.f32.mxu1 %vm7074_vm6, %v7073_v8 }
0x1988   :  { %6182 = vmatprep.subr.mxu0 %v5511_v22  ;;  %6688 = vmatpush3.msra.mxu1 %v5590_v54 }
0x1989   :  { %6183 = vmatpush3.msra.mxu0 %v5495_v36  ;;  %6689 = vmatprep.subr.mxu1 %v7073_v8 }
0x198a   :  { %6184 = vmatprep.subr.mxu0 %v5510_v47  ;;  %6690 = vmatpush3.msra.mxu1 %v5589_v41 }
0x198b   :  { %6185 = vmatpush3.msra.mxu0 %v5494_v38 }
0x198c   :  { %6186 = vmatprep.subr.mxu0 %v5509_v25 }
0x198d   :  { %6187 = vmatpush3.msra.mxu0 %v5493_v28 }
0x198e   :  { %6188 = vmatprep.subr.mxu0 %v5508_v58 }
0x198f   :  { %6189 = vmatpush3.msra.mxu0 %v5492_v31 }
0x1990   :  { %6190 = vmatprep.subr.mxu0 %v5507_v27 }
0x1991   :  { %6191 = vmatpush3.msra.mxu0 %v5491_v37 }
0x1992   :  { %6192 = vmatprep.subr.mxu0 %v5506_v19 }
0x1993   :  { %6193 = vmatpush3.msra.mxu0 %v5490_v11 }
0x1994   :  { %6194 = vmatprep.subr.mxu0 %v5505_v12 }
0x1995   :  { %6195 = vmatpush3.msra.mxu0 %v5489_v7 }
0x1996   :  { %6196 = vmatprep.subr.mxu0 %v5504_v3 }
0x1997   :  { %6197 = vmatpush3.msra.mxu0 %v5488_v15 }
0x1998   :  { %6198 = vmatprep.subr.mxu0 %v5503_v30 }
0x1999   :  { %6199 = vmatpush3.msra.mxu0 %v5487_v60 }
0x199a   :  { %6200 = vmatprep.subr.mxu0 %v5502_v29 }
0x199b   :  { %6201 = vmatpush3.msra.mxu0 %v5486_v34 }
0x199c   :  { %6202 = vmatprep.subr.mxu0 %v5501_v26 }
0x199d   :  { %6203 = vmatpush3.msra.mxu0 %v5485_v16 }
0x19fc   :  { %v5265_v57 = vpop.f32.mrf.mxu0 }
0x19fd   :  { %v5266_v40 = vadd.f32 %v5265_v57, %v5192_v4 }
0x19fe   :  { %v5267_v1 = vpop.f32.mrf.mxu0  ;;  %v5336_v2 = vpop.f32.mrf.mxu1 }
0x19ff   :  { %v5268_v44 = vadd.f32 %v5267_v1, %v5196_v10  ;;  %v5337_v42 = vadd.f32 %v5336_v2, %v5266_v40 }
0x1a00   :  { %v5338_v45 = vpop.f32.mrf.mxu1 }
0x1a01   :  { %v5339_v49 = vadd.f32 %v5338_v45, %v5268_v44 }
0x1a3d   :  { %v5407_v17 = vpop.f32.mrf.mxu0 }
0x1a3e   :  { %v5408_v61 = vadd.f32 %v5407_v17, %v5337_v42 }
0x1a3f   :  { %v5409_v24 = vpop.f32.mrf.mxu0  ;;  %v5478_v51 = vpop.f32.mrf.mxu1 }
0x1a40   :  { %v5410_v5 = vadd.f32 %v5409_v24, %v5339_v49  ;;  %v5479_v9 = vadd.f32 %v5478_v51, %v5408_v61 }
0x1a41   :  { %v5480_v46 = vpop.f32.mrf.mxu1 }
0x1a42   :  { %v5481_v55 = vadd.f32 %v5480_v46, %v5410_v5  ;;  %v5483_v62 = vmax.f32 %v5479_v9, 0.0 }
0x1a44   :  { %v5484_v56 = vmax.f32 %v5481_v55, 0.0 }
0x1a46   :  { %5582 = vmatprep.mubr.f32.mxu0 %v5484_v56 }
0x1a47   :  { %5583 = vmatmul.mubr.f32.vlgmr.msra.gmra.mxu0 %v5483_v62 }
0x1b07   :  { %v6204_v6 = vpop.f32.mrf.mxu0 }
0x1b09   :  { %v6205_v18 = vpop.f32.mrf.mxu0 }
0x1b0a   :  { %v6206_v20 = vadd.f32 %v6205_v18, %v6204_v6 }
0x1b0c   :  { %v5585_v52 = vadd.f32 %v6206_v20, %v5517_v59 }
0x1b0e   :  { %v5588_v14 = vmax.f32 %v5585_v52, 0.0 }
0x1b10   :  { %6692 = vmatmul.mubr.msk.f32.vlgmr.msra.gmra.mxu1 %vm5595_vm7, %v5588_v14 }
0x1bd0   :  { %v5665_v23 = vpop.f32.mrf.mxu1 }
0x1bd1   :  { %v5666_v39 = vadd.f32 %v5665_v23, %v5594_v32 }
0x1bd2   :  { %v6693_v53 = vpop.f32.mrf.mxu1 }
0x1bd3   :  { %5670 = vst.msk [vmem:[#allocation5] sm:$0x3] %vm5669_vm8, %v5666_v39 }
0x1bd4   :  { %7051 = shalt.err (!%p7048_p9)
}
0x1bd5   :  { %5680 = dma.vmem_to_hbm [thread:$0]  %s5678_s11, 32, %s8859_s7, [#allocation4]  }
0x1bd6   :  { %7062 = dma.done.wait [#allocation4], 32  }
0x1bd7   :  { %7063 = vsyncadd [#allocation4], 4294967264 }
0x1bd8   :  { %5684 = vsyncpa [#allocation3], 1 }
0x1bd9   :  { %5685 = vsyncpa [#allocation4], 1 }

</bundles_post_ra>
